<compile_context>
chip_gen: v7x
topology: tpu7x:2x2x1
jax: 0.10.0
libtpu: 0.0.40
codegen_flags: <defaults>
</compile_context>

<pallas_src>
import jax
import jax.numpy as jnp
import numpy as np
from jax.experimental import pallas as pl
from jax.experimental.pallas import tpu as pltpu


# ----------------------------------------------------------------------------
# Helpers
# ----------------------------------------------------------------------------
def fold_bn(gamma, beta, mean, var, eps=1e-5):
    scale = gamma / jnp.sqrt(var + eps)
    bias = beta - mean * scale
    return scale, bias


def _choose_band_rows(h_out, target=4):
    """Largest divisor of h_out that is <= target (always >= 1)."""
    for th in range(min(target, h_out), 0, -1):
        if h_out % th == 0:
            return th
    return h_out


def _ds(start, size, stride):
    if stride == 1:
        return pl.ds(start, size)
    return pl.ds(start, size, stride=stride)


def _pointwise_conv(x, w):
    """1x1 conv: x (..., K) . w (K, Cout) -> (..., Cout), f32 accumulate."""
    K, cout = w.shape
    if K <= 64 and cout <= 64:
        # K/Cout << 128 would leave the MXU systolic array ~99% idle: do a VPU
        # broadcast-MAC over the K input channels instead.
        acc = jnp.zeros(x.shape[:-1] + (cout,), jnp.float32)
        for k in range(K):
            acc = acc + x[..., k:k + 1].astype(jnp.float32) * w[k, :].astype(jnp.float32)
        return acc
    # Real MobileNet channel counts: use the MXU.
    x2d = x.reshape(-1, K)
    out = jnp.dot(x2d, w, preferred_element_type=jnp.float32)
    return out.reshape(x.shape[:-1] + (cout,))


# ----------------------------------------------------------------------------
# Fused InvertedResidual forward (NHWC in/out of this function).
# ----------------------------------------------------------------------------
def inverted_residual_forward(x_nhwc, params, *, inp, oup, stride, expand_ratio,
                              band_target=4):
    N, H, W, cin = x_nhwc.shape
    assert cin == inp
    assert stride in (1, 2)
    expand = expand_ratio != 1
    hidden = params["w_dw"].shape[-1]
    h_out = (H + 2 - 3) // stride + 1
    w_out = (W + 2 - 3) // stride + 1
    use_res = (stride == 1 and inp == oup)
    hp, wp = H + 2, W + 2

    th = _choose_band_rows(h_out, band_target)   # output rows per grid step
    nb = h_out // th

    def c3(v, c):
        return v.reshape(1, 1, c).astype(jnp.float32)

    s2, b2 = c3(params["s2"], hidden), c3(params["b2"], hidden)
    s3, b3 = c3(params["s3"], oup), c3(params["b3"], oup)
    if expand:
        s1, b1 = c3(params["s1"], hidden), c3(params["b1"], hidden)

    def kernel(*refs):
        if expand:
            (x_ref, w1_ref, s1_ref, b1_ref, wdw_ref, s2_ref, b2_ref,
             w2_ref, s3_ref, b3_ref, o_ref, hbuf_ref) = refs
        else:
            (x_ref, wdw_ref, s2_ref, b2_ref,
             w2_ref, s3_ref, b3_ref, o_ref, hbuf_ref) = refs

        band = pl.program_id(1)

        # Phase 1 (once per image): expand 1x1 + BN + ReLU6 into a
        # zero-padded VMEM scratch (the halo border stays zero).  The hidden
        # activation never touches HBM.
        @pl.when(band == 0)
        def _():
            hbuf_ref[...] = jnp.zeros_like(hbuf_ref)
            xv = x_ref[0].astype(jnp.float32)                   # (H, W, cin)
            if expand:
                h = _pointwise_conv(xv, w1_ref[...])
                h = jnp.clip(h * s1_ref[...] + b1_ref[...], 0.0, 6.0)
            else:
                h = xv
            hbuf_ref[1:H + 1, 1:W + 1, :] = h

        # Phase 2 (per output row-band): 3x3 depthwise + BN + ReLU6.
        # Taps are (strided) ref loads straight from the padded scratch.
        wv = wdw_ref[...].astype(jnp.float32)                   # (3, 3, hidden)
        row0 = pl.multiple_of(band * (th * stride), th * stride)
        acc = jnp.zeros((th, w_out, hidden), jnp.float32)
        for kh in range(3):
            for kw in range(3):
                patch = hbuf_ref[_ds(row0 + kh, th, stride),
                                 _ds(kw, w_out, stride), :]
                acc = acc + patch * wv[kh, kw, :]
        acc = jnp.clip(acc * s2_ref[...] + b2_ref[...], 0.0, 6.0)

        # Phase 3: project 1x1 + BN (+ residual from the x block already
        # resident in VMEM -- no extra HBM read).
        out = _pointwise_conv(acc, w2_ref[...])
        out = out * s3_ref[...] + b3_ref[...]
        if use_res:
            res = x_ref[0, pl.ds(band * th, th), :, :].astype(jnp.float32)
            out = out + res
        o_ref[0] = out.astype(o_ref.dtype)

    in_specs = [pl.BlockSpec((1, H, W, cin), lambda n, b: (n, 0, 0, 0))]
    args = [x_nhwc]
    if expand:
        in_specs += [
            pl.BlockSpec((cin, hidden), lambda n, b: (0, 0)),
            pl.BlockSpec((1, 1, hidden), lambda n, b: (0, 0, 0)),
            pl.BlockSpec((1, 1, hidden), lambda n, b: (0, 0, 0)),
        ]
        args += [params["w1"], s1, b1]
    in_specs += [
        pl.BlockSpec((3, 3, hidden), lambda n, b: (0, 0, 0)),
        pl.BlockSpec((1, 1, hidden), lambda n, b: (0, 0, 0)),
        pl.BlockSpec((1, 1, hidden), lambda n, b: (0, 0, 0)),
        pl.BlockSpec((hidden, oup), lambda n, b: (0, 0)),
        pl.BlockSpec((1, 1, oup), lambda n, b: (0, 0, 0)),
        pl.BlockSpec((1, 1, oup), lambda n, b: (0, 0, 0)),
    ]
    args += [params["w_dw"], s2, b2, params["w2"], s3, b3]

    return pl.pallas_call(
        kernel,
        out_shape=jax.ShapeDtypeStruct((N, h_out, w_out, oup), x_nhwc.dtype),
        grid=(N, nb),
        in_specs=in_specs,
        out_specs=pl.BlockSpec((1, th, w_out, oup), lambda n, b: (n, b, 0, 0)),
        scratch_shapes=[pltpu.VMEM((hp, wp, hidden), jnp.float32)],
        compiler_params=pltpu.CompilerParams(
            dimension_semantics=("parallel", "arbitrary")),
    )(*args)


# ----------------------------------------------------------------------------
# Parameter construction (deterministic, synthetic) + BN folding.
# ----------------------------------------------------------------------------
def make_params(key, inp, oup, expand_ratio):
    hidden = int(round(inp * expand_ratio))
    ks = jax.random.split(key, 16)

    def bn(k, c):
        k1, k2, k3, k4 = jax.random.split(k, 4)
        gamma = jax.random.uniform(k1, (c,), jnp.float32, 0.5, 1.5)
        beta = 0.1 * jax.random.normal(k2, (c,), jnp.float32)
        mean = 0.1 * jax.random.normal(k3, (c,), jnp.float32)
        var = jax.random.uniform(k4, (c,), jnp.float32, 0.5, 1.5)
        return fold_bn(gamma, beta, mean, var)

    p = {}
    if expand_ratio != 1:
        p["w1"] = 0.2 * jax.random.normal(ks[0], (inp, hidden), jnp.float32)
        p["s1"], p["b1"] = bn(ks[1], hidden)
    p["w_dw"] = 0.2 * jax.random.normal(ks[2], (3, 3, hidden), jnp.float32)
    p["s2"], p["b2"] = bn(ks[3], hidden)
    p["w2"] = 0.2 * jax.random.normal(ks[4], (hidden, oup), jnp.float32)
    p["s3"], p["b3"] = bn(ks[5], oup)
    return p


# ----------------------------------------------------------------------------
# Pure-JAX reference (exact f32) for correctness.
# ----------------------------------------------------------------------------
def reference_forward(x, params, *, inp, oup, stride, expand_ratio):
    hi = jax.lax.Precision.HIGHEST
    h = x
    if expand_ratio != 1:
        h = jnp.einsum("nhwc,cd->nhwd", h, params["w1"], precision=hi)
        h = jnp.clip(h * params["s1"] + params["b1"], 0.0, 6.0)
    N, H, W, C = h.shape
    Ho = (H + 2 - 3) // stride + 1
    Wo = (W + 2 - 3) // stride + 1
    hp = jnp.pad(h, ((0, 0), (1, 1), (1, 1), (0, 0)))
    acc = jnp.zeros((N, Ho, Wo, C), jnp.float32)
    for kh in range(3):
        for kw in range(3):
            acc = acc + hp[:, kh:kh + stride * (Ho - 1) + 1:stride,
                           kw:kw + stride * (Wo - 1) + 1:stride, :] * params["w_dw"][kh, kw, :]
    h = jnp.clip(acc * params["s2"] + params["b2"], 0.0, 6.0)
    h = jnp.einsum("nhwc,cd->nhwd", h, params["w2"], precision=hi)
    h = h * params["s3"] + params["b3"]
    if stride == 1 and inp == oup:
        h = h + x
    return h


if __name__ == "__main__":
    # PyTorch-style NCHW inputs; `bit` (quantization width) is unused, see TODO.
    key = jax.random.PRNGKey(0)
    configs = [
        dict(inp=4, oup=4, stride=1, expand_ratio=4),    # expand + residual
        dict(inp=8, oup=16, stride=1, expand_ratio=1),   # no expand, no residual
    ]
    for cfg in configs:
        key, kx, kp = jax.random.split(key, 3)
        x_nchw = jax.random.normal(kx, (2, cfg["inp"], 16, 16), jnp.float32)
        params = make_params(kp, cfg["inp"], cfg["oup"], cfg["expand_ratio"])

        x_nhwc = jnp.transpose(x_nchw, (0, 2, 3, 1))
        out_nhwc = inverted_residual_forward(x_nhwc, params, **cfg)
        out_nchw = jnp.transpose(out_nhwc, (0, 3, 1, 2))
        jax.block_until_ready(out_nchw)

        ref_nhwc = reference_forward(x_nhwc, params, **cfg)
        ref_nchw = jnp.transpose(ref_nhwc, (0, 3, 1, 2))
        np.testing.assert_allclose(np.asarray(out_nchw), np.asarray(ref_nchw),
                                   rtol=1e-4, atol=1e-4)
    print("KERNEL_OK")
</pallas_src>

<mosaic_0001>
module attributes {stable_mosaic.version = 11 : i64} {
  func.func @kernel(%arg0: i32, %arg1: i32, %arg2: memref<1x16x16x4xf32, #tpu.memory_space<vmem>>, %arg3: memref<4x16xf32, #tpu.memory_space<vmem>>, %arg4: memref<1x1x16xf32, #tpu.memory_space<vmem>>, %arg5: memref<1x1x16xf32, #tpu.memory_space<vmem>>, %arg6: memref<3x3x16xf32, #tpu.memory_space<vmem>>, %arg7: memref<1x1x16xf32, #tpu.memory_space<vmem>>, %arg8: memref<1x1x16xf32, #tpu.memory_space<vmem>>, %arg9: memref<16x4xf32, #tpu.memory_space<vmem>>, %arg10: memref<1x1x4xf32, #tpu.memory_space<vmem>>, %arg11: memref<1x1x4xf32, #tpu.memory_space<vmem>>, %arg12: memref<1x4x16x4xf32, #tpu.memory_space<vmem>>, %arg13: memref<18x18x16xf32, #tpu.memory_space<vmem>>) attributes {dimension_semantics = [#tpu.dimension_semantics<parallel>, #tpu.dimension_semantics<arbitrary>], iteration_bounds = array<i64: 2, 4>, scalar_prefetch = 0 : i64, scratch_operands = 1 : i64, tpu.core_type = #tpu.core_type<tc>, window_params = [{transform_indices = @transform_0, window_bounds = array<i64: 1, 16, 16, 4>}, {pipeline_mode = #tpu.pipeline_mode<synchronous>, transform_indices = @transform_1, window_bounds = array<i64: 4, 16>}, {pipeline_mode = #tpu.pipeline_mode<synchronous>, transform_indices = @transform_2, window_bounds = array<i64: 1, 1, 16>}, {pipeline_mode = #tpu.pipeline_mode<synchronous>, transform_indices = @transform_3, window_bounds = array<i64: 1, 1, 16>}, {pipeline_mode = #tpu.pipeline_mode<synchronous>, transform_indices = @transform_4, window_bounds = array<i64: 3, 3, 16>}, {pipeline_mode = #tpu.pipeline_mode<synchronous>, transform_indices = @transform_5, window_bounds = array<i64: 1, 1, 16>}, {pipeline_mode = #tpu.pipeline_mode<synchronous>, transform_indices = @transform_6, window_bounds = array<i64: 1, 1, 16>}, {pipeline_mode = #tpu.pipeline_mode<synchronous>, transform_indices = @transform_7, window_bounds = array<i64: 16, 4>}, {pipeline_mode = #tpu.pipeline_mode<synchronous>, transform_indices = @transform_8, window_bounds = array<i64: 1, 1, 4>}, {pipeline_mode = #tpu.pipeline_mode<synchronous>, transform_indices = @transform_9, window_bounds = array<i64: 1, 1, 4>}, {transform_indices = @transform_10, window_bounds = array<i64: 1, 4, 16, 4>}]} {
    %c0_i32 = arith.constant 0 : i32
    %0 = arith.cmpi eq, %arg1, %c0_i32 : i32
    %1 = arith.extui %0 : i1 to i32
    %c0_i32_0 = arith.constant 0 : i32
    %2 = arith.cmpi ne, %1, %c0_i32_0 : i32
    scf.if %2 {
      %cst_51 = arith.constant 0.000000e+00 : f32
      %242 = vector.broadcast %cst_51 : f32 to vector<18x18x16xf32>
      %c0_52 = arith.constant 0 : index
      %c0_53 = arith.constant 0 : index
      %c0_54 = arith.constant 0 : index
      %243 = vector.load %arg13[%c0_52, %c0_53, %c0_54] : memref<18x18x16xf32, #tpu.memory_space<vmem>>, vector<18x18x16xf32>
      tpu.vector_store %arg13[%c0_52, %c0_53, %c0_54], %242 {strides = array<i32>} : memref<18x18x16xf32, #tpu.memory_space<vmem>>, vector<18x18x16xf32>,
      %c0_55 = arith.constant 0 : index
      %c0_56 = arith.constant 0 : index
      %c0_57 = arith.constant 0 : index
      %c0_58 = arith.constant 0 : index
      %244 = vector.load %arg2[%c0_55, %c0_56, %c0_57, %c0_58] : memref<1x16x16x4xf32, #tpu.memory_space<vmem>>, vector<1x16x16x4xf32>
      %245 = vector.shape_cast %244 : vector<1x16x16x4xf32> to vector<16x16x4xf32>
      %c0_59 = arith.constant 0 : index
      %c0_60 = arith.constant 0 : index
      %246 = vector.load %arg3[%c0_59, %c0_60] : memref<4x16xf32, #tpu.memory_space<vmem>>, vector<4x16xf32>
      %cst_61 = arith.constant 0.000000e+00 : f32
      %247 = vector.broadcast %cst_61 : f32 to vector<16x16x16xf32>
      %248 = vector.extract_strided_slice %245 {offsets = [0, 0, 0], sizes = [16, 16, 1], strides = [1, 1, 1]} : vector<16x16x4xf32> to vector<16x16x1xf32>
      %249 = vector.extract_strided_slice %246 {offsets = [0, 0], sizes = [1, 16], strides = [1, 1]} : vector<4x16xf32> to vector<1x16xf32>
      %250 = vector.shape_cast %249 : vector<1x16xf32> to vector<16xf32>
      %251 = vector.shape_cast %250 : vector<16xf32> to vector<1x1x16xf32>
      %252 = vector.broadcast %248 : vector<16x16x1xf32> to vector<16x16x16xf32>
      %253 = vector.broadcast %251 : vector<1x1x16xf32> to vector<16x16x16xf32>
      %254 = arith.mulf %252, %253 : vector<16x16x16xf32>
      %255 = arith.addf %247, %254 : vector<16x16x16xf32>
      %256 = vector.extract_strided_slice %245 {offsets = [0, 0, 1], sizes = [16, 16, 1], strides = [1, 1, 1]} : vector<16x16x4xf32> to vector<16x16x1xf32>
      %257 = vector.extract_strided_slice %246 {offsets = [1, 0], sizes = [1, 16], strides = [1, 1]} : vector<4x16xf32> to vector<1x16xf32>
      %258 = vector.shape_cast %257 : vector<1x16xf32> to vector<16xf32>
      %259 = vector.shape_cast %258 : vector<16xf32> to vector<1x1x16xf32>
      %260 = vector.broadcast %256 : vector<16x16x1xf32> to vector<16x16x16xf32>
      %261 = vector.broadcast %259 : vector<1x1x16xf32> to vector<16x16x16xf32>
      %262 = arith.mulf %260, %261 : vector<16x16x16xf32>
      %263 = arith.addf %255, %262 : vector<16x16x16xf32>
      %264 = vector.extract_strided_slice %245 {offsets = [0, 0, 2], sizes = [16, 16, 1], strides = [1, 1, 1]} : vector<16x16x4xf32> to vector<16x16x1xf32>
      %265 = vector.extract_strided_slice %246 {offsets = [2, 0], sizes = [1, 16], strides = [1, 1]} : vector<4x16xf32> to vector<1x16xf32>
      %266 = vector.shape_cast %265 : vector<1x16xf32> to vector<16xf32>
      %267 = vector.shape_cast %266 : vector<16xf32> to vector<1x1x16xf32>
      %268 = vector.broadcast %264 : vector<16x16x1xf32> to vector<16x16x16xf32>
      %269 = vector.broadcast %267 : vector<1x1x16xf32> to vector<16x16x16xf32>
      %270 = arith.mulf %268, %269 : vector<16x16x16xf32>
      %271 = arith.addf %263, %270 : vector<16x16x16xf32>
      %272 = vector.extract_strided_slice %245 {offsets = [0, 0, 3], sizes = [16, 16, 1], strides = [1, 1, 1]} : vector<16x16x4xf32> to vector<16x16x1xf32>
      %273 = vector.extract_strided_slice %246 {offsets = [3, 0], sizes = [1, 16], strides = [1, 1]} : vector<4x16xf32> to vector<1x16xf32>
      %274 = vector.shape_cast %273 : vector<1x16xf32> to vector<16xf32>
      %275 = vector.shape_cast %274 : vector<16xf32> to vector<1x1x16xf32>
      %276 = vector.broadcast %272 : vector<16x16x1xf32> to vector<16x16x16xf32>
      %277 = vector.broadcast %275 : vector<1x1x16xf32> to vector<16x16x16xf32>
      %278 = arith.mulf %276, %277 : vector<16x16x16xf32>
      %279 = arith.addf %271, %278 : vector<16x16x16xf32>
      %c0_62 = arith.constant 0 : index
      %c0_63 = arith.constant 0 : index
      %c0_64 = arith.constant 0 : index
      %280 = vector.load %arg4[%c0_62, %c0_63, %c0_64] : memref<1x1x16xf32, #tpu.memory_space<vmem>>, vector<1x1x16xf32>
      %281 = vector.broadcast %280 : vector<1x1x16xf32> to vector<16x16x16xf32>
      %282 = arith.mulf %279, %281 : vector<16x16x16xf32>
      %c0_65 = arith.constant 0 : index
      %c0_66 = arith.constant 0 : index
      %c0_67 = arith.constant 0 : index
      %283 = vector.load %arg5[%c0_65, %c0_66, %c0_67] : memref<1x1x16xf32, #tpu.memory_space<vmem>>, vector<1x1x16xf32>
      %284 = vector.broadcast %283 : vector<1x1x16xf32> to vector<16x16x16xf32>
      %285 = arith.addf %282, %284 : vector<16x16x16xf32>
      %cst_68 = arith.constant 0.000000e+00 : f32
      %cst_69 = arith.constant 6.000000e+00 : f32
      %286 = vector.broadcast %cst_68 : f32 to vector<16x16x16xf32>
      %287 = arith.maximumf %286, %285 : vector<16x16x16xf32>
      %288 = vector.broadcast %cst_69 : f32 to vector<16x16x16xf32>
      %289 = arith.minimumf %288, %287 : vector<16x16x16xf32>
      %c1_70 = arith.constant 1 : index
      %c1_71 = arith.constant 1 : index
      %c0_72 = arith.constant 0 : index
      %290 = vector.load %arg13[%c1_70, %c1_71, %c0_72] : memref<18x18x16xf32, #tpu.memory_space<vmem>>, vector<16x16x16xf32>
      tpu.vector_store %arg13[%c1_70, %c1_71, %c0_72], %289 {strides = array<i32>} : memref<18x18x16xf32, #tpu.memory_space<vmem>>, vector<16x16x16xf32>,
    } else {
    }
    %c0 = arith.constant 0 : index
    %c0_1 = arith.constant 0 : index
    %c0_2 = arith.constant 0 : index
    %3 = vector.load %arg6[%c0, %c0_1, %c0_2] : memref<3x3x16xf32, #tpu.memory_space<vmem>>, vector<3x3x16xf32>
    %c4_i32 = arith.constant 4 : i32
    %4 = arith.muli %arg1, %c4_i32 : i32
    %5 = tpu.assume_multiple %4, 4 : i32
    %cst = arith.constant 0.000000e+00 : f32
    %6 = vector.broadcast %cst : f32 to vector<4x16x16xf32>
    %c0_i32_3 = arith.constant 0 : i32
    %7 = arith.addi %5, %c0_i32_3 : i32
    %8 = arith.index_cast %7 : i32 to index
    %c0_4 = arith.constant 0 : index
    %c0_5 = arith.constant 0 : index
    %9 = vector.load %arg13[%8, %c0_4, %c0_5] : memref<18x18x16xf32, #tpu.memory_space<vmem>>, vector<4x16x16xf32>
    %10 = vector.extract_strided_slice %3 {offsets = [0, 0, 0], sizes = [1, 1, 16], strides = [1, 1, 1]} : vector<3x3x16xf32> to vector<1x1x16xf32>
    %11 = vector.shape_cast %10 : vector<1x1x16xf32> to vector<16xf32>
    %12 = vector.shape_cast %11 : vector<16xf32> to vector<1x1x16xf32>
    %13 = vector.broadcast %12 : vector<1x1x16xf32> to vector<4x16x16xf32>
    %14 = arith.mulf %9, %13 : vector<4x16x16xf32>
    %15 = arith.addf %6, %14 : vector<4x16x16xf32>
    %c0_i32_6 = arith.constant 0 : i32
    %16 = arith.addi %5, %c0_i32_6 : i32
    %17 = arith.index_cast %16 : i32 to index
    %c1 = arith.constant 1 : index
    %c0_7 = arith.constant 0 : index
    %18 = vector.load %arg13[%17, %c1, %c0_7] : memref<18x18x16xf32, #tpu.memory_space<vmem>>, vector<4x16x16xf32>
    %19 = vector.extract_strided_slice %3 {offsets = [0, 1, 0], sizes = [1, 1, 16], strides = [1, 1, 1]} : vector<3x3x16xf32> to vector<1x1x16xf32>
    %20 = vector.shape_cast %19 : vector<1x1x16xf32> to vector<16xf32>
    %21 = vector.shape_cast %20 : vector<16xf32> to vector<1x1x16xf32>
    %22 = vector.broadcast %21 : vector<1x1x16xf32> to vector<4x16x16xf32>
    %23 = arith.mulf %18, %22 : vector<4x16x16xf32>
    %24 = arith.addf %15, %23 : vector<4x16x16xf32>
    %c0_i32_8 = arith.constant 0 : i32
    %25 = arith.addi %5, %c0_i32_8 : i32
    %26 = arith.index_cast %25 : i32 to index
    %c2 = arith.constant 2 : index
    %c0_9 = arith.constant 0 : index
    %27 = vector.load %arg13[%26, %c2, %c0_9] : memref<18x18x16xf32, #tpu.memory_space<vmem>>, vector<4x16x16xf32>
    %28 = vector.extract_strided_slice %3 {offsets = [0, 2, 0], sizes = [1, 1, 16], strides = [1, 1, 1]} : vector<3x3x16xf32> to vector<1x1x16xf32>
    %29 = vector.shape_cast %28 : vector<1x1x16xf32> to vector<16xf32>
    %30 = vector.shape_cast %29 : vector<16xf32> to vector<1x1x16xf32>
    %31 = vector.broadcast %30 : vector<1x1x16xf32> to vector<4x16x16xf32>
    %32 = arith.mulf %27, %31 : vector<4x16x16xf32>
    %33 = arith.addf %24, %32 : vector<4x16x16xf32>
    %c1_i32 = arith.constant 1 : i32
    %34 = arith.addi %5, %c1_i32 : i32
    %35 = arith.index_cast %34 : i32 to index
    %c0_10 = arith.constant 0 : index
    %c0_11 = arith.constant 0 : index
    %36 = vector.load %arg13[%35, %c0_10, %c0_11] : memref<18x18x16xf32, #tpu.memory_space<vmem>>, vector<4x16x16xf32>
    %37 = vector.extract_strided_slice %3 {offsets = [1, 0, 0], sizes = [1, 1, 16], strides = [1, 1, 1]} : vector<3x3x16xf32> to vector<1x1x16xf32>
    %38 = vector.shape_cast %37 : vector<1x1x16xf32> to vector<16xf32>
    %39 = vector.shape_cast %38 : vector<16xf32> to vector<1x1x16xf32>
    %40 = vector.broadcast %39 : vector<1x1x16xf32> to vector<4x16x16xf32>
    %41 = arith.mulf %36, %40 : vector<4x16x16xf32>
    %42 = arith.addf %33, %41 : vector<4x16x16xf32>
    %c1_i32_12 = arith.constant 1 : i32
    %43 = arith.addi %5, %c1_i32_12 : i32
    %44 = arith.index_cast %43 : i32 to index
    %c1_13 = arith.constant 1 : index
    %c0_14 = arith.constant 0 : index
    %45 = vector.load %arg13[%44, %c1_13, %c0_14] : memref<18x18x16xf32, #tpu.memory_space<vmem>>, vector<4x16x16xf32>
    %46 = vector.extract_strided_slice %3 {offsets = [1, 1, 0], sizes = [1, 1, 16], strides = [1, 1, 1]} : vector<3x3x16xf32> to vector<1x1x16xf32>
    %47 = vector.shape_cast %46 : vector<1x1x16xf32> to vector<16xf32>
    %48 = vector.shape_cast %47 : vector<16xf32> to vector<1x1x16xf32>
    %49 = vector.broadcast %48 : vector<1x1x16xf32> to vector<4x16x16xf32>
    %50 = arith.mulf %45, %49 : vector<4x16x16xf32>
    %51 = arith.addf %42, %50 : vector<4x16x16xf32>
    %c1_i32_15 = arith.constant 1 : i32
    %52 = arith.addi %5, %c1_i32_15 : i32
    %53 = arith.index_cast %52 : i32 to index
    %c2_16 = arith.constant 2 : index
    %c0_17 = arith.constant 0 : index
    %54 = vector.load %arg13[%53, %c2_16, %c0_17] : memref<18x18x16xf32, #tpu.memory_space<vmem>>, vector<4x16x16xf32>
    %55 = vector.extract_strided_slice %3 {offsets = [1, 2, 0], sizes = [1, 1, 16], strides = [1, 1, 1]} : vector<3x3x16xf32> to vector<1x1x16xf32>
    %56 = vector.shape_cast %55 : vector<1x1x16xf32> to vector<16xf32>
    %57 = vector.shape_cast %56 : vector<16xf32> to vector<1x1x16xf32>
    %58 = vector.broadcast %57 : vector<1x1x16xf32> to vector<4x16x16xf32>
    %59 = arith.mulf %54, %58 : vector<4x16x16xf32>
    %60 = arith.addf %51, %59 : vector<4x16x16xf32>
    %c2_i32 = arith.constant 2 : i32
    %61 = arith.addi %5, %c2_i32 : i32
    %62 = arith.index_cast %61 : i32 to index
    %c0_18 = arith.constant 0 : index
    %c0_19 = arith.constant 0 : index
    %63 = vector.load %arg13[%62, %c0_18, %c0_19] : memref<18x18x16xf32, #tpu.memory_space<vmem>>, vector<4x16x16xf32>
    %64 = vector.extract_strided_slice %3 {offsets = [2, 0, 0], sizes = [1, 1, 16], strides = [1, 1, 1]} : vector<3x3x16xf32> to vector<1x1x16xf32>
    %65 = vector.shape_cast %64 : vector<1x1x16xf32> to vector<16xf32>
    %66 = vector.shape_cast %65 : vector<16xf32> to vector<1x1x16xf32>
    %67 = vector.broadcast %66 : vector<1x1x16xf32> to vector<4x16x16xf32>
    %68 = arith.mulf %63, %67 : vector<4x16x16xf32>
    %69 = arith.addf %60, %68 : vector<4x16x16xf32>
    %c2_i32_20 = arith.constant 2 : i32
    %70 = arith.addi %5, %c2_i32_20 : i32
    %71 = arith.index_cast %70 : i32 to index
    %c1_21 = arith.constant 1 : index
    %c0_22 = arith.constant 0 : index
    %72 = vector.load %arg13[%71, %c1_21, %c0_22] : memref<18x18x16xf32, #tpu.memory_space<vmem>>, vector<4x16x16xf32>
    %73 = vector.extract_strided_slice %3 {offsets = [2, 1, 0], sizes = [1, 1, 16], strides = [1, 1, 1]} : vector<3x3x16xf32> to vector<1x1x16xf32>
    %74 = vector.shape_cast %73 : vector<1x1x16xf32> to vector<16xf32>
    %75 = vector.shape_cast %74 : vector<16xf32> to vector<1x1x16xf32>
    %76 = vector.broadcast %75 : vector<1x1x16xf32> to vector<4x16x16xf32>
    %77 = arith.mulf %72, %76 : vector<4x16x16xf32>
    %78 = arith.addf %69, %77 : vector<4x16x16xf32>
    %c2_i32_23 = arith.constant 2 : i32
    %79 = arith.addi %5, %c2_i32_23 : i32
    %80 = arith.index_cast %79 : i32 to index
    %c2_24 = arith.constant 2 : index
    %c0_25 = arith.constant 0 : index
    %81 = vector.load %arg13[%80, %c2_24, %c0_25] : memref<18x18x16xf32, #tpu.memory_space<vmem>>, vector<4x16x16xf32>
    %82 = vector.extract_strided_slice %3 {offsets = [2, 2, 0], sizes = [1, 1, 16], strides = [1, 1, 1]} : vector<3x3x16xf32> to vector<1x1x16xf32>
    %83 = vector.shape_cast %82 : vector<1x1x16xf32> to vector<16xf32>
    %84 = vector.shape_cast %83 : vector<16xf32> to vector<1x1x16xf32>
    %85 = vector.broadcast %84 : vector<1x1x16xf32> to vector<4x16x16xf32>
    %86 = arith.mulf %81, %85 : vector<4x16x16xf32>
    %87 = arith.addf %78, %86 : vector<4x16x16xf32>
    %c0_26 = arith.constant 0 : index
    %c0_27 = arith.constant 0 : index
    %c0_28 = arith.constant 0 : index
    %88 = vector.load %arg7[%c0_26, %c0_27, %c0_28] : memref<1x1x16xf32, #tpu.memory_space<vmem>>, vector<1x1x16xf32>
    %89 = vector.broadcast %88 : vector<1x1x16xf32> to vector<4x16x16xf32>
    %90 = arith.mulf %87, %89 : vector<4x16x16xf32>
    %c0_29 = arith.constant 0 : index
    %c0_30 = arith.constant 0 : index
    %c0_31 = arith.constant 0 : index
    %91 = vector.load %arg8[%c0_29, %c0_30, %c0_31] : memref<1x1x16xf32, #tpu.memory_space<vmem>>, vector<1x1x16xf32>
    %92 = vector.broadcast %91 : vector<1x1x16xf32> to vector<4x16x16xf32>
    %93 = arith.addf %90, %92 : vector<4x16x16xf32>
    %cst_32 = arith.constant 0.000000e+00 : f32
    %cst_33 = arith.constant 6.000000e+00 : f32
    %94 = vector.broadcast %cst_32 : f32 to vector<4x16x16xf32>
    %95 = arith.maximumf %94, %93 : vector<4x16x16xf32>
    %96 = vector.broadcast %cst_33 : f32 to vector<4x16x16xf32>
    %97 = arith.minimumf %96, %95 : vector<4x16x16xf32>
    %c0_34 = arith.constant 0 : index
    %c0_35 = arith.constant 0 : index
    %98 = vector.load %arg9[%c0_34, %c0_35] : memref<16x4xf32, #tpu.memory_space<vmem>>, vector<16x4xf32>
    %cst_36 = arith.constant 0.000000e+00 : f32
    %99 = vector.broadcast %cst_36 : f32 to vector<4x16x4xf32>
    %100 = vector.extract_strided_slice %97 {offsets = [0, 0, 0], sizes = [4, 16, 1], strides = [1, 1, 1]} : vector<4x16x16xf32> to vector<4x16x1xf32>
    %101 = vector.extract_strided_slice %98 {offsets = [0, 0], sizes = [1, 4], strides = [1, 1]} : vector<16x4xf32> to vector<1x4xf32>
    %102 = vector.shape_cast %101 : vector<1x4xf32> to vector<4xf32>
    %103 = vector.shape_cast %102 : vector<4xf32> to vector<1x1x4xf32>
    %104 = vector.broadcast %100 : vector<4x16x1xf32> to vector<4x16x4xf32>
    %105 = vector.broadcast %103 : vector<1x1x4xf32> to vector<4x16x4xf32>
    %106 = arith.mulf %104, %105 : vector<4x16x4xf32>
    %107 = arith.addf %99, %106 : vector<4x16x4xf32>
    %108 = vector.extract_strided_slice %97 {offsets = [0, 0, 1], sizes = [4, 16, 1], strides = [1, 1, 1]} : vector<4x16x16xf32> to vector<4x16x1xf32>
    %109 = vector.extract_strided_slice %98 {offsets = [1, 0], sizes = [1, 4], strides = [1, 1]} : vector<16x4xf32> to vector<1x4xf32>
    %110 = vector.shape_cast %109 : vector<1x4xf32> to vector<4xf32>
    %111 = vector.shape_cast %110 : vector<4xf32> to vector<1x1x4xf32>
    %112 = vector.broadcast %108 : vector<4x16x1xf32> to vector<4x16x4xf32>
    %113 = vector.broadcast %111 : vector<1x1x4xf32> to vector<4x16x4xf32>
    %114 = arith.mulf %112, %113 : vector<4x16x4xf32>
    %115 = arith.addf %107, %114 : vector<4x16x4xf32>
    %116 = vector.extract_strided_slice %97 {offsets = [0, 0, 2], sizes = [4, 16, 1], strides = [1, 1, 1]} : vector<4x16x16xf32> to vector<4x16x1xf32>
    %117 = vector.extract_strided_slice %98 {offsets = [2, 0], sizes = [1, 4], strides = [1, 1]} : vector<16x4xf32> to vector<1x4xf32>
    %118 = vector.shape_cast %117 : vector<1x4xf32> to vector<4xf32>
    %119 = vector.shape_cast %118 : vector<4xf32> to vector<1x1x4xf32>
    %120 = vector.broadcast %116 : vector<4x16x1xf32> to vector<4x16x4xf32>
    %121 = vector.broadcast %119 : vector<1x1x4xf32> to vector<4x16x4xf32>
    %122 = arith.mulf %120, %121 : vector<4x16x4xf32>
    %123 = arith.addf %115, %122 : vector<4x16x4xf32>
    %124 = vector.extract_strided_slice %97 {offsets = [0, 0, 3], sizes = [4, 16, 1], strides = [1, 1, 1]} : vector<4x16x16xf32> to vector<4x16x1xf32>
    %125 = vector.extract_strided_slice %98 {offsets = [3, 0], sizes = [1, 4], strides = [1, 1]} : vector<16x4xf32> to vector<1x4xf32>
    %126 = vector.shape_cast %125 : vector<1x4xf32> to vector<4xf32>
    %127 = vector.shape_cast %126 : vector<4xf32> to vector<1x1x4xf32>
    %128 = vector.broadcast %124 : vector<4x16x1xf32> to vector<4x16x4xf32>
    %129 = vector.broadcast %127 : vector<1x1x4xf32> to vector<4x16x4xf32>
    %130 = arith.mulf %128, %129 : vector<4x16x4xf32>
    %131 = arith.addf %123, %130 : vector<4x16x4xf32>
    %132 = vector.extract_strided_slice %97 {offsets = [0, 0, 4], sizes = [4, 16, 1], strides = [1, 1, 1]} : vector<4x16x16xf32> to vector<4x16x1xf32>
    %133 = vector.extract_strided_slice %98 {offsets = [4, 0], sizes = [1, 4], strides = [1, 1]} : vector<16x4xf32> to vector<1x4xf32>
    %134 = vector.shape_cast %133 : vector<1x4xf32> to vector<4xf32>
    %135 = vector.shape_cast %134 : vector<4xf32> to vector<1x1x4xf32>
    %136 = vector.broadcast %132 : vector<4x16x1xf32> to vector<4x16x4xf32>
    %137 = vector.broadcast %135 : vector<1x1x4xf32> to vector<4x16x4xf32>
    %138 = arith.mulf %136, %137 : vector<4x16x4xf32>
    %139 = arith.addf %131, %138 : vector<4x16x4xf32>
    %140 = vector.extract_strided_slice %97 {offsets = [0, 0, 5], sizes = [4, 16, 1], strides = [1, 1, 1]} : vector<4x16x16xf32> to vector<4x16x1xf32>
    %141 = vector.extract_strided_slice %98 {offsets = [5, 0], sizes = [1, 4], strides = [1, 1]} : vector<16x4xf32> to vector<1x4xf32>
    %142 = vector.shape_cast %141 : vector<1x4xf32> to vector<4xf32>
    %143 = vector.shape_cast %142 : vector<4xf32> to vector<1x1x4xf32>
    %144 = vector.broadcast %140 : vector<4x16x1xf32> to vector<4x16x4xf32>
    %145 = vector.broadcast %143 : vector<1x1x4xf32> to vector<4x16x4xf32>
    %146 = arith.mulf %144, %145 : vector<4x16x4xf32>
    %147 = arith.addf %139, %146 : vector<4x16x4xf32>
    %148 = vector.extract_strided_slice %97 {offsets = [0, 0, 6], sizes = [4, 16, 1], strides = [1, 1, 1]} : vector<4x16x16xf32> to vector<4x16x1xf32>
    %149 = vector.extract_strided_slice %98 {offsets = [6, 0], sizes = [1, 4], strides = [1, 1]} : vector<16x4xf32> to vector<1x4xf32>
    %150 = vector.shape_cast %149 : vector<1x4xf32> to vector<4xf32>
    %151 = vector.shape_cast %150 : vector<4xf32> to vector<1x1x4xf32>
    %152 = vector.broadcast %148 : vector<4x16x1xf32> to vector<4x16x4xf32>
    %153 = vector.broadcast %151 : vector<1x1x4xf32> to vector<4x16x4xf32>
    %154 = arith.mulf %152, %153 : vector<4x16x4xf32>
    %155 = arith.addf %147, %154 : vector<4x16x4xf32>
    %156 = vector.extract_strided_slice %97 {offsets = [0, 0, 7], sizes = [4, 16, 1], strides = [1, 1, 1]} : vector<4x16x16xf32> to vector<4x16x1xf32>
    %157 = vector.extract_strided_slice %98 {offsets = [7, 0], sizes = [1, 4], strides = [1, 1]} : vector<16x4xf32> to vector<1x4xf32>
    %158 = vector.shape_cast %157 : vector<1x4xf32> to vector<4xf32>
    %159 = vector.shape_cast %158 : vector<4xf32> to vector<1x1x4xf32>
    %160 = vector.broadcast %156 : vector<4x16x1xf32> to vector<4x16x4xf32>
    %161 = vector.broadcast %159 : vector<1x1x4xf32> to vector<4x16x4xf32>
    %162 = arith.mulf %160, %161 : vector<4x16x4xf32>
    %163 = arith.addf %155, %162 : vector<4x16x4xf32>
    %164 = vector.extract_strided_slice %97 {offsets = [0, 0, 8], sizes = [4, 16, 1], strides = [1, 1, 1]} : vector<4x16x16xf32> to vector<4x16x1xf32>
    %165 = vector.extract_strided_slice %98 {offsets = [8, 0], sizes = [1, 4], strides = [1, 1]} : vector<16x4xf32> to vector<1x4xf32>
    %166 = vector.shape_cast %165 : vector<1x4xf32> to vector<4xf32>
    %167 = vector.shape_cast %166 : vector<4xf32> to vector<1x1x4xf32>
    %168 = vector.broadcast %164 : vector<4x16x1xf32> to vector<4x16x4xf32>
    %169 = vector.broadcast %167 : vector<1x1x4xf32> to vector<4x16x4xf32>
    %170 = arith.mulf %168, %169 : vector<4x16x4xf32>
    %171 = arith.addf %163, %170 : vector<4x16x4xf32>
    %172 = vector.extract_strided_slice %97 {offsets = [0, 0, 9], sizes = [4, 16, 1], strides = [1, 1, 1]} : vector<4x16x16xf32> to vector<4x16x1xf32>
    %173 = vector.extract_strided_slice %98 {offsets = [9, 0], sizes = [1, 4], strides = [1, 1]} : vector<16x4xf32> to vector<1x4xf32>
    %174 = vector.shape_cast %173 : vector<1x4xf32> to vector<4xf32>
    %175 = vector.shape_cast %174 : vector<4xf32> to vector<1x1x4xf32>
    %176 = vector.broadcast %172 : vector<4x16x1xf32> to vector<4x16x4xf32>
    %177 = vector.broadcast %175 : vector<1x1x4xf32> to vector<4x16x4xf32>
    %178 = arith.mulf %176, %177 : vector<4x16x4xf32>
    %179 = arith.addf %171, %178 : vector<4x16x4xf32>
    %180 = vector.extract_strided_slice %97 {offsets = [0, 0, 10], sizes = [4, 16, 1], strides = [1, 1, 1]} : vector<4x16x16xf32> to vector<4x16x1xf32>
    %181 = vector.extract_strided_slice %98 {offsets = [10, 0], sizes = [1, 4], strides = [1, 1]} : vector<16x4xf32> to vector<1x4xf32>
    %182 = vector.shape_cast %181 : vector<1x4xf32> to vector<4xf32>
    %183 = vector.shape_cast %182 : vector<4xf32> to vector<1x1x4xf32>
    %184 = vector.broadcast %180 : vector<4x16x1xf32> to vector<4x16x4xf32>
    %185 = vector.broadcast %183 : vector<1x1x4xf32> to vector<4x16x4xf32>
    %186 = arith.mulf %184, %185 : vector<4x16x4xf32>
    %187 = arith.addf %179, %186 : vector<4x16x4xf32>
    %188 = vector.extract_strided_slice %97 {offsets = [0, 0, 11], sizes = [4, 16, 1], strides = [1, 1, 1]} : vector<4x16x16xf32> to vector<4x16x1xf32>
    %189 = vector.extract_strided_slice %98 {offsets = [11, 0], sizes = [1, 4], strides = [1, 1]} : vector<16x4xf32> to vector<1x4xf32>
    %190 = vector.shape_cast %189 : vector<1x4xf32> to vector<4xf32>
    %191 = vector.shape_cast %190 : vector<4xf32> to vector<1x1x4xf32>
    %192 = vector.broadcast %188 : vector<4x16x1xf32> to vector<4x16x4xf32>
    %193 = vector.broadcast %191 : vector<1x1x4xf32> to vector<4x16x4xf32>
    %194 = arith.mulf %192, %193 : vector<4x16x4xf32>
    %195 = arith.addf %187, %194 : vector<4x16x4xf32>
    %196 = vector.extract_strided_slice %97 {offsets = [0, 0, 12], sizes = [4, 16, 1], strides = [1, 1, 1]} : vector<4x16x16xf32> to vector<4x16x1xf32>
    %197 = vector.extract_strided_slice %98 {offsets = [12, 0], sizes = [1, 4], strides = [1, 1]} : vector<16x4xf32> to vector<1x4xf32>
    %198 = vector.shape_cast %197 : vector<1x4xf32> to vector<4xf32>
    %199 = vector.shape_cast %198 : vector<4xf32> to vector<1x1x4xf32>
    %200 = vector.broadcast %196 : vector<4x16x1xf32> to vector<4x16x4xf32>
    %201 = vector.broadcast %199 : vector<1x1x4xf32> to vector<4x16x4xf32>
    %202 = arith.mulf %200, %201 : vector<4x16x4xf32>
    %203 = arith.addf %195, %202 : vector<4x16x4xf32>
    %204 = vector.extract_strided_slice %97 {offsets = [0, 0, 13], sizes = [4, 16, 1], strides = [1, 1, 1]} : vector<4x16x16xf32> to vector<4x16x1xf32>
    %205 = vector.extract_strided_slice %98 {offsets = [13, 0], sizes = [1, 4], strides = [1, 1]} : vector<16x4xf32> to vector<1x4xf32>
    %206 = vector.shape_cast %205 : vector<1x4xf32> to vector<4xf32>
    %207 = vector.shape_cast %206 : vector<4xf32> to vector<1x1x4xf32>
    %208 = vector.broadcast %204 : vector<4x16x1xf32> to vector<4x16x4xf32>
    %209 = vector.broadcast %207 : vector<1x1x4xf32> to vector<4x16x4xf32>
    %210 = arith.mulf %208, %209 : vector<4x16x4xf32>
    %211 = arith.addf %203, %210 : vector<4x16x4xf32>
    %212 = vector.extract_strided_slice %97 {offsets = [0, 0, 14], sizes = [4, 16, 1], strides = [1, 1, 1]} : vector<4x16x16xf32> to vector<4x16x1xf32>
    %213 = vector.extract_strided_slice %98 {offsets = [14, 0], sizes = [1, 4], strides = [1, 1]} : vector<16x4xf32> to vector<1x4xf32>
    %214 = vector.shape_cast %213 : vector<1x4xf32> to vector<4xf32>
    %215 = vector.shape_cast %214 : vector<4xf32> to vector<1x1x4xf32>
    %216 = vector.broadcast %212 : vector<4x16x1xf32> to vector<4x16x4xf32>
    %217 = vector.broadcast %215 : vector<1x1x4xf32> to vector<4x16x4xf32>
    %218 = arith.mulf %216, %217 : vector<4x16x4xf32>
    %219 = arith.addf %211, %218 : vector<4x16x4xf32>
    %220 = vector.extract_strided_slice %97 {offsets = [0, 0, 15], sizes = [4, 16, 1], strides = [1, 1, 1]} : vector<4x16x16xf32> to vector<4x16x1xf32>
    %221 = vector.extract_strided_slice %98 {offsets = [15, 0], sizes = [1, 4], strides = [1, 1]} : vector<16x4xf32> to vector<1x4xf32>
    %222 = vector.shape_cast %221 : vector<1x4xf32> to vector<4xf32>
    %223 = vector.shape_cast %222 : vector<4xf32> to vector<1x1x4xf32>
    %224 = vector.broadcast %220 : vector<4x16x1xf32> to vector<4x16x4xf32>
    %225 = vector.broadcast %223 : vector<1x1x4xf32> to vector<4x16x4xf32>
    %226 = arith.mulf %224, %225 : vector<4x16x4xf32>
    %227 = arith.addf %219, %226 : vector<4x16x4xf32>
    %c0_37 = arith.constant 0 : index
    %c0_38 = arith.constant 0 : index
    %c0_39 = arith.constant 0 : index
    %228 = vector.load %arg10[%c0_37, %c0_38, %c0_39] : memref<1x1x4xf32, #tpu.memory_space<vmem>>, vector<1x1x4xf32>
    %229 = vector.broadcast %228 : vector<1x1x4xf32> to vector<4x16x4xf32>
    %230 = arith.mulf %227, %229 : vector<4x16x4xf32>
    %c0_40 = arith.constant 0 : index
    %c0_41 = arith.constant 0 : index
    %c0_42 = arith.constant 0 : index
    %231 = vector.load %arg11[%c0_40, %c0_41, %c0_42] : memref<1x1x4xf32, #tpu.memory_space<vmem>>, vector<1x1x4xf32>
    %232 = vector.broadcast %231 : vector<1x1x4xf32> to vector<4x16x4xf32>
    %233 = arith.addf %230, %232 : vector<4x16x4xf32>
    %c4_i32_43 = arith.constant 4 : i32
    %234 = arith.muli %arg1, %c4_i32_43 : i32
    %c0_44 = arith.constant 0 : index
    %235 = arith.index_cast %234 : i32 to index
    %c0_45 = arith.constant 0 : index
    %c0_46 = arith.constant 0 : index
    %236 = vector.load %arg2[%c0_44, %235, %c0_45, %c0_46] : memref<1x16x16x4xf32, #tpu.memory_space<vmem>>, vector<1x4x16x4xf32>
    %237 = vector.shape_cast %236 : vector<1x4x16x4xf32> to vector<4x16x4xf32>
    %238 = arith.addf %233, %237 : vector<4x16x4xf32>
    %c0_47 = arith.constant 0 : index
    %c0_48 = arith.constant 0 : index
    %c0_49 = arith.constant 0 : index
    %c0_50 = arith.constant 0 : index
    %239 = vector.load %arg12[%c0_47, %c0_48, %c0_49, %c0_50] : memref<1x4x16x4xf32, #tpu.memory_space<vmem>>, vector<1x4x16x4xf32>
    %240 = vector.shape_cast %239 : vector<1x4x16x4xf32> to vector<4x16x4xf32>
    %241 = vector.shape_cast %238 : vector<4x16x4xf32> to vector<1x4x16x4xf32>
    tpu.vector_store %arg12[%c0_47, %c0_48, %c0_49, %c0_50], %241 {strides = array<i32>} : memref<1x4x16x4xf32, #tpu.memory_space<vmem>>, vector<1x4x16x4xf32>,
    return
  }
  func.func @transform_0(%arg0: i32, %arg1: i32) -> (i32, i32, i32, i32) {
    %c0_i32 = arith.constant 0 : i32
    %c0_i32_0 = arith.constant 0 : i32
    %c0_i32_1 = arith.constant 0 : i32
    %c0_i32_2 = arith.constant 0 : i32
    return %arg0, %c0_i32, %c0_i32_0, %c0_i32_1 : i32, i32, i32, i32
  }
  func.func @transform_1(%arg0: i32, %arg1: i32) -> (i32, i32) {
    %c0_i32 = arith.constant 0 : i32
    %c0_i32_0 = arith.constant 0 : i32
    %c0_i32_1 = arith.constant 0 : i32
    return %c0_i32, %c0_i32_0 : i32, i32
  }
  func.func @transform_2(%arg0: i32, %arg1: i32) -> (i32, i32, i32) {
    %c0_i32 = arith.constant 0 : i32
    %c0_i32_0 = arith.constant 0 : i32
    %c0_i32_1 = arith.constant 0 : i32
    %c0_i32_2 = arith.constant 0 : i32
    return %c0_i32, %c0_i32_0, %c0_i32_1 : i32, i32, i32
  }
  func.func @transform_3(%arg0: i32, %arg1: i32) -> (i32, i32, i32) {
    %c0_i32 = arith.constant 0 : i32
    %c0_i32_0 = arith.constant 0 : i32
    %c0_i32_1 = arith.constant 0 : i32
    %c0_i32_2 = arith.constant 0 : i32
    return %c0_i32, %c0_i32_0, %c0_i32_1 : i32, i32, i32
  }
  func.func @transform_4(%arg0: i32, %arg1: i32) -> (i32, i32, i32) {
    %c0_i32 = arith.constant 0 : i32
    %c0_i32_0 = arith.constant 0 : i32
    %c0_i32_1 = arith.constant 0 : i32
    %c0_i32_2 = arith.constant 0 : i32
    return %c0_i32, %c0_i32_0, %c0_i32_1 : i32, i32, i32
  }
  func.func @transform_5(%arg0: i32, %arg1: i32) -> (i32, i32, i32) {
    %c0_i32 = arith.constant 0 : i32
    %c0_i32_0 = arith.constant 0 : i32
    %c0_i32_1 = arith.constant 0 : i32
    %c0_i32_2 = arith.constant 0 : i32
    return %c0_i32, %c0_i32_0, %c0_i32_1 : i32, i32, i32
  }
  func.func @transform_6(%arg0: i32, %arg1: i32) -> (i32, i32, i32) {
    %c0_i32 = arith.constant 0 : i32
    %c0_i32_0 = arith.constant 0 : i32
    %c0_i32_1 = arith.constant 0 : i32
    %c0_i32_2 = arith.constant 0 : i32
    return %c0_i32, %c0_i32_0, %c0_i32_1 : i32, i32, i32
  }
  func.func @transform_7(%arg0: i32, %arg1: i32) -> (i32, i32) {
    %c0_i32 = arith.constant 0 : i32
    %c0_i32_0 = arith.constant 0 : i32
    %c0_i32_1 = arith.constant 0 : i32
    return %c0_i32, %c0_i32_0 : i32, i32
  }
  func.func @transform_8(%arg0: i32, %arg1: i32) -> (i32, i32, i32) {
    %c0_i32 = arith.constant 0 : i32
    %c0_i32_0 = arith.constant 0 : i32
    %c0_i32_1 = arith.constant 0 : i32
    %c0_i32_2 = arith.constant 0 : i32
    return %c0_i32, %c0_i32_0, %c0_i32_1 : i32, i32, i32
  }
  func.func @transform_9(%arg0: i32, %arg1: i32) -> (i32, i32, i32) {
    %c0_i32 = arith.constant 0 : i32
    %c0_i32_0 = arith.constant 0 : i32
    %c0_i32_1 = arith.constant 0 : i32
    %c0_i32_2 = arith.constant 0 : i32
    return %c0_i32, %c0_i32_0, %c0_i32_1 : i32, i32, i32
  }
  func.func @transform_10(%arg0: i32, %arg1: i32) -> (i32, i32, i32, i32) {
    %c0_i32 = arith.constant 0 : i32
    %c0_i32_0 = arith.constant 0 : i32
    %c0_i32_1 = arith.constant 0 : i32
    return %arg0, %arg1, %c0_i32, %c0_i32_0 : i32, i32, i32, i32
  }
}

</mosaic_0001>

<bundles_post_ra>
// kernel: tpu_custom_call.1
= control target key start
LH: loop header
LB: loop body
LE: loop exit
PB: predicated region body
PF: predicated region fallthrough
CT: control target
= control target key end

     0   :  { %s3074_s13 = smov 0   ;;  %s3076_s14 = smov 0   ;;  %s4804_s0 = inlined_call_operand.vmem [shape: f32[2,16,16,4], index: 0, kind: input, shape index: {}]   ;;  %s4805_s1 = inlined_call_operand.vmem [shape: f32[4,16], index: 1, kind: input, shape index: {}]   ;;  %s4806_s2 = inlined_call_operand.vmem [shape: f32[1,1,16], index: 2, kind: input, shape index: {}]   ;;  %s4807_s3 = inlined_call_operand.vmem [shape: f32[1,1,16], index: 3, kind: input, shape index: {}]   ;;  %s4808_s4 = inlined_call_operand.vmem [shape: f32[3,3,16], index: 4, kind: input, shape index: {}]   ;;  %s4809_s5 = inlined_call_operand.vmem [shape: f32[1,1,16], index: 5, kind: input, shape index: {}]   ;;  %s4810_s6 = inlined_call_operand.vmem [shape: f32[1,1,16], index: 6, kind: input, shape index: {}]   ;;  %s4811_s7 = inlined_call_operand.vmem [shape: f32[16,4], index: 7, kind: input, shape index: {}]   ;;  %s4812_s8 = inlined_call_operand.vmem [shape: f32[1,1,4], index: 8, kind: input, shape index: {}]   ;;  %s4813_s9 = inlined_call_operand.vmem [shape: f32[1,1,4], index: 9, kind: input, shape index: {}]   ;;  %s4814_s10 = inlined_call_operand.vmem [shape: f32[2,16,16,4], index: 10, kind: output, shape index: {}]  }
   0x1   :  { %s3078_s15 = smov 0   ;;  %s3080_s16 = smov 0  }
   0x2   :  { %s3082_s17 = smov 0  }
   0x3 LB: > { %s29_s18 = sadd.s32 1, %s2988_s15  ;;  %s32_s19 = sadd.s32 1, %s2992_s16  ;;  %s2996_s17 = sphi %s3082_s17, %s20_s17   ;;  %s2992_s16 = sphi %s3080_s16, %s4863_s16   ;;  %s2988_s15 = sphi %s3078_s15, %s4862_s15   ;;  %s2984_s14 = sphi %s3076_s14, %s4861_s14   ;;  %s2980_s13 = sphi %s3074_s13, %s4860_s13  }
   0x4   : > { %p30_p0 = scmp.ge.s32.totalorder %s29_s18, 4  ;;  %p2784_p1 = scmp.ge.s32.totalorder %s2996_s17, 1 }
   0x5   : > { %p326_p2 = scmp.lt.s32.totalorder %s2996_s17, 9 }
   0x6   : > { %s4865_s18 = smov (%p30_p0, %s29_s18), 0  ;;  %s4867_s19 = smov (!%p30_p0, %s32_s19), %s2992_s16 }
   0x7   : > { %p327_p3 = pnand %p2784_p1, %p326_p2  ;;  %p34_p4 = scmp.ge.s32.totalorder %s4867_s19, 2 }
   0x8   : > { %p369_p5 = scmp.lt.s32.totalorder (!%p327_p3), %s2984_s14, 1  ;;  %s2787_s20 = sshll.u32 (!%p327_p3), %s2980_s13, 2 }
   0x9   : > { %s4869_s19 = smov (%p34_p4, %s4867_s19), 0  ;;  %330 = sbr.rel (%p327_p3) target bundleno = 910 (0x38e), region = 60 }
   0xa   : > { %p377_p6 = scmp.lt.s32.totalorder (!%p327_p3), %s2787_s20, 15  ;;  %p2791_p7 = scmp.ne.s32.totalorder (!%p327_p3), %s2980_s13, 0 }
  0x10   : > { %s4871_s14 = smov (!%p369_p5, %s2984_s14), 1  ;;  %s4873_s20 = smov (!%p377_p6, %s2787_s20), 15 }
  0x11   : > { %s2855_s21 = sshll.u32 %s4871_s14, 8  ;;  %s2789_s22 = sshll.u32 %s4871_s14, 5 }
  0x12   : > { %s3110_s25 = scalar_lea.vmem %s4804_s0, %s2855_s21  ;;  %s2788_s26 = sshll.u32 %s4873_s20, 1 }
  0x13   : > { %s381_s27 = sadd.s32 %s2789_s22, %s2788_s26  ;;  %388 = sbr.rel (%p2791_p7) target bundleno = 428 (0x1ac), region = 64 }
  0x14   : > { %s2790_s28 = sshll.u32 %s381_s27, 3 }
  0x15   : > { %s3115_s11 = scalar_lea.vmem %s4814_s10, %s2790_s28 }
  0x1a   : > { %v3119_v0 = vld [vmem:[%s3110_s25 + $0x10] sm:$0xff]  ;;  %v3122_v1 = vld [vmem:[%s3110_s25] sm:$0xff]  ;;  %v2998_v2 = vmov 0   ;;  %v3127_v3 = vld [vmem:[%s3110_s25 + $0x18] sm:$0xff]  ;;  %v2999_v33 = vmov 1   ;;  %v3000_v36 = vmov 2   ;;  %v638_v57 = vlaneseq }
  0x1b   : > { %2919 = vset.pattern.permute.xlu1 %v2998_v2  ;;  %2918 = vset.pattern.permute.xlu0 %v2998_v2  ;;  %v3130_v4 = vld [vmem:[%s3110_s25 + $0x8] sm:$0xff]  ;;  %v3138_v6 = vld [vmem:[%s3110_s25 + $0x20] sm:$0xff]  ;;  %v3143_v7 = vld [vmem:[%s3110_s25 + $0x38] sm:$0xff]  ;;  %vm389_vm0 = vcmask 130048   ;;  %vm392_vm1 = vcmask 123904  }
  0x1c   : > { %490 = vperm.xlu1 %2919, %v3119_v0   ;;  %480 = vperm.xlu0 %2918, %v3122_v1   ;;  %v3135_v5 = vld [vmem:[%s3110_s25 + $0x28] sm:$0xff]  ;;  %v3146_v8 = vld [vmem:[%s3110_s25 + $0x30] sm:$0xff]  ;;  %v3154_v10 = vld [vmem:[%s3110_s25 + $0x40] sm:$0xff]  ;;  %v3348_v60 = vshrl.u32 %v638_v57, 7 }
  0x1d   : > { %v3151_v9 = vld [vmem:[%s3110_s25 + $0x48] sm:$0xff]  ;;  %v3159_v11 = vld [vmem:[%s3110_s25 + $0x58] sm:$0xff]  ;;  %v3162_v12 = vld [vmem:[%s3110_s25 + $0x50] sm:$0xff] }
  0x1e   : > { %v3167_v13 = vld [vmem:[%s3110_s25 + $0x68] sm:$0xff]  ;;  %v3170_v14 = vld [vmem:[%s3110_s25 + $0x60] sm:$0xff]  ;;  %v3175_v15 = vld [vmem:[%s3110_s25 + $0x78] sm:$0xff]  ;;  %v640_v63 = vsub.s32 0, %v3348_v60 }
  0x1f   : > { %v3178_v16 = vld [vmem:[%s3110_s25 + $0x70] sm:$0xff]  ;;  %v3183_v17 = vld [vmem:[%s3110_s25 + $0x88] sm:$0xff]  ;;  %v3186_v18 = vld [vmem:[%s3110_s25 + $0x80] sm:$0xff] }
  0x20   : > { %495 = vperm.xlu1 %2919, %v3127_v3   ;;  %485 = vperm.xlu0 %2918, %v3130_v4   ;;  %v3191_v19 = vld [vmem:[%s3110_s25 + $0x98] sm:$0xff]  ;;  %v3194_v20 = vld [vmem:[%s3110_s25 + $0x90] sm:$0xff]  ;;  %v3199_v21 = vld [vmem:[%s3110_s25 + $0xa8] sm:$0xff] }
  0x21   : > { %v3202_v22 = vld [vmem:[%s3110_s25 + $0xa0] sm:$0xff]  ;;  %v3207_v23 = vld [vmem:[%s3110_s25 + $0xb8] sm:$0xff]  ;;  %v3210_v24 = vld [vmem:[%s3110_s25 + $0xb0] sm:$0xff] }
  0x22   : > { %v3215_v25 = vld [vmem:[%s3110_s25 + $0xc8] sm:$0xff]  ;;  %v3218_v26 = vld [vmem:[%s3110_s25 + $0xc0] sm:$0xff]  ;;  %v3223_v27 = vld [vmem:[%s3110_s25 + $0xd8] sm:$0xff] }
  0x23   : > { %v3226_v28 = vld [vmem:[%s3110_s25 + $0xd0] sm:$0xff]  ;;  %v3231_v29 = vld [vmem:[%s3110_s25 + $0xe8] sm:$0xff]  ;;  %v3234_v30 = vld [vmem:[%s3110_s25 + $0xe0] sm:$0xff] }
  0x24   : > { %505 = vperm.xlu1 %2919, %v3135_v5   ;;  %500 = vperm.xlu0 %2918, %v3138_v6   ;;  %v3239_v31 = vld [vmem:[%s3110_s25 + $0xf8] sm:$0xff]  ;;  %v3242_v32 = vld [vmem:[%s3110_s25 + $0xf0] sm:$0xff]  ;;  %v3362_v2 = vld [vmem:[%s4805_s1] sm:$0xf] }
  0x25   : > { %v3369_v57 = vrot.slane %v3362_v2, %v640_v63 }
  0x28   : > { %515 = vperm.xlu1 %2919, %v3143_v7   ;;  %510 = vperm.xlu0 %2918, %v3146_v8  }
  0x2c   : > { %525 = vperm.xlu1 %2919, %v3151_v9   ;;  %520 = vperm.xlu0 %2918, %v3154_v10  }
  0x30   : > { %535 = vperm.xlu1 %2919, %v3159_v11   ;;  %530 = vperm.xlu0 %2918, %v3162_v12  }
  0x34   : > { %545 = vperm.xlu1 %2919, %v3167_v13   ;;  %540 = vperm.xlu0 %2918, %v3170_v14  }
  0x38   : > { %555 = vperm.xlu1 %2919, %v3175_v15   ;;  %550 = vperm.xlu0 %2918, %v3178_v16  }
  0x3c   : > { %565 = vperm.xlu1 %2919, %v3183_v17   ;;  %560 = vperm.xlu0 %2918, %v3186_v18  }
  0x40   : > { %575 = vperm.xlu1 %2919, %v3191_v19   ;;  %570 = vperm.xlu0 %2918, %v3194_v20  }
  0x44   : > { %585 = vperm.xlu1 %2919, %v3199_v21   ;;  %580 = vperm.xlu0 %2918, %v3202_v22  }
  0x48   : > { %595 = vperm.xlu1 %2919, %v3207_v23   ;;  %590 = vperm.xlu0 %2918, %v3210_v24  }
  0x4c   : > { %605 = vperm.xlu1 %2919, %v3215_v25   ;;  %600 = vperm.xlu0 %2918, %v3218_v26  }
  0x50   : > { %615 = vperm.xlu1 %2919, %v3223_v27   ;;  %610 = vperm.xlu0 %2918, %v3226_v28  }
  0x54   : > { %625 = vperm.xlu1 %2919, %v3231_v29   ;;  %620 = vperm.xlu0 %2918, %v3234_v30  }
  0x58   : > { %635 = vperm.xlu1 %2919, %v3239_v31   ;;  %630 = vperm.xlu0 %2918, %v3242_v32  }
  0x5c   : > { %2921 = vset.pattern.permute.xlu1 %v2999_v33  ;;  %2920 = vset.pattern.permute.xlu0 %v2999_v33 }
  0x5d   : > { %711 = vperm.xlu1 %2921, %v3130_v4   ;;  %707 = vperm.xlu0 %2920, %v3122_v1  }
  0x61   : > { %715 = vperm.xlu1 %2921, %v3119_v0   ;;  %719 = vperm.xlu0 %2920, %v3127_v3  }
  0x65   : > { %723 = vperm.xlu1 %2921, %v3138_v6   ;;  %727 = vperm.xlu0 %2920, %v3135_v5  }
  0x69   : > { %731 = vperm.xlu1 %2921, %v3146_v8   ;;  %735 = vperm.xlu0 %2920, %v3143_v7  }
  0x6d   : > { %739 = vperm.xlu1 %2921, %v3154_v10   ;;  %743 = vperm.xlu0 %2920, %v3151_v9  }
  0x71   : > { %747 = vperm.xlu1 %2921, %v3162_v12   ;;  %751 = vperm.xlu0 %2920, %v3159_v11  }
  0x75   : > { %755 = vperm.xlu1 %2921, %v3170_v14   ;;  %759 = vperm.xlu0 %2920, %v3167_v13  }
  0x79   : > { %763 = vperm.xlu1 %2921, %v3178_v16   ;;  %767 = vperm.xlu0 %2920, %v3175_v15  }
  0x7d   : > { %771 = vperm.xlu1 %2921, %v3186_v18   ;;  %775 = vperm.xlu0 %2920, %v3183_v17  }
  0x81   : > { %779 = vperm.xlu1 %2921, %v3194_v20   ;;  %783 = vperm.xlu0 %2920, %v3191_v19  }
  0x85   : > { %787 = vperm.xlu1 %2921, %v3202_v22   ;;  %791 = vperm.xlu0 %2920, %v3199_v21  }
  0x89   : > { %795 = vperm.xlu1 %2921, %v3210_v24   ;;  %799 = vperm.xlu0 %2920, %v3207_v23  }
  0x8d   : > { %803 = vperm.xlu1 %2921, %v3218_v26   ;;  %807 = vperm.xlu0 %2920, %v3215_v25  }
  0x91   : > { %811 = vperm.xlu1 %2921, %v3226_v28   ;;  %815 = vperm.xlu0 %2920, %v3223_v27  }
  0x95   : > { %819 = vperm.xlu1 %2921, %v3234_v30   ;;  %823 = vperm.xlu0 %2920, %v3231_v29  }
  0x99   : > { %827 = vperm.xlu1 %2921, %v3242_v32   ;;  %831 = vperm.xlu0 %2920, %v3239_v31  }
  0x9b   : > { %v3278_v34 = vpop.permute.xlu1 %490  ;;  %v3280_v35 = vpop.permute.xlu0 %480 }
  0x9d   : > { %2922 = vset.pattern.permute.xlu1 %v3000_v36  ;;  %2923 = vset.pattern.permute.xlu0 %v3000_v36 }
  0x9e   : > { %903 = vperm.xlu1 %2922, %v3122_v1   ;;  %907 = vperm.xlu0 %2923, %v3130_v4  }
  0x9f   : > { %v3284_v37 = vpop.permute.xlu1 %495  ;;  %v3286_v38 = vpop.permute.xlu0 %485 }
  0xa2   : > { %911 = vperm.xlu1 %2922, %v3119_v0   ;;  %919 = vperm.xlu0 %2923, %v3138_v6  }
  0xa3   : > { %v3290_v39 = vpop.permute.xlu1 %505  ;;  %v3292_v40 = vpop.permute.xlu0 %500 }
  0xa6   : > { %915 = vperm.xlu1 %2922, %v3127_v3   ;;  %927 = vperm.xlu0 %2923, %v3146_v8  }
  0xa7   : > { %v3296_v41 = vpop.permute.xlu1 %515  ;;  %v3298_v42 = vpop.permute.xlu0 %510 }
  0xaa   : > { %923 = vperm.xlu1 %2922, %v3135_v5   ;;  %935 = vperm.xlu0 %2923, %v3154_v10  }
  0xab   : > { %v3302_v43 = vpop.permute.xlu1 %525  ;;  %v3304_v44 = vpop.permute.xlu0 %520 }
  0xae   : > { %931 = vperm.xlu1 %2922, %v3143_v7   ;;  %943 = vperm.xlu0 %2923, %v3162_v12  }
  0xaf   : > { %v3308_v45 = vpop.permute.xlu1 %535  ;;  %v3310_v46 = vpop.permute.xlu0 %530 }
  0xb0   : > { %4817 = vst [vmem:[#allocation3_spill] sm:$0xff] %v3308_v45  ;;  %v4828_v45 = vmov 0.0  }
  0xb1   : > { %393 = vst.msk [vmem:[#allocation2 + $0x10] sm:$0x3] %vm392_vm1, %v4828_v45  ;;  %399 = vst.msk [vmem:[#allocation2 + $0x40] sm:$0x3] %vm392_vm1, %v4828_v45 }
  0xb2   : > { %939 = vperm.xlu1 %2922, %v3151_v9   ;;  %951 = vperm.xlu0 %2923, %v3170_v14   ;;  %444 = vst.msk [vmem:[#allocation2 + $0x1a8] sm:$0x3] %vm392_vm1, %v4828_v45  ;;  %396 = vst.msk [vmem:[#allocation2 + $0x28] sm:$0x3] %vm392_vm1, %v4828_v45 }
  0xb3   : > { %v3314_v47 = vpop.permute.xlu1 %545  ;;  %v3316_v48 = vpop.permute.xlu0 %540  ;;  %402 = vst.msk [vmem:[#allocation2 + $0x58] sm:$0x3] %vm392_vm1, %v4828_v45  ;;  %405 = vst.msk [vmem:[#allocation2 + $0x70] sm:$0x3] %vm392_vm1, %v4828_v45 }
  0xb4   : > { %4818 = vst [vmem:[#allocation4_spill] sm:$0xff] %v3314_v47  ;;  %408 = vst.msk [vmem:[#allocation2 + $0x88] sm:$0x3] %vm392_vm1, %v4828_v45 }
  0xb5   : > { %411 = vst.msk [vmem:[#allocation2 + $0xa0] sm:$0x3] %vm392_vm1, %v4828_v45  ;;  %414 = vst.msk [vmem:[#allocation2 + $0xb8] sm:$0x3] %vm392_vm1, %v4828_v45 }
  0xb6   : > { %947 = vperm.xlu1 %2922, %v3159_v11   ;;  %959 = vperm.xlu0 %2923, %v3178_v16   ;;  %417 = vst.msk [vmem:[#allocation2 + $0xd0] sm:$0x3] %vm392_vm1, %v4828_v45  ;;  %420 = vst.msk [vmem:[#allocation2 + $0xe8] sm:$0x3] %vm392_vm1, %v4828_v45 }
  0xb7   : > { %v3320_v49 = vpop.permute.xlu1 %555  ;;  %v3322_v50 = vpop.permute.xlu0 %550  ;;  %423 = vst.msk [vmem:[#allocation2 + $0x100] sm:$0x3] %vm392_vm1, %v4828_v45  ;;  %426 = vst.msk [vmem:[#allocation2 + $0x118] sm:$0x3] %vm392_vm1, %v4828_v45 }
  0xb8   : > { %4819 = vst [vmem:[#allocation5_spill] sm:$0xff] %v3320_v49  ;;  %v4815_v49 = vmov 0.0   ;;  %429 = vst.msk [vmem:[#allocation2 + $0x130] sm:$0x3] %vm392_vm1, %v4828_v45 }
  0xb9   : > { %394 = vst.msk [vmem:[#allocation2 + $0x18] sm:$0xff] %vm389_vm0, %v4815_v49  ;;  %395 = vst.msk [vmem:[#allocation2 + $0x20] sm:$0xff] %vm389_vm0, %v4815_v49 }
  0xba   : > { %955 = vperm.xlu1 %2922, %v3167_v13   ;;  %967 = vperm.xlu0 %2923, %v3186_v18   ;;  %390 = vst.msk [vmem:[#allocation2] sm:$0xff] %vm389_vm0, %v4815_v49  ;;  %391 = vst.msk [vmem:[#allocation2 + $0x8] sm:$0xff] %vm389_vm0, %v4815_v49 }
  0xbb   : > { %v3326_v51 = vpop.permute.xlu1 %565  ;;  %v3328_v52 = vpop.permute.xlu0 %560  ;;  %397 = vst.msk [vmem:[#allocation2 + $0x30] sm:$0xff] %vm389_vm0, %v4815_v49  ;;  %398 = vst.msk [vmem:[#allocation2 + $0x38] sm:$0xff] %vm389_vm0, %v4815_v49 }
  0xbc   : > { %4820 = vst [vmem:[#allocation6_spill] sm:$0xff] %v3326_v51  ;;  %v3001_v51 = vmov 3   ;;  %400 = vst.msk [vmem:[#allocation2 + $0x48] sm:$0xff] %vm389_vm0, %v4815_v49 }
  0xbd   : > { %401 = vst.msk [vmem:[#allocation2 + $0x50] sm:$0xff] %vm389_vm0, %v4815_v49  ;;  %403 = vst.msk [vmem:[#allocation2 + $0x60] sm:$0xff] %vm389_vm0, %v4815_v49 }
  0xbe   : > { %963 = vperm.xlu1 %2922, %v3175_v15   ;;  %975 = vperm.xlu0 %2923, %v3194_v20   ;;  %404 = vst.msk [vmem:[#allocation2 + $0x68] sm:$0xff] %vm389_vm0, %v4815_v49  ;;  %406 = vst.msk [vmem:[#allocation2 + $0x78] sm:$0xff] %vm389_vm0, %v4815_v49 }
  0xbf   : > { %v3332_v53 = vpop.permute.xlu1 %575  ;;  %v3334_v54 = vpop.permute.xlu0 %570  ;;  %407 = vst.msk [vmem:[#allocation2 + $0x80] sm:$0xff] %vm389_vm0, %v4815_v49  ;;  %409 = vst.msk [vmem:[#allocation2 + $0x90] sm:$0xff] %vm389_vm0, %v4815_v49 }
  0xc0   : > { %4821 = vst [vmem:[#allocation7_spill] sm:$0xff] %v3332_v53  ;;  %410 = vst.msk [vmem:[#allocation2 + $0x98] sm:$0xff] %vm389_vm0, %v4815_v49 }
  0xc1   : > { %412 = vst.msk [vmem:[#allocation2 + $0xa8] sm:$0xff] %vm389_vm0, %v4815_v49  ;;  %413 = vst.msk [vmem:[#allocation2 + $0xb0] sm:$0xff] %vm389_vm0, %v4815_v49 }
  0xc2   : > { %971 = vperm.xlu1 %2922, %v3183_v17   ;;  %983 = vperm.xlu0 %2923, %v3202_v22   ;;  %415 = vst.msk [vmem:[#allocation2 + $0xc0] sm:$0xff] %vm389_vm0, %v4815_v49  ;;  %416 = vst.msk [vmem:[#allocation2 + $0xc8] sm:$0xff] %vm389_vm0, %v4815_v49 }
  0xc3   : > { %v3338_v55 = vpop.permute.xlu1 %585  ;;  %v3340_v56 = vpop.permute.xlu0 %580  ;;  %418 = vst.msk [vmem:[#allocation2 + $0xd8] sm:$0xff] %vm389_vm0, %v4815_v49  ;;  %419 = vst.msk [vmem:[#allocation2 + $0xe0] sm:$0xff] %vm389_vm0, %v4815_v49 }
  0xc4   : > { %4822 = vst [vmem:[#allocation8_spill] sm:$0xff] %v3338_v55  ;;  %421 = vst.msk [vmem:[#allocation2 + $0xf0] sm:$0xff] %vm389_vm0, %v4815_v49 }
  0xc5   : > { %422 = vst.msk [vmem:[#allocation2 + $0xf8] sm:$0xff] %vm389_vm0, %v4815_v49  ;;  %424 = vst.msk [vmem:[#allocation2 + $0x108] sm:$0xff] %vm389_vm0, %v4815_v49 }
  0xc6   : > { %979 = vperm.xlu1 %2922, %v3191_v19   ;;  %991 = vperm.xlu0 %2923, %v3210_v24   ;;  %425 = vst.msk [vmem:[#allocation2 + $0x110] sm:$0xff] %vm389_vm0, %v4815_v49  ;;  %427 = vst.msk [vmem:[#allocation2 + $0x120] sm:$0xff] %vm389_vm0, %v4815_v49 }
  0xc7   : > { %v3344_v58 = vpop.permute.xlu1 %595  ;;  %v3346_v59 = vpop.permute.xlu0 %590  ;;  %428 = vst.msk [vmem:[#allocation2 + $0x128] sm:$0xff] %vm389_vm0, %v4815_v49  ;;  %430 = vst.msk [vmem:[#allocation2 + $0x138] sm:$0xff] %vm389_vm0, %v4815_v49 }
  0xc8   : > { %4823 = vst [vmem:[#allocation9_spill] sm:$0xff] %v3344_v58  ;;  %431 = vst.msk [vmem:[#allocation2 + $0x140] sm:$0xff] %vm389_vm0, %v4815_v49 }
  0xc9   : > { %433 = vst.msk [vmem:[#allocation2 + $0x150] sm:$0xff] %vm389_vm0, %v4815_v49  ;;  %434 = vst.msk [vmem:[#allocation2 + $0x158] sm:$0xff] %vm389_vm0, %v4815_v49 }
  0xca   : > { %987 = vperm.xlu1 %2922, %v3199_v21   ;;  %999 = vperm.xlu0 %2923, %v3218_v26   ;;  %436 = vst.msk [vmem:[#allocation2 + $0x168] sm:$0xff] %vm389_vm0, %v4815_v49  ;;  %437 = vst.msk [vmem:[#allocation2 + $0x170] sm:$0xff] %vm389_vm0, %v4815_v49 }
  0xcb   : > { %v3352_v61 = vpop.permute.xlu1 %605  ;;  %v3354_v62 = vpop.permute.xlu0 %600  ;;  %439 = vst.msk [vmem:[#allocation2 + $0x180] sm:$0xff] %vm389_vm0, %v4815_v49  ;;  %440 = vst.msk [vmem:[#allocation2 + $0x188] sm:$0xff] %vm389_vm0, %v4815_v49 }
  0xcc   : > { %4824 = vst [vmem:[#allocation10_spill] sm:$0xff] %v3352_v61  ;;  %442 = vst.msk [vmem:[#allocation2 + $0x198] sm:$0xff] %vm389_vm0, %v4815_v49 }
  0xcd   : > { %443 = vst.msk [vmem:[#allocation2 + $0x1a0] sm:$0xff] %vm389_vm0, %v4815_v49 }
  0xce   : > { %995 = vperm.xlu1 %2922, %v3207_v23   ;;  %1007 = vperm.xlu0 %2923, %v3226_v28   ;;  %432 = vst.msk [vmem:[#allocation2 + $0x148] sm:$0x3] %vm392_vm1, %v4828_v45  ;;  %435 = vst.msk [vmem:[#allocation2 + $0x160] sm:$0x3] %vm392_vm1, %v4828_v45 }
  0xcf   : > { %v3364_v33 = vpop.permute.xlu1 %615  ;;  %v3366_v36 = vpop.permute.xlu0 %610  ;;  %438 = vst.msk [vmem:[#allocation2 + $0x178] sm:$0x3] %vm392_vm1, %v4828_v45  ;;  %441 = vst.msk [vmem:[#allocation2 + $0x190] sm:$0x3] %vm392_vm1, %v4828_v45 }
  0xd0   : > { %4825 = vst [vmem:[#allocation11_spill] sm:$0xff] %v3364_v33 }
  0xd2   : > { %1003 = vperm.xlu1 %2922, %v3215_v25   ;;  %1015 = vperm.xlu0 %2923, %v3234_v30  }
  0xd3   : > { %v3373_v61 = vpop.permute.xlu1 %625  ;;  %v621_v58 = vpop.permute.xlu0 %620 }
  0xd4   : > { %4826 = vst [vmem:[#allocation12_spill] sm:$0xff] %v3373_v61  ;;  %v3376_v55 = vmul.f32 %v3369_v57, %v621_v58 }
  0xd6   : > { %1011 = vperm.xlu1 %2922, %v3223_v27   ;;  %1023 = vperm.xlu0 %2923, %v3242_v32  }
  0xd7   : > { %v3380_v33 = vpop.permute.xlu1 %635  ;;  %v631_v53 = vpop.permute.xlu0 %630 }
  0xd8   : > { %4827 = vst [vmem:[#allocation13_spill] sm:$0xff] %v3380_v33  ;;  %v3383_v63 = vmul.f32 %v3369_v57, %v631_v53 }
  0xda   : > { %1019 = vperm.xlu1 %2922, %v3231_v29   ;;  %2924 = vset.pattern.permute.xlu0 %v3001_v51 }
  0xdb   : > { %1099 = vperm.xlu0 %2924, %v3122_v1  }
  0xdc   : > { %v3387_v61 = vpop.permute.xlu1 %711  ;;  %v3389_v58 = vpop.permute.xlu0 %707 }
  0xde   : > { %1027 = vperm.xlu1 %2922, %v3239_v31  }
  0xdf   : > { %1111 = vperm.xlu0 %2924, %v3127_v3  }
  0xe0   : > { %v3465_v1 = vpop.permute.xlu1 %715  ;;  %v3467_v53 = vpop.permute.xlu0 %719 }
  0xe2   : > { %2925 = vset.pattern.permute.xlu1 %v3001_v51 }
  0xe3   : > { %1103 = vperm.xlu1 %2925, %v3130_v4   ;;  %1119 = vperm.xlu0 %2924, %v3135_v5  }
  0xe4   : > { %v3471_v33 = vpop.permute.xlu1 %723  ;;  %v3473_v47 = vpop.permute.xlu0 %727 }
  0xe7   : > { %1107 = vperm.xlu1 %2925, %v3119_v0   ;;  %1127 = vperm.xlu0 %2924, %v3143_v7  }
  0xe8   : > { %v3477_v49 = vpop.permute.xlu1 %731  ;;  %v3479_v3 = vpop.permute.xlu0 %735 }
  0xeb   : > { %1115 = vperm.xlu1 %2925, %v3138_v6   ;;  %1135 = vperm.xlu0 %2924, %v3151_v9  }
  0xec   : > { %v3519_v0 = vpop.permute.xlu1 %739  ;;  %v3521_v4 = vpop.permute.xlu0 %743 }
  0xef   : > { %1123 = vperm.xlu1 %2925, %v3146_v8   ;;  %1143 = vperm.xlu0 %2924, %v3159_v11  }
  0xf0   : > { %v3525_v5 = vpop.permute.xlu1 %747  ;;  %v3527_v7 = vpop.permute.xlu0 %751 }
  0xf3   : > { %1131 = vperm.xlu1 %2925, %v3154_v10   ;;  %1151 = vperm.xlu0 %2924, %v3167_v13  }
  0xf4   : > { %v3531_v45 = vpop.permute.xlu1 %755  ;;  %v3533_v6 = vpop.permute.xlu0 %759 }
  0xf7   : > { %1139 = vperm.xlu1 %2925, %v3162_v12   ;;  %1159 = vperm.xlu0 %2924, %v3175_v15  }
  0xf8   : > { %v3537_v9 = vpop.permute.xlu1 %763  ;;  %v3539_v8 = vpop.permute.xlu0 %767 }
  0xfb   : > { %1147 = vperm.xlu1 %2925, %v3170_v14   ;;  %1167 = vperm.xlu0 %2924, %v3183_v17  }
  0xfc   : > { %v3543_v11 = vpop.permute.xlu1 %771  ;;  %v3545_v10 = vpop.permute.xlu0 %775 }
  0xff   : > { %1155 = vperm.xlu1 %2925, %v3178_v16   ;;  %1175 = vperm.xlu0 %2924, %v3191_v19  }
 0x100   : > { %v3549_v13 = vpop.permute.xlu1 %779  ;;  %v3551_v12 = vpop.permute.xlu0 %783 }
 0x103   : > { %1163 = vperm.xlu1 %2925, %v3186_v18   ;;  %1183 = vperm.xlu0 %2924, %v3199_v21   ;;  %v836_v21 = vsub.s32 1, %v3348_v60 }
 0x104   : > { %v3555_v15 = vpop.permute.xlu1 %787  ;;  %v3557_v14 = vpop.permute.xlu0 %791 }
 0x105   : > { %v3579_v51 = vrot.slane %v3362_v2, %v836_v21 }
 0x107   : > { %1171 = vperm.xlu1 %2925, %v3194_v20   ;;  %1191 = vperm.xlu0 %2924, %v3207_v23  }
 0x108   : > { %v3561_v17 = vpop.permute.xlu1 %795  ;;  %v3563_v16 = vpop.permute.xlu0 %799 }
 0x109   : > { %4829 = vst [vmem:[#allocation14_spill] sm:$0xff] %v3563_v16 }
 0x10b   : > { %1179 = vperm.xlu1 %2925, %v3202_v22   ;;  %1199 = vperm.xlu0 %2924, %v3215_v25  }
 0x10c   : > { %v3567_v19 = vpop.permute.xlu1 %803  ;;  %v3569_v18 = vpop.permute.xlu0 %807 }
 0x10d   : > { %4830 = vst [vmem:[#allocation15_spill] sm:$0xff] %v3569_v18 }
 0x10f   : > { %1187 = vperm.xlu1 %2925, %v3210_v24   ;;  %1207 = vperm.xlu0 %2924, %v3223_v27   ;;  %v1032_v24 = vsub.s32 2, %v3348_v60 }
 0x110   : > { %v3574_v20 = vpop.permute.xlu1 %811  ;;  %v3576_v23 = vpop.permute.xlu0 %815 }
 0x111   : > { %4831 = vst [vmem:[#allocation16_spill] sm:$0xff] %v3576_v23 }
 0x113   : > { %1195 = vperm.xlu1 %2925, %v3218_v26   ;;  %1215 = vperm.xlu0 %2924, %v3231_v29   ;;  %v839_v29 = vmul.f32 %v3579_v51, %v3387_v61  ;;  %v842_v61 = vmul.f32 %v3579_v51, %v3471_v33 }
 0x114   : > { %v820_v22 = vpop.permute.xlu1 %819  ;;  %v3583_v25 = vpop.permute.xlu0 %823 }
 0x115   : > { %4832 = vst [vmem:[#allocation17_spill] sm:$0xff] %v3583_v25  ;;  %v866_v18 = vmul.f32 %v3579_v51, %v820_v22  ;;  %v3598_v25 = vrot.slane %v3362_v2, %v1032_v24 }
 0x117   : > { %v3588_v27 = vadd.f32 %v866_v18, %v3376_v55  ;;  %1203 = vperm.xlu1 %2925, %v3226_v28   ;;  %1223 = vperm.xlu0 %2924, %v3239_v31   ;;  %v643_v28 = vmul.f32 %v3369_v57, %v3286_v38  ;;  %v840_v31 = vmul.f32 %v3579_v51, %v3465_v1 }
 0x118   : > { %v828_v21 = vpop.permute.xlu1 %827  ;;  %v3592_v23 = vpop.permute.xlu0 %831 }
 0x119   : > { %4833 = vst [vmem:[#allocation18_spill] sm:$0xff] %v3592_v23  ;;  %v868_v26 = vmul.f32 %v3579_v51, %v828_v21  ;;  %v871_v21 = vadd.f32 %v839_v29, %v643_v28  ;;  %v844_v29 = vmul.f32 %v3579_v51, %v3477_v49 }
 0x11b   : > { %v3601_v22 = vadd.f32 %v868_v26, %v3383_v63  ;;  %1211 = vperm.xlu1 %2925, %v3234_v30   ;;  %v644_v63 = vmul.f32 %v3369_v57, %v3278_v34  ;;  %v646_v30 = vmul.f32 %v3369_v57, %v3292_v40  ;;  %v648_v34 = vmul.f32 %v3369_v57, %v3298_v42 }
 0x11d   : > { %v3608_v55 = vpop.permute.xlu1 %903  ;;  %v908_v18 = vpop.permute.xlu0 %907  ;;  %v872_v1 = vadd.f32 %v840_v31, %v644_v63  ;;  %v874_v16 = vadd.f32 %v842_v61, %v646_v30  ;;  %v846_v61 = vmul.f32 %v3579_v51, %v3519_v0 }
 0x11e   : > { %v1035_v24 = vmul.f32 %v3598_v25, %v908_v18 }
 0x11f   : > { %1219 = vperm.xlu1 %2925, %v3242_v32  }
 0x120   : > { %v3618_v38 = vadd.f32 %v1035_v24, %v871_v21  ;;  %v876_v21 = vadd.f32 %v844_v29, %v648_v34  ;;  %v650_v24 = vmul.f32 %v3369_v57, %v3304_v44 }
 0x121   : > { %v912_v26 = vpop.permute.xlu1 %911  ;;  %v920_v23 = vpop.permute.xlu0 %919 }
 0x122   : > { %v1036_v33 = vmul.f32 %v3598_v25, %v912_v26  ;;  %v1038_v28 = vmul.f32 %v3598_v25, %v920_v23  ;;  %v878_v30 = vadd.f32 %v846_v61, %v650_v24  ;;  %v652_v26 = vmul.f32 %v3369_v57, %v3310_v46 }
 0x124   : > { %v3626_v32 = vadd.f32 %v1036_v33, %v872_v1  ;;  %v3628_v18 = vadd.f32 %v1038_v28, %v874_v16  ;;  %v848_v16 = vmul.f32 %v3579_v51, %v3525_v5  ;;  %v850_v28 = vmul.f32 %v3579_v51, %v3531_v45 }
 0x125   : > { %v3630_v40 = vpop.permute.xlu1 %915  ;;  %v928_v31 = vpop.permute.xlu0 %927 }
 0x126   : > { %v1040_v49 = vmul.f32 %v3598_v25, %v928_v31  ;;  %v880_v44 = vadd.f32 %v848_v16, %v652_v26  ;;  %v654_v31 = vmul.f32 %v3369_v57, %v3316_v48 }
 0x128   : > { %v3637_v23 = vadd.f32 %v1040_v49, %v876_v21  ;;  %v882_v46 = vadd.f32 %v850_v28, %v654_v31  ;;  %v852_v49 = vmul.f32 %v3579_v51, %v3537_v9 }
 0x129   : > { %v3639_v63 = vpop.permute.xlu1 %923  ;;  %v936_v42 = vpop.permute.xlu0 %935 }
 0x12a   : > { %v1042_v1 = vmul.f32 %v3598_v25, %v936_v42  ;;  %v656_v42 = vmul.f32 %v3369_v57, %v3322_v50 }
 0x12c   : > { %v3646_v0 = vadd.f32 %v1042_v1, %v878_v30  ;;  %v884_v48 = vadd.f32 %v852_v49, %v656_v42  ;;  %v854_v1 = vmul.f32 %v3579_v51, %v3543_v11 }
 0x12d   : > { %v3648_v29 = vpop.permute.xlu1 %931  ;;  %v944_v33 = vpop.permute.xlu0 %943 }
 0x12e   : > { %v1044_v34 = vmul.f32 %v3598_v25, %v944_v33  ;;  %v658_v33 = vmul.f32 %v3369_v57, %v3328_v52 }
 0x130   : > { %v3655_v5 = vadd.f32 %v1044_v34, %v880_v44  ;;  %v886_v50 = vadd.f32 %v854_v1, %v658_v33  ;;  %v856_v34 = vmul.f32 %v3579_v51, %v3549_v13 }
 0x131   : > { %v3657_v21 = vpop.permute.xlu1 %939  ;;  %v952_v61 = vpop.permute.xlu0 %951 }
 0x132   : > { %v1046_v24 = vmul.f32 %v3598_v25, %v952_v61  ;;  %v660_v61 = vmul.f32 %v3369_v57, %v3334_v54 }
 0x134   : > { %v3664_v45 = vadd.f32 %v1046_v24, %v882_v46  ;;  %v888_v52 = vadd.f32 %v856_v34, %v660_v61  ;;  %v858_v24 = vmul.f32 %v3579_v51, %v3555_v15 }
 0x135   : > { %v3666_v30 = vpop.permute.xlu1 %947  ;;  %v960_v16 = vpop.permute.xlu0 %959 }
 0x136   : > { %v1048_v26 = vmul.f32 %v3598_v25, %v960_v16  ;;  %v662_v16 = vmul.f32 %v3369_v57, %v3340_v56 }
 0x138   : > { %v3673_v9 = vadd.f32 %v1048_v26, %v884_v48  ;;  %v890_v54 = vadd.f32 %v858_v24, %v662_v16  ;;  %v860_v26 = vmul.f32 %v3579_v51, %v3561_v17 }
 0x139   : > { %v3675_v44 = vpop.permute.xlu1 %955  ;;  %v968_v28 = vpop.permute.xlu0 %967 }
 0x13a   : > { %v1050_v31 = vmul.f32 %v3598_v25, %v968_v28  ;;  %v664_v28 = vmul.f32 %v3369_v57, %v3346_v59 }
 0x13c   : > { %v3682_v11 = vadd.f32 %v1050_v31, %v886_v50  ;;  %v892_v56 = vadd.f32 %v860_v26, %v664_v28  ;;  %v862_v31 = vmul.f32 %v3579_v51, %v3567_v19 }
 0x13d   : > { %v3684_v46 = vpop.permute.xlu1 %963  ;;  %v976_v49 = vpop.permute.xlu0 %975 }
 0x13e   : > { %v1052_v42 = vmul.f32 %v3598_v25, %v976_v49  ;;  %v666_v49 = vmul.f32 %v3369_v57, %v3354_v62 }
 0x140   : > { %v3691_v13 = vadd.f32 %v1052_v42, %v888_v52  ;;  %v894_v59 = vadd.f32 %v862_v31, %v666_v49  ;;  %v864_v42 = vmul.f32 %v3579_v51, %v3574_v20  ;;  %v1228_v31 = vsub.s32 3, %v3348_v60 }
 0x141   : > { %v3693_v48 = vpop.permute.xlu1 %971  ;;  %v984_v1 = vpop.permute.xlu0 %983 }
 0x142   : > { %v1054_v33 = vmul.f32 %v3598_v25, %v984_v1  ;;  %v668_v1 = vmul.f32 %v3369_v57, %v3366_v36  ;;  %v838_v36 = vmul.f32 %v3579_v51, %v3389_v58  ;;  %v841_v58 = vmul.f32 %v3579_v51, %v3467_v53 }
 0x144   : > { %v3700_v15 = vadd.f32 %v1054_v33, %v890_v54  ;;  %v896_v62 = vadd.f32 %v864_v42, %v668_v1  ;;  %v642_v42 = vmul.f32 %v3369_v57, %v3280_v35  ;;  %v3742_v1 = vrot.slane %v3362_v2, %v1228_v31 }
 0x145   : > { %v3702_v50 = vpop.permute.xlu1 %979  ;;  %v992_v34 = vpop.permute.xlu0 %991 }
 0x146   : > { %v1056_v61 = vmul.f32 %v3598_v25, %v992_v34 }
 0x148   : > { %v3709_v17 = vadd.f32 %v1056_v61, %v892_v56 }
 0x149   : > { %v3711_v52 = vpop.permute.xlu1 %987  ;;  %v1000_v24 = vpop.permute.xlu0 %999 }
 0x14a   : > { %v1058_v16 = vmul.f32 %v3598_v25, %v1000_v24 }
 0x14c   : > { %v3718_v19 = vadd.f32 %v1058_v16, %v894_v59  ;;  %v1034_v16 = vmul.f32 %v3598_v25, %v3608_v55  ;;  %v1037_v55 = vmul.f32 %v3598_v25, %v3630_v40  ;;  %v1039_v40 = vmul.f32 %v3598_v25, %v3639_v63 }
 0x14d   : > { %v3720_v54 = vpop.permute.xlu1 %995  ;;  %v1008_v26 = vpop.permute.xlu0 %1007 }
 0x14e   : > { %4834 = vst [vmem:[#allocation19_spill] sm:$0xff] %v3718_v19  ;;  %v1060_v33 = vmul.f32 %v3598_v25, %v1008_v26 }
 0x150   : > { %v3723_v28 = vadd.f32 %v1060_v33, %v896_v62  ;;  %v645_v33 = vmul.f32 %v3369_v57, %v3284_v37  ;;  %v647_v37 = vmul.f32 %v3369_v57, %v3290_v39  ;;  %v651_v39 = vmul.f32 %v3369_v57, %v3302_v43 }
 0x151   : > { %v3725_v34 = vpop.permute.xlu1 %1003  ;;  %v1016_v56 = vpop.permute.xlu0 %1015  ;;  %v845_v43 = vmul.f32 %v3579_v51, %v3479_v3 }
 0x152   : > { %4835 = vst [vmem:[#allocation20_spill] sm:$0xff] %v3723_v28  ;;  %v1062_v20 = vmul.f32 %v3598_v25, %v1016_v56  ;;  %v3761_v56 = vld [vmem:[%s4806_s2] ss:$0 sm:$0xff]  ;;  %v873_v53 = vadd.f32 %v841_v58, %v645_v33  ;;  %v4839_v58 = vld [vmem:[#allocation3_spill] sm:$0xff] }
 0x153   : > { %v653_v63 = vmul.f32 %v3369_v57, %v4839_v58 }
 0x154   : > { %v3730_v61 = vadd.f32 %v1062_v20, %v3588_v27  ;;  %v870_v27 = vadd.f32 %v838_v36, %v642_v42  ;;  %v3772_v36 = vld [vmem:[%s4807_s3] ss:$0 sm:$0xff] }
 0x155   : > { %v3734_v49 = vpop.permute.xlu1 %1011  ;;  %v1024_v24 = vpop.permute.xlu0 %1023 }
 0x156   : > { %4836 = vst [vmem:[#allocation21_spill] sm:$0xff] %v3730_v61  ;;  %v1064_v59 = vmul.f32 %v3598_v25, %v1024_v24  ;;  %v1066_v35 = vadd.f32 %v1034_v16, %v870_v27  ;;  %v1069_v24 = vadd.f32 %v1037_v55, %v873_v53  ;;  %v649_v16 = vmul.f32 %v3369_v57, %v3296_v41  ;;  %v4845_v61 = vld [vmem:[#allocation9_spill] sm:$0xff] }
 0x157   : > { %v3810_v3 = vmul.f32 %v3369_v57, %v4845_v61  ;;  %v849_v61 = vmul.f32 %v3579_v51, %v3527_v7 }
 0x158   : > { %v3745_v60 = vadd.f32 %v1064_v59, %v3601_v22  ;;  %v843_v22 = vmul.f32 %v3579_v51, %v3473_v47  ;;  %v877_v28 = vadd.f32 %v845_v43, %v649_v16 }
 0x159   : > { %v3749_v26 = vpop.permute.xlu1 %1019 }
 0x15a   : > { %4837 = vst [vmem:[#allocation22_spill] sm:$0xff] %v3745_v60  ;;  %v1100_v62 = vpop.permute.xlu0 %1099  ;;  %v875_v27 = vadd.f32 %v843_v22, %v647_v37  ;;  %v4844_v60 = vld [vmem:[#allocation8_spill] sm:$0xff] }
 0x15b   : > { %v1230_v2 = vmul.f32 %v3742_v1, %v1100_v62  ;;  %v4840_v62 = vld [vmem:[#allocation4_spill] sm:$0xff] }
 0x15c   : > { %v3784_v33 = vmul.f32 %v3369_v57, %v4840_v62  ;;  %v1071_v22 = vadd.f32 %v1039_v40, %v875_v27  ;;  %v1041_v40 = vmul.f32 %v3598_v25, %v3648_v29 }
 0x15d   : > { %v1262_v20 = vadd.f32 %v1230_v2, %v1066_v35  ;;  %v3763_v31 = vpop.permute.xlu1 %1027  ;;  %v4841_v2 = vld [vmem:[#allocation5_spill] sm:$0xff] }
 0x15e   : > { %4838 = vst [vmem:[#allocation23_spill] sm:$0xff] %v3763_v31  ;;  %v1112_v47 = vpop.permute.xlu0 %1111  ;;  %v3789_v53 = vmul.f32 %v3369_v57, %v4841_v2  ;;  %v1073_v43 = vadd.f32 %v1041_v40, %v877_v28 }
 0x15f   : > { %v1301_v59 = vmul.f32 %v3761_v56, %v1262_v20  ;;  %v1233_v42 = vmul.f32 %v3742_v1, %v1112_v47  ;;  %v4842_v20 = vld [vmem:[#allocation6_spill] sm:$0xff] }
 0x160   : > { %v3793_v41 = vmul.f32 %v3369_v57, %v4842_v20  ;;  %v3806_v20 = vmul.f32 %v3369_v57, %v4844_v60  ;;  %v847_v60 = vmul.f32 %v3579_v51, %v3521_v4  ;;  %v1043_v4 = vmul.f32 %v3598_v25, %v3657_v21 }
 0x161   : > { %v1340_v35 = vadd.f32 %v3772_v36, %v1301_v59  ;;  %v1265_v55 = vadd.f32 %v1233_v42, %v1069_v24  ;;  %v4843_v42 = vld [vmem:[#allocation7_spill] sm:$0xff] }
 0x162   : > { %v1104_v37 = vpop.permute.xlu1 %1103  ;;  %v1120_v47 = vpop.permute.xlu0 %1119  ;;  %v3802_v2 = vmul.f32 %v3369_v57, %v4843_v42 }
 0x163   : > { %v1372_v58 = vmax.f32 %v1340_v35, 0.0  ;;  %v1304_v62 = vmul.f32 %v3761_v56, %v1265_v55  ;;  %v1231_v59 = vmul.f32 %v3742_v1, %v1104_v37  ;;  %v1235_v24 = vmul.f32 %v3742_v1, %v1120_v47  ;;  %v4846_v47 = vld [vmem:[#allocation10_spill] sm:$0xff] }
 0x164   : > { %v3818_v42 = vmul.f32 %v3369_v57, %v4846_v47 }
 0x165   : > { %v1404_v27 = vmin.f32 %v1372_v58, 6.0  ;;  %v1343_v35 = vadd.f32 %v3772_v36, %v1304_v62  ;;  %v1263_v55 = vadd.f32 %v1231_v59, %v3618_v38  ;;  %v1267_v37 = vadd.f32 %v1235_v24, %v1071_v22  ;;  %v4847_v62 = vld [vmem:[#allocation11_spill] sm:$0xff] }
 0x166   : > { %v1108_v19 = vpop.permute.xlu1 %1107  ;;  %v1128_v31 = vpop.permute.xlu0 %1127  ;;  %v3830_v16 = vmul.f32 %v3369_v57, %v4847_v62 }
 0x167   : > { %1437 = vst.msk [vmem:[#allocation2 + $0x19] sm:$0xff] %vm389_vm0, %v1404_v27  ;;  %v1375_v29 = vmax.f32 %v1343_v35, 0.0  ;;  %v1302_v58 = vmul.f32 %v3761_v56, %v1263_v55  ;;  %v1306_v38 = vmul.f32 %v3761_v56, %v1267_v37  ;;  %v1232_v22 = vmul.f32 %v3742_v1, %v1108_v19 }
 0x168   : > { %v1237_v7 = vmul.f32 %v3742_v1, %v1128_v31  ;;  %v879_v55 = vadd.f32 %v847_v60, %v651_v39  ;;  %v881_v37 = vadd.f32 %v849_v61, %v653_v63  ;;  %v1045_v19 = vmul.f32 %v3598_v25, %v3666_v30 }
 0x169   : > { %v1407_v59 = vmin.f32 %v1375_v29, 6.0  ;;  %v1341_v24 = vadd.f32 %v3772_v36, %v1302_v58  ;;  %v1345_v27 = vadd.f32 %v3772_v36, %v1306_v38  ;;  %v1264_v35 = vadd.f32 %v1232_v22, %v3626_v32 }
 0x16a   : > { %v1269_v47 = vadd.f32 %v1237_v7, %v1073_v43  ;;  %v1116_v62 = vpop.permute.xlu1 %1115  ;;  %v1136_v28 = vpop.permute.xlu0 %1135  ;;  %v851_v58 = vmul.f32 %v3579_v51, %v3533_v6  ;;  %v1075_v32 = vadd.f32 %v1043_v4, %v879_v55  ;;  %v853_v22 = vmul.f32 %v3579_v51, %v3539_v8 }
 0x16b   : > { %1440 = vst.msk [vmem:[#allocation2 + $0x39] sm:$0xff] %vm389_vm0, %v1407_v59  ;;  %v1373_v21 = vmax.f32 %v1341_v24, 0.0  ;;  %v1377_v40 = vmax.f32 %v1345_v27, 0.0  ;;  %v1303_v31 = vmul.f32 %v3761_v56, %v1264_v35  ;;  %v1234_v29 = vmul.f32 %v3742_v1, %v1116_v62 }
 0x16c   : > { %v1308_v39 = vmul.f32 %v3761_v56, %v1269_v47  ;;  %v1239_v63 = vmul.f32 %v3742_v1, %v1136_v28  ;;  %v1077_v43 = vadd.f32 %v1045_v19, %v881_v37  ;;  %v883_v55 = vadd.f32 %v851_v58, %v3784_v33 }
 0x16d   : > { %v1405_v30 = vmin.f32 %v1373_v21, 6.0  ;;  %v1409_v60 = vmin.f32 %v1377_v40, 6.0  ;;  %v1342_v61 = vadd.f32 %v3772_v36, %v1303_v31  ;;  %v1266_v38 = vadd.f32 %v1234_v29, %v3628_v18 }
 0x16e   : > { %v1347_v7 = vadd.f32 %v3772_v36, %v1308_v39  ;;  %v1271_v59 = vadd.f32 %v1239_v63, %v1075_v32  ;;  %v1124_v24 = vpop.permute.xlu1 %1123  ;;  %v1144_v6 = vpop.permute.xlu0 %1143  ;;  %v1047_v8 = vmul.f32 %v3598_v25, %v3675_v44  ;;  %v885_v40 = vadd.f32 %v853_v22, %v3789_v53 }
 0x16f   : > { %1438 = vst.msk [vmem:[#allocation2 + $0x21] sm:$0xff] %vm389_vm0, %v1405_v30  ;;  %1442 = vst.msk [vmem:[#allocation2 + $0x51] sm:$0xff] %vm389_vm0, %v1409_v60  ;;  %v1374_v4 = vmax.f32 %v1342_v61, 0.0  ;;  %v1305_v27 = vmul.f32 %v3761_v56, %v1266_v38  ;;  %v1236_v35 = vmul.f32 %v3742_v1, %v1124_v24  ;;  %v1241_v18 = vmul.f32 %v3742_v1, %v1144_v6 }
 0x170   : > { %v1379_v37 = vmax.f32 %v1347_v7, 0.0  ;;  %v1310_v19 = vmul.f32 %v3761_v56, %v1271_v59  ;;  %v855_v31 = vmul.f32 %v3579_v51, %v3545_v10  ;;  %v1079_v30 = vadd.f32 %v1047_v8, %v883_v55 }
 0x171   : > { %v1406_v47 = vmin.f32 %v1374_v4, 6.0  ;;  %v1344_v62 = vadd.f32 %v3772_v36, %v1305_v27  ;;  %v1268_v28 = vadd.f32 %v1236_v35, %v3637_v23  ;;  %v1273_v21 = vadd.f32 %v1241_v18, %v1077_v43 }
 0x172   : > { %v1411_v29 = vmin.f32 %v1379_v37, 6.0  ;;  %v1349_v33 = vadd.f32 %v3772_v36, %v1310_v19  ;;  %v1132_v58 = vpop.permute.xlu1 %1131  ;;  %v1152_v32 = vpop.permute.xlu0 %1151  ;;  %v1049_v53 = vmul.f32 %v3598_v25, %v3684_v46  ;;  %v887_v7 = vadd.f32 %v855_v31, %v3793_v41 }
 0x173   : > { %1439 = vst.msk [vmem:[#allocation2 + $0x31] sm:$0xff] %vm389_vm0, %v1406_v47  ;;  %v1376_v44 = vmax.f32 %v1344_v62, 0.0  ;;  %v1307_v39 = vmul.f32 %v3761_v56, %v1268_v28  ;;  %v1312_v63 = vmul.f32 %v3761_v56, %v1273_v21  ;;  %v1238_v23 = vmul.f32 %v3742_v1, %v1132_v58 }
 0x174   : > { %1444 = vst.msk [vmem:[#allocation2 + $0x69] sm:$0xff] %vm389_vm0, %v1411_v29  ;;  %v1381_v10 = vmax.f32 %v1349_v33, 0.0  ;;  %v1243_v60 = vmul.f32 %v3742_v1, %v1152_v32  ;;  %v1051_v59 = vmul.f32 %v3598_v25, %v3693_v48  ;;  %v1081_v8 = vadd.f32 %v1049_v53, %v885_v40 }
 0x175   : > { %v1408_v61 = vmin.f32 %v1376_v44, 6.0  ;;  %v1346_v38 = vadd.f32 %v3772_v36, %v1307_v39  ;;  %v1351_v22 = vadd.f32 %v3772_v36, %v1312_v63  ;;  %v1270_v43 = vadd.f32 %v1238_v23, %v3646_v0 }
 0x176   : > { %v1413_v24 = vmin.f32 %v1381_v10, 6.0  ;;  %v1275_v6 = vadd.f32 %v1243_v60, %v1079_v30  ;;  %v1140_v46 = vpop.permute.xlu1 %1139  ;;  %v1160_v4 = vpop.permute.xlu0 %1159  ;;  %v857_v0 = vmul.f32 %v3579_v51, %v3551_v12  ;;  %v859_v28 = vmul.f32 %v3579_v51, %v3557_v14 }
 0x177   : > { %1441 = vst.msk [vmem:[#allocation2 + $0x49] sm:$0xff] %vm389_vm0, %v1408_v61  ;;  %v1378_v27 = vmax.f32 %v1346_v38, 0.0  ;;  %v1383_v35 = vmax.f32 %v1351_v22, 0.0  ;;  %v1309_v18 = vmul.f32 %v3761_v56, %v1270_v43  ;;  %v1240_v55 = vmul.f32 %v3742_v1, %v1140_v46  ;;  %v4848_v61 = vld [vmem:[#allocation14_spill] sm:$0xff] }
 0x178   : > { %1446 = vst.msk [vmem:[#allocation2 + $0x81] sm:$0xff] %vm389_vm0, %v1413_v24  ;;  %v1314_v48 = vmul.f32 %v3761_v56, %v1275_v6  ;;  %v1245_v41 = vmul.f32 %v3742_v1, %v1160_v4  ;;  %v1083_v21 = vadd.f32 %v1051_v59, %v887_v7  ;;  %v889_v44 = vadd.f32 %v857_v0, %v3802_v2 }
 0x179   : > { %v1410_v37 = vmin.f32 %v1378_v27, 6.0  ;;  %v1415_v19 = vmin.f32 %v1383_v35, 6.0  ;;  %v1348_v47 = vadd.f32 %v3772_v36, %v1309_v18  ;;  %v1272_v62 = vadd.f32 %v1240_v55, %v3655_v5 }
 0x17a   : > { %v1353_v31 = vadd.f32 %v3772_v36, %v1314_v48  ;;  %v1277_v12 = vadd.f32 %v1245_v41, %v1081_v8  ;;  %v1148_v40 = vpop.permute.xlu1 %1147  ;;  %v1168_v29 = vpop.permute.xlu0 %1167  ;;  %v1053_v14 = vmul.f32 %v3598_v25, %v3702_v50  ;;  %v891_v60 = vadd.f32 %v859_v28, %v3806_v20 }
 0x17b   : > { %1443 = vst.msk [vmem:[#allocation2 + $0x61] sm:$0xff] %vm389_vm0, %v1410_v37  ;;  %1448 = vst.msk [vmem:[#allocation2 + $0x99] sm:$0xff] %vm389_vm0, %v1415_v19  ;;  %v1380_v33 = vmax.f32 %v1348_v47, 0.0  ;;  %v1311_v58 = vmul.f32 %v3761_v56, %v1272_v62  ;;  %v1242_v32 = vmul.f32 %v3742_v1, %v1148_v40  ;;  %v1247_v5 = vmul.f32 %v3742_v1, %v1168_v29 }
 0x17c   : > { %v1385_v39 = vmax.f32 %v1353_v31, 0.0  ;;  %v1316_v63 = vmul.f32 %v3761_v56, %v1277_v12  ;;  %v861_v38 = vmul.f32 %v3579_v51, %v4848_v61  ;;  %v1085_v6 = vadd.f32 %v1053_v14, %v889_v44 }
 0x17d   : > { %v1412_v23 = vmin.f32 %v1380_v33, 6.0  ;;  %v1350_v30 = vadd.f32 %v3772_v36, %v1311_v58  ;;  %v1274_v53 = vadd.f32 %v1242_v32, %v3664_v45  ;;  %v1279_v10 = vadd.f32 %v1247_v5, %v1083_v21  ;;  %v4849_v21 = vld [vmem:[#allocation15_spill] sm:$0xff]  ;;  %v4850_v58 = vld [vmem:[#allocation12_spill] sm:$0xff] }
 0x17e   : > { %v1417_v22 = vmin.f32 %v1385_v39, 6.0  ;;  %v1355_v2 = vadd.f32 %v3772_v36, %v1316_v63  ;;  %v1156_v43 = vpop.permute.xlu1 %1155  ;;  %v1176_v7 = vpop.permute.xlu0 %1175  ;;  %v1055_v20 = vmul.f32 %v3598_v25, %v3711_v52  ;;  %v893_v0 = vadd.f32 %v861_v38, %v3810_v3 }
 0x17f   : > { %1445 = vst.msk [vmem:[#allocation2 + $0x79] sm:$0xff] %vm389_vm0, %v1412_v23  ;;  %v1382_v50 = vmax.f32 %v1350_v30, 0.0  ;;  %v1313_v59 = vmul.f32 %v3761_v56, %v1274_v53  ;;  %v1318_v24 = vmul.f32 %v3761_v56, %v1279_v10  ;;  %v1244_v45 = vmul.f32 %v3742_v1, %v1156_v43 }
 0x180   : > { %1450 = vst.msk [vmem:[#allocation2 + $0xb1] sm:$0xff] %vm389_vm0, %v1417_v22  ;;  %v1387_v46 = vmax.f32 %v1355_v2, 0.0  ;;  %v1249_v4 = vmul.f32 %v3742_v1, %v1176_v7  ;;  %v1057_v8 = vmul.f32 %v3598_v25, %v3720_v54  ;;  %v1087_v31 = vadd.f32 %v1055_v20, %v891_v60 }
 0x181   : > { %v1414_v27 = vmin.f32 %v1382_v50, 6.0  ;;  %v1352_v35 = vadd.f32 %v3772_v36, %v1313_v59  ;;  %v1357_v18 = vadd.f32 %v3772_v36, %v1318_v24  ;;  %v1276_v55 = vadd.f32 %v1244_v45, %v3673_v9  ;;  %v4851_v50 = vld [vmem:[#allocation16_spill] sm:$0xff]  ;;  %v4852_v24 = vld [vmem:[#allocation17_spill] sm:$0xff] }
 0x182   : > { %v1419_v48 = vmin.f32 %v1387_v46, 6.0  ;;  %v1281_v41 = vadd.f32 %v1249_v4, %v1085_v6  ;;  %v1164_v52 = vpop.permute.xlu1 %1163  ;;  %v1184_v37 = vpop.permute.xlu0 %1183  ;;  %v863_v9 = vmul.f32 %v3579_v51, %v4849_v21  ;;  %v671_v32 = vmul.f32 %v3369_v57, %v4850_v58  ;;  %v4853_v58 = vld [vmem:[#allocation18_spill] sm:$0xff] }
 0x183   : > { %1447 = vst.msk [vmem:[#allocation2 + $0x91] sm:$0xff] %vm389_vm0, %v1414_v27  ;;  %v1384_v19 = vmax.f32 %v1352_v35, 0.0  ;;  %v1389_v47 = vmax.f32 %v1357_v18, 0.0  ;;  %v1315_v62 = vmul.f32 %v3761_v56, %v1276_v55  ;;  %v1246_v28 = vmul.f32 %v3742_v1, %v1164_v52 }
 0x184   : > { %1452 = vst.msk [vmem:[#allocation2 + $0xc9] sm:$0xff] %vm389_vm0, %v1419_v48  ;;  %v1320_v54 = vmul.f32 %v3761_v56, %v1281_v41  ;;  %v1251_v3 = vmul.f32 %v3742_v1, %v1184_v37  ;;  %v1089_v5 = vadd.f32 %v1057_v8, %v893_v0  ;;  %v895_v10 = vadd.f32 %v863_v9, %v3818_v42 }
 0x185   : > { %v1416_v12 = vmin.f32 %v1384_v19, 6.0  ;;  %v1421_v40 = vmin.f32 %v1389_v47, 6.0  ;;  %v1354_v29 = vadd.f32 %v3772_v36, %v1315_v62  ;;  %v1278_v33 = vadd.f32 %v1246_v28, %v3682_v11 }
 0x186   : > { %v1359_v44 = vadd.f32 %v3772_v36, %v1320_v54  ;;  %v1283_v14 = vadd.f32 %v1251_v3, %v1087_v31  ;;  %v1172_v39 = vpop.permute.xlu1 %1171  ;;  %v1192_v63 = vpop.permute.xlu0 %1191  ;;  %v1059_v60 = vmul.f32 %v3598_v25, %v3725_v34  ;;  %v865_v59 = vmul.f32 %v3579_v51, %v4851_v50 }
 0x187   : > { %1449 = vst.msk [vmem:[#allocation2 + $0xa9] sm:$0xff] %vm389_vm0, %v1416_v12  ;;  %1454 = vst.msk [vmem:[#allocation2 + $0xe1] sm:$0xff] %vm389_vm0, %v1421_v40  ;;  %v1386_v23 = vmax.f32 %v1354_v29, 0.0  ;;  %v1317_v30 = vmul.f32 %v3761_v56, %v1278_v33  ;;  %v1248_v53 = vmul.f32 %v3742_v1, %v1172_v39  ;;  %v1253_v11 = vmul.f32 %v3742_v1, %v1192_v63 }
 0x188   : > { %v1391_v61 = vmax.f32 %v1359_v44, 0.0  ;;  %v1322_v38 = vmul.f32 %v3761_v56, %v1283_v14  ;;  %v867_v45 = vmul.f32 %v3579_v51, %v4852_v24  ;;  %v1091_v35 = vadd.f32 %v1059_v60, %v895_v10  ;;  %v4855_v10 = vld [vmem:[#allocation23_spill] sm:$0xff] }
 0x189   : > { %v1418_v22 = vmin.f32 %v1386_v23, 6.0  ;;  %v1356_v2 = vadd.f32 %v3772_v36, %v1317_v30  ;;  %v1280_v43 = vadd.f32 %v1248_v53, %v3691_v13  ;;  %v1285_v7 = vadd.f32 %v1253_v11, %v1089_v5  ;;  %v4854_v11 = vld [vmem:[#allocation13_spill] sm:$0xff] }
 0x18a   : > { %v1423_v6 = vmin.f32 %v1391_v61, 6.0  ;;  %v1361_v42 = vadd.f32 %v3772_v36, %v1322_v38  ;;  %v1180_v20 = vpop.permute.xlu1 %1179  ;;  %v1200_v34 = vpop.permute.xlu0 %1199  ;;  %v1061_v18 = vmul.f32 %v3598_v25, %v3734_v49  ;;  %v897_v37 = vadd.f32 %v865_v59, %v3830_v16 }
 0x18b   : > { %1451 = vst.msk [vmem:[#allocation2 + $0xc1] sm:$0xff] %vm389_vm0, %v1418_v22  ;;  %v1388_v46 = vmax.f32 %v1356_v2, 0.0  ;;  %v1319_v4 = vmul.f32 %v3761_v56, %v1280_v43  ;;  %v1324_v27 = vmul.f32 %v3761_v56, %v1285_v7  ;;  %v1250_v13 = vmul.f32 %v3742_v1, %v1180_v20  ;;  %v4856_v43 = vld [vmem:[#allocation19_spill] sm:$0xff] }
 0x18c   : > { %1456 = vst.msk [vmem:[#allocation2 + $0xf9] sm:$0xff] %vm389_vm0, %v1423_v6  ;;  %v1393_v55 = vmax.f32 %v1361_v42, 0.0  ;;  %v1255_v0 = vmul.f32 %v3742_v1, %v1200_v34  ;;  %v1063_v19 = vmul.f32 %v3598_v25, %v3749_v26  ;;  %v899_v3 = vadd.f32 %v867_v45, %v671_v32 }
 0x18d   : > { %v1420_v8 = vmin.f32 %v1388_v46, 6.0  ;;  %v1358_v48 = vadd.f32 %v3772_v36, %v1319_v4  ;;  %v1363_v41 = vadd.f32 %v3772_v36, %v1324_v27  ;;  %v1282_v52 = vadd.f32 %v1250_v13, %v3700_v15 }
 0x18e   : > { %v1425_v47 = vmin.f32 %v1393_v55, 6.0  ;;  %v1287_v62 = vadd.f32 %v1255_v0, %v1091_v35  ;;  %v1188_v49 = vpop.permute.xlu1 %1187  ;;  %v1208_v28 = vpop.permute.xlu0 %1207  ;;  %v1093_v12 = vadd.f32 %v1061_v18, %v897_v37  ;;  %v869_v5 = vmul.f32 %v3579_v51, %v4853_v58  ;;  %v4857_v55 = vld [vmem:[#allocation20_spill] sm:$0xff] }
 0x18f   : > { %1453 = vst.msk [vmem:[#allocation2 + $0xd9] sm:$0xff] %vm389_vm0, %v1420_v8  ;;  %v1390_v21 = vmax.f32 %v1358_v48, 0.0  ;;  %v1395_v9 = vmax.f32 %v1363_v41, 0.0  ;;  %v1321_v31 = vmul.f32 %v3761_v56, %v1282_v52  ;;  %v1252_v54 = vmul.f32 %v3742_v1, %v1188_v49 }
 0x190   : > { %1458 = vst.msk [vmem:[#allocation2 + $0x111] sm:$0xff] %vm389_vm0, %v1425_v47  ;;  %v1326_v15 = vmul.f32 %v3761_v56, %v1287_v62  ;;  %v1257_v26 = vmul.f32 %v3742_v1, %v1208_v28  ;;  %v1095_v44 = vadd.f32 %v1063_v19, %v899_v3  ;;  %v673_v51 = vmul.f32 %v3369_v57, %v4854_v11 }
 0x191   : > { %v1422_v16 = vmin.f32 %v1390_v21, 6.0  ;;  %v1427_v40 = vmin.f32 %v1395_v9, 6.0  ;;  %v1360_v29 = vadd.f32 %v3772_v36, %v1321_v31  ;;  %v1284_v33 = vadd.f32 %v1252_v54, %v3709_v17  ;;  %v4858_v9 = vld [vmem:[#allocation21_spill] sm:$0xff] }
 0x192   : > { %v1365_v14 = vadd.f32 %v3772_v36, %v1326_v15  ;;  %v1289_v32 = vadd.f32 %v1257_v26, %v1093_v12  ;;  %v1196_v39 = vpop.permute.xlu1 %1195  ;;  %v1216_v63 = vpop.permute.xlu0 %1215  ;;  %v1065_v60 = vmul.f32 %v3598_v25, %v4855_v10  ;;  %v901_v59 = vadd.f32 %v869_v5, %v673_v51 }
 0x193   : > { %1455 = vst.msk [vmem:[#allocation2 + $0xf1] sm:$0xff] %vm389_vm0, %v1422_v16  ;;  %1460 = vst.msk [vmem:[#allocation2 + $0x129] sm:$0xff] %vm389_vm0, %v1427_v40  ;;  %v1392_v23 = vmax.f32 %v1360_v29, 0.0  ;;  %v1323_v30 = vmul.f32 %v3761_v56, %v1284_v33  ;;  %v1254_v53 = vmul.f32 %v3742_v1, %v1196_v39  ;;  %v1259_v17 = vmul.f32 %v3742_v1, %v1216_v63  ;;  %v4859_v33 = vld [vmem:[#allocation22_spill] sm:$0xff] }
 0x194   : > { %v1397_v61 = vmax.f32 %v1365_v14, 0.0  ;;  %v1328_v38 = vmul.f32 %v3761_v56, %v1289_v32  ;;  %v1097_v46 = vadd.f32 %v1065_v60, %v901_v59 }
 0x195   : > { %v1424_v22 = vmin.f32 %v1392_v23, 6.0  ;;  %v1362_v2 = vadd.f32 %v3772_v36, %v1323_v30  ;;  %v1286_v7 = vadd.f32 %v1254_v53, %v4856_v43  ;;  %v1291_v50 = vadd.f32 %v1259_v17, %v1095_v44 }
 0x196   : > { %v1429_v24 = vmin.f32 %v1397_v61, 6.0  ;;  %v1367_v45 = vadd.f32 %v3772_v36, %v1328_v38  ;;  %v1204_v6 = vpop.permute.xlu1 %1203  ;;  %v1224_v42 = vpop.permute.xlu0 %1223 }
 0x197   : > { %1457 = vst.msk [vmem:[#allocation2 + $0x109] sm:$0xff] %vm389_vm0, %v1424_v22  ;;  %v1394_v57 = vmax.f32 %v1362_v2, 0.0  ;;  %v1325_v25 = vmul.f32 %v3761_v56, %v1286_v7  ;;  %v1330_v20 = vmul.f32 %v3761_v56, %v1291_v50  ;;  %v1256_v34 = vmul.f32 %v3742_v1, %v1204_v6 }
 0x198   : > { %1462 = vst.msk [vmem:[#allocation2 + $0x141] sm:$0xff] %vm389_vm0, %v1429_v24  ;;  %v1399_v4 = vmax.f32 %v1367_v45, 0.0  ;;  %v1261_v27 = vmul.f32 %v3742_v1, %v1224_v42 }
 0x199   : > { %v1426_v13 = vmin.f32 %v1394_v57, 6.0  ;;  %v1364_v35 = vadd.f32 %v3772_v36, %v1325_v25  ;;  %v1369_v18 = vadd.f32 %v3772_v36, %v1330_v20  ;;  %v1288_v0 = vadd.f32 %v1256_v34, %v4857_v55 }
 0x19a   : > { %v1431_v8 = vmin.f32 %v1399_v4, 6.0  ;;  %v1293_v48 = vadd.f32 %v1261_v27, %v1097_v46  ;;  %v1212_v41 = vpop.permute.xlu1 %1211 }
 0x19b   : > { %1459 = vst.msk [vmem:[#allocation2 + $0x121] sm:$0xff] %vm389_vm0, %v1426_v13  ;;  %v1396_v52 = vmax.f32 %v1364_v35, 0.0  ;;  %v1401_v37 = vmax.f32 %v1369_v18, 0.0  ;;  %v1327_v19 = vmul.f32 %v3761_v56, %v1288_v0  ;;  %v1258_v47 = vmul.f32 %v3742_v1, %v1212_v41 }
 0x19c   : > { %1464 = vst.msk [vmem:[#allocation2 + $0x159] sm:$0xff] %vm389_vm0, %v1431_v8  ;;  %v1332_v62 = vmul.f32 %v3761_v56, %v1293_v48 }
 0x19d   : > { %v1428_v49 = vmin.f32 %v1396_v52, 6.0  ;;  %v1433_v28 = vmin.f32 %v1401_v37, 6.0  ;;  %v1366_v21 = vadd.f32 %v3772_v36, %v1327_v19  ;;  %v1290_v31 = vadd.f32 %v1258_v47, %v4858_v9 }
 0x19e   : > { %v1371_v54 = vadd.f32 %v3772_v36, %v1332_v62  ;;  %v1220_v3 = vpop.permute.xlu1 %1219 }
 0x19f   : > { %1461 = vst.msk [vmem:[#allocation2 + $0x139] sm:$0xff] %vm389_vm0, %v1428_v49  ;;  %1466 = vst.msk [vmem:[#allocation2 + $0x171] sm:$0xff] %vm389_vm0, %v1433_v28  ;;  %v1398_v12 = vmax.f32 %v1366_v21, 0.0  ;;  %v1329_v15 = vmul.f32 %v3761_v56, %v1290_v31  ;;  %v1260_v26 = vmul.f32 %v3742_v1, %v1220_v3 }
 0x1a0   : > { %v1403_v16 = vmax.f32 %v1371_v54, 0.0 }
 0x1a1   : > { %v1430_v40 = vmin.f32 %v1398_v12, 6.0  ;;  %v1368_v29 = vadd.f32 %v3772_v36, %v1329_v15  ;;  %v1292_v58 = vadd.f32 %v1260_v26, %v4859_v33 }
 0x1a2   : > { %v1435_v5 = vmin.f32 %v1403_v16, 6.0 }
 0x1a3   : > { %1463 = vst.msk [vmem:[#allocation2 + $0x151] sm:$0xff] %vm389_vm0, %v1430_v40  ;;  %v1400_v44 = vmax.f32 %v1368_v29, 0.0  ;;  %v1331_v14 = vmul.f32 %v3761_v56, %v1292_v58 }
 0x1a4   : > { %1468 = vst.msk [vmem:[#allocation2 + $0x189] sm:$0xff] %vm389_vm0, %v1435_v5 }
 0x1a5   : > { %v1432_v32 = vmin.f32 %v1400_v44, 6.0  ;;  %v1370_v39 = vadd.f32 %v3772_v36, %v1331_v14 }
 0x1a7   : > { %1465 = vst.msk [vmem:[#allocation2 + $0x169] sm:$0xff] %vm389_vm0, %v1432_v32  ;;  %v1402_v1 = vmax.f32 %v1370_v39, 0.0 }
 0x1a9   : > { %v1434_v63 = vmin.f32 %v1402_v1, 6.0 }
 0x1ab   : > { %1467 = vst.msk [vmem:[#allocation2 + $0x181] sm:$0xff] %vm389_vm0, %v1434_v63 }
 0x1ac PF: > { %s2795_s24 = smul.u32 96, %s2980_s13  ;;  %v1483_v23 = vlaneseq  ;;  %v3003_v30 = vmov 0   ;;  %v1469_v56 = vld [vmem:[%s4808_s4] sm:$0x7]  ;;  %v1470_v36 = vld [vmem:[%s4808_s4 + $0x4] sm:$0x7] }
 0x1ad   : > { %2927 = vset.pattern.permute.xlu1 %v3003_v30  ;;  %2926 = vset.pattern.permute.xlu0 %v3003_v30  ;;  %v1471_v17 = vld [vmem:[%s4808_s4 + $0x8] sm:$0x7]  ;;  %s2856_s29 = sshll.u32 %s2980_s13, 6  ;;  %vm2669_vm2 = vcmask 31744  }
 0x1ae   : > { %v4020_v53 = vshrl.u32 %v1483_v23, 7  ;;  %s4040_s14 = scalar_lea.vmem [#allocation2], %s2795_s24 }
 0x1b0   : > { %v4032_v11 = vsub.s32 0, %v4020_v53  ;;  %v4035_v51 = vsub.s32 1, %v4020_v53  ;;  %v4038_v10 = vsub.s32 2, %v4020_v53 }
 0x1b2   : > { %v1477_v60 = vld [vmem:[%s4040_s14 + $0x18] sm:$0xff]  ;;  %v4046_v22 = vrot.slane %v1469_v56, %v4032_v11  ;;  %v4049_v2 = vrot.slane %v1469_v56, %v4035_v51  ;;  %v4052_v43 = vrot.slane %v1469_v56, %v4038_v10  ;;  %v4055_v7 = vld [vmem:[%s4040_s14 + $0x30] sm:$0xff]  ;;  %v4058_v50 = vrot.slane %v1470_v36, %v4032_v11  ;;  %v1475_v25 = vld [vmem:[%s4040_s14] sm:$0xff] }
 0x1b3   : > { %v1505_v61 = vld [vmem:[%s4040_s14 + $0x19] sm:$0xff]  ;;  %v4061_v59 = vld [vmem:[%s4040_s14 + $0x31] sm:$0xff]  ;;  %v4067_v45 = vrot.slane %v1470_v36, %v4035_v51  ;;  %v4070_v6 = vrot.slane %v1470_v36, %v4038_v10  ;;  %v4073_v42 = vrot.slane %v1471_v17, %v4032_v11  ;;  %v4076_v57 = vrot.slane %v1471_v17, %v4035_v51  ;;  %v1503_v20 = vld [vmem:[%s4040_s14 + $0x1] sm:$0xff] }
 0x1b4   : > { %v1533_v38 = vld [vmem:[%s4040_s14 + $0x1a] sm:$0xff]  ;;  %v4064_v24 = vld [vmem:[%s4040_s14 + $0x32] sm:$0xff]  ;;  %v1489_v34 = vmul.f32 %v4046_v22, %v1477_v60  ;;  %v1517_v46 = vmul.f32 %v4049_v2, %v1505_v61  ;;  %v4084_v27 = vld [vmem:[%s4040_s14 + $0x48] sm:$0xff]  ;;  %v1576_v18 = vmul.f32 %v4055_v7, %v4058_v50  ;;  %v4100_v41 = vrot.slane %v1471_v17, %v4038_v10 }
 0x1b5   : > { %v1545_v4 = vmul.f32 %v4052_v43, %v1533_v38  ;;  %v4087_v13 = vld [vmem:[%s4040_s14 + $0x49] sm:$0xff]  ;;  %v1604_v55 = vmul.f32 %v4061_v59, %v4067_v45  ;;  %v1632_v0 = vmul.f32 %v4064_v24, %v4070_v6  ;;  %v1487_v52 = vmul.f32 %v4046_v22, %v1475_v25  ;;  %v1478_v19 = vld [vmem:[%s4040_s14 + $0x20] sm:$0xff]  ;;  %v2801_v15 = vld [vmem:[%s4040_s14 + $0x38] sm:$0xff] }
 0x1b6   : > { %v1531_v35 = vld [vmem:[%s4040_s14 + $0x2] sm:$0xff]  ;;  %v1525_v8 = vadd.f32 %v1517_v46, %v1489_v34  ;;  %v4097_v48 = vld [vmem:[%s4040_s14 + $0x4a] sm:$0xff]  ;;  %v1515_v37 = vmul.f32 %v4049_v2, %v1503_v20  ;;  %v1663_v62 = vmul.f32 %v4084_v27, %v4073_v42  ;;  %v1691_v49 = vmul.f32 %v4087_v13, %v4076_v57  ;;  %v2809_v33 = vld [vmem:[%s4040_s14 + $0x39] sm:$0xff] }
 0x1b7   : > { %v1506_v47 = vld [vmem:[%s4040_s14 + $0x21] sm:$0xff]  ;;  %v1543_v28 = vmul.f32 %v4052_v43, %v1531_v35  ;;  %v1574_v21 = vmul.f32 %v4058_v50, %v1477_v60  ;;  %v1602_v3 = vmul.f32 %v4067_v45, %v1505_v61  ;;  %v1630_v12 = vmul.f32 %v4070_v6, %v1533_v38  ;;  %v1504_v39 = vld [vmem:[%s4040_s14 + $0x9] sm:$0xff]  ;;  %v4141_v34 = vld [vmem:[%s4040_s14 + $0x51] sm:$0xff] }
 0x1b8   : > { %v1534_v9 = vld [vmem:[%s4040_s14 + $0x22] sm:$0xff]  ;;  %v1553_v31 = vadd.f32 %v1545_v4, %v1525_v8  ;;  %v1523_v54 = vadd.f32 %v1515_v37, %v1487_v52  ;;  %v1719_v26 = vmul.f32 %v4097_v48, %v4100_v41  ;;  %v1661_v16 = vmul.f32 %v4055_v7, %v4073_v42  ;;  %v1532_v1 = vld [vmem:[%s4040_s14 + $0xa] sm:$0xff]  ;;  %v2817_v36 = vld [vmem:[%s4040_s14 + $0x3a] sm:$0xff] }
 0x1b9   : > { %v1490_v40 = vmul.f32 %v4046_v22, %v1478_v19  ;;  %v1518_v29 = vmul.f32 %v4049_v2, %v1506_v47  ;;  %v1689_v44 = vmul.f32 %v4061_v59, %v4076_v57  ;;  %v1546_v14 = vmul.f32 %v4052_v43, %v1534_v9  ;;  %v1476_v32 = vld [vmem:[%s4040_s14 + $0x8] sm:$0xff]  ;;  %v4135_v17 = vld [vmem:[%s4040_s14 + $0x50] sm:$0xff] }
 0x1ba   : > { %v1584_v58 = vadd.f32 %v1576_v18, %v1553_v31  ;;  %v1551_v5 = vadd.f32 %v1543_v28, %v1523_v54  ;;  %v1717_v63 = vmul.f32 %v4064_v24, %v4100_v41  ;;  %v1577_v30 = vmul.f32 %v2801_v15, %v4058_v50  ;;  %v4144_v46 = vld [vmem:[%s4040_s14 + $0x52] sm:$0xff] }
 0x1bb   : > { %v1526_v23 = vadd.f32 %v1518_v29, %v1490_v40  ;;  %v1605_v56 = vmul.f32 %v2809_v33, %v4067_v45  ;;  %v1633_v38 = vmul.f32 %v2817_v36, %v4070_v6  ;;  %v1664_v25 = vmul.f32 %v4135_v17, %v4073_v42 }
 0x1bc   : > { %v1612_v60 = vadd.f32 %v1604_v55, %v1584_v58  ;;  %v1582_v61 = vadd.f32 %v1574_v21, %v1551_v5  ;;  %v1488_v4 = vmul.f32 %v4046_v22, %v1476_v32  ;;  %v1516_v35 = vmul.f32 %v4049_v2, %v1504_v39 }
 0x1bd   : > { %v1554_v20 = vadd.f32 %v1546_v14, %v1526_v23  ;;  %v1544_v18 = vmul.f32 %v4052_v43, %v1532_v1  ;;  %v1692_v55 = vmul.f32 %v4141_v34, %v4076_v57  ;;  %v1720_v37 = vmul.f32 %v4144_v46, %v4100_v41 }
 0x1be   : > { %v1640_v8 = vadd.f32 %v1632_v0, %v1612_v60  ;;  %v1610_v52 = vadd.f32 %v1602_v3, %v1582_v61  ;;  %v1524_v21 = vadd.f32 %v1516_v35, %v1488_v4  ;;  %v1575_v31 = vmul.f32 %v4058_v50, %v1478_v19  ;;  %v2829_v4 = vld [vmem:[%s4040_s14 + $0x68] sm:$0xff] }
 0x1bf   : > { %v1585_v28 = vadd.f32 %v1577_v30, %v1554_v20  ;;  %v1603_v54 = vmul.f32 %v4067_v45, %v1506_v47  ;;  %v1631_v58 = vmul.f32 %v4070_v6, %v1534_v9  ;;  %v1662_v5 = vmul.f32 %v2801_v15, %v4073_v42  ;;  %v4164_v47 = vld [vmem:[%s4809_s5] ss:$0 sm:$0xff] }
 0x1c0   : > { %v1671_v40 = vadd.f32 %v1663_v62, %v1640_v8  ;;  %v1638_v29 = vadd.f32 %v1630_v12, %v1610_v52  ;;  %v1552_v3 = vadd.f32 %v1544_v18, %v1524_v21  ;;  %v1492_v14 = vmul.f32 %v2801_v15, %v4046_v22 }
 0x1c1   : > { %v1613_v0 = vadd.f32 %v1605_v56, %v1585_v28  ;;  %v1520_v32 = vmul.f32 %v2809_v33, %v4049_v2  ;;  %v1690_v23 = vmul.f32 %v2809_v33, %v4076_v57  ;;  %v1548_v19 = vmul.f32 %v2817_v36, %v4052_v43  ;;  %v4174_v33 = vld [vmem:[%s4810_s6] ss:$0 sm:$0xff] }
 0x1c2   : > { %v1699_v39 = vadd.f32 %v1691_v49, %v1671_v40  ;;  %v1669_v1 = vadd.f32 %v1661_v16, %v1638_v29  ;;  %v1583_v9 = vadd.f32 %v1575_v31, %v1552_v3  ;;  %v1579_v15 = vmul.f32 %v4135_v17, %v4058_v50 }
 0x1c3   : > { %v1641_v62 = vadd.f32 %v1633_v38, %v1613_v0  ;;  %v1528_v12 = vadd.f32 %v1520_v32, %v1492_v14  ;;  %v1718_v49 = vmul.f32 %v2817_v36, %v4100_v41  ;;  %v1607_v16 = vmul.f32 %v4141_v34, %v4067_v45 }
 0x1c4   : > { %v1727_v30 = vadd.f32 %v1719_v26, %v1699_v39  ;;  %v1697_v56 = vadd.f32 %v1689_v44, %v1669_v1  ;;  %v1611_v61 = vadd.f32 %v1603_v54, %v1583_v9  ;;  %v1635_v20 = vmul.f32 %v4144_v46, %v4070_v6  ;;  %v2845_v39 = vld [vmem:[%s4040_s14 + $0x6a] sm:$0xff] }
 0x1c5   : > { %v1672_v60 = vadd.f32 %v1664_v25, %v1641_v62  ;;  %v1556_v38 = vadd.f32 %v1548_v19, %v1528_v12  ;;  %v1666_v36 = vmul.f32 %v2829_v4, %v4073_v42  ;;  %v1491_v35 = vmul.f32 %v4055_v7, %v4046_v22 }
 0x1c6   : > { %v1742_v26 = vmul.f32 %v4164_v47, %v1727_v30  ;;  %v1725_v44 = vadd.f32 %v1717_v63, %v1697_v56  ;;  %v1639_v8 = vadd.f32 %v1631_v58, %v1611_v61  ;;  %v1519_v25 = vmul.f32 %v4061_v59, %v4049_v2  ;;  %v2828_v56 = vld [vmem:[%s4040_s14 + $0x60] sm:$0xff] }
 0x1c7   : > { %v1700_v18 = vadd.f32 %v1692_v55, %v1672_v60  ;;  %v1587_v52 = vadd.f32 %v1579_v15, %v1556_v38  ;;  %v1547_v31 = vmul.f32 %v4064_v24, %v4052_v43  ;;  %v1578_v63 = vmul.f32 %v4084_v27, %v4058_v50  ;;  %v2837_v55 = vld [vmem:[%s4040_s14 + $0x69] sm:$0xff] }
 0x1c8   : > { %v1757_v28 = vadd.f32 %v4174_v33, %v1742_v26  ;;  %v1740_v21 = vmul.f32 %v4164_v47, %v1725_v44  ;;  %v1670_v40 = vadd.f32 %v1662_v5, %v1639_v8  ;;  %v1527_v29 = vadd.f32 %v1519_v25, %v1491_v35  ;;  %v2836_v44 = vld [vmem:[%s4040_s14 + $0x61] sm:$0xff] }
 0x1c9   : > { %v1728_v54 = vadd.f32 %v1720_v37, %v1700_v18  ;;  %v1615_v7 = vadd.f32 %v1607_v16, %v1587_v52  ;;  %v1694_v59 = vmul.f32 %v2837_v55, %v4076_v57  ;;  %v1606_v3 = vmul.f32 %v4087_v13, %v4067_v45 }
 0x1ca   : > { %v1765_v58 = vmax.f32 %v1757_v28, 0.0  ;;  %v1755_v0 = vadd.f32 %v4174_v33, %v1740_v21  ;;  %v1698_v24 = vadd.f32 %v1690_v23, %v1670_v40  ;;  %v1555_v1 = vadd.f32 %v1547_v31, %v1527_v29  ;;  %v2844_v28 = vld [vmem:[%s4040_s14 + $0x62] sm:$0xff] }
 0x1cb   : > { %v1743_v14 = vmul.f32 %v4164_v47, %v1728_v54  ;;  %v1643_v32 = vadd.f32 %v1635_v20, %v1615_v7  ;;  %v1722_v19 = vmul.f32 %v2845_v39, %v4100_v41  ;;  %v1634_v62 = vmul.f32 %v4097_v48, %v4070_v6  ;;  %v2831_v7 = vld [vmem:[%s4040_s14 + $0x80] sm:$0xff] }
 0x1cc   : > { %v4198_v37 = vmin.f32 %v1765_v58, 6.0  ;;  %v1763_v5 = vmax.f32 %v1755_v0, 0.0  ;;  %v1726_v12 = vadd.f32 %v1718_v49, %v1698_v24  ;;  %v1586_v30 = vadd.f32 %v1578_v63, %v1555_v1  ;;  %v2839_v24 = vld [vmem:[%s4040_s14 + $0x81] sm:$0xff] }
 0x1cd   : > { %v1758_v9 = vadd.f32 %v4174_v33, %v1743_v14  ;;  %v1674_v15 = vadd.f32 %v1666_v36, %v1643_v32  ;;  %v1665_v16 = vmul.f32 %v2828_v56, %v4073_v42  ;;  %v1494_v60 = vmul.f32 %v4135_v17, %v4046_v22 }
 0x1ce   : > { %1793 = vperm.xlu1 %2927, %v4198_v37   ;;  %v4206_v23 = vmin.f32 %v1763_v5, 6.0  ;;  %v1522_v61 = vmul.f32 %v4141_v34, %v4049_v2  ;;  %v1741_v20 = vmul.f32 %v4164_v47, %v1726_v12  ;;  %v1614_v26 = vadd.f32 %v1606_v3, %v1586_v30  ;;  %v2830_v12 = vld [vmem:[%s4040_s14 + $0x78] sm:$0xff] }
 0x1cf   : > { %v1766_v38 = vmax.f32 %v1758_v9, 0.0  ;;  %v1702_v49 = vadd.f32 %v1694_v59, %v1674_v15  ;;  %v1693_v36 = vmul.f32 %v2836_v44, %v4076_v57  ;;  %v1550_v18 = vmul.f32 %v4144_v46, %v4052_v43 }
 0x1d0   : > { %1783 = vperm.xlu0 %2926, %v4206_v23   ;;  %v1530_v35 = vadd.f32 %v1522_v61, %v1494_v60  ;;  %v1581_v17 = vmul.f32 %v2829_v4, %v4058_v50  ;;  %v1756_v34 = vadd.f32 %v4174_v33, %v1741_v20  ;;  %v1642_v25 = vadd.f32 %v1634_v62, %v1614_v26  ;;  %v2838_v60 = vld [vmem:[%s4040_s14 + $0x79] sm:$0xff] }
 0x1d1   : > { %v4220_v8 = vmin.f32 %v1766_v38, 6.0  ;;  %v1730_v52 = vadd.f32 %v1722_v19, %v1702_v49  ;;  %v1721_v21 = vmul.f32 %v2844_v28, %v4100_v41  ;;  %v1609_v63 = vmul.f32 %v2837_v55, %v4067_v45  ;;  %v2846_v49 = vld [vmem:[%s4040_s14 + $0x7a] sm:$0xff] }
 0x1d2   : > { %v1558_v31 = vadd.f32 %v1550_v18, %v1530_v35  ;;  %v1764_v54 = vmax.f32 %v1756_v34, 0.0  ;;  %v1673_v40 = vadd.f32 %v1665_v16, %v1642_v25  ;;  %v1637_v4 = vmul.f32 %v2845_v39, %v4070_v6 }
 0x1d3   : > { %1798 = vperm.xlu1 %2927, %v4220_v8   ;;  %v1745_v46 = vmul.f32 %v4164_v47, %v1730_v52  ;;  %v1493_v58 = vmul.f32 %v4084_v27, %v4046_v22  ;;  %v1521_v0 = vmul.f32 %v4087_v13, %v4049_v2  ;;  %v1549_v55 = vmul.f32 %v4097_v48, %v4052_v43  ;;  %v2847_v27 = vld [vmem:[%s4040_s14 + $0x82] sm:$0xff]  ;;  %s4700_s14 = scalar_lea.vmem %s3110_s25, %s2856_s29 }
 0x1d4   : > { %v1589_v29 = vadd.f32 %v1581_v17, %v1558_v31  ;;  %v4236_v59 = vmin.f32 %v1764_v54, 6.0  ;;  %v1701_v14 = vadd.f32 %v1693_v36, %v1673_v40  ;;  %v1668_v39 = vmul.f32 %v2831_v7, %v4073_v42 }
 0x1d5   : > { %v1760_v3 = vadd.f32 %v4174_v33, %v1745_v46  ;;  %v1529_v1 = vadd.f32 %v1521_v0, %v1493_v58  ;;  %v1580_v5 = vmul.f32 %v2828_v56, %v4058_v50  ;;  %v1696_v13 = vmul.f32 %v2839_v24, %v4076_v57 }
 0x1d6   : > { %v1617_v32 = vadd.f32 %v1609_v63, %v1589_v29  ;;  %1788 = vperm.xlu0 %2926, %v4236_v59   ;;  %v1729_v2 = vadd.f32 %v1721_v21, %v1701_v14  ;;  %v1608_v19 = vmul.f32 %v2836_v44, %v4067_v45  ;;  %v1724_v50 = vmul.f32 %v2847_v27, %v4100_v41 }
 0x1d7   : > { %v1768_v22 = vmax.f32 %v1760_v3, 0.0  ;;  %v1557_v48 = vadd.f32 %v1549_v55, %v1529_v1  ;;  %v1636_v56 = vmul.f32 %v2844_v28, %v4070_v6  ;;  %v1667_v45 = vmul.f32 %v2830_v12, %v4073_v42 }
 0x1d8   : > { %v1645_v43 = vadd.f32 %v1637_v4, %v1617_v32  ;;  %v1744_v9 = vmul.f32 %v4164_v47, %v1729_v2  ;;  %v1695_v36 = vmul.f32 %v2838_v60, %v4076_v57  ;;  %v1723_v17 = vmul.f32 %v2846_v49, %v4100_v41  ;;  %v4396_v49 = vld [vmem:[%s4811_s7] sm:$0xff] }
 0x1d9   : > { %v4246_v62 = vmin.f32 %v1768_v22, 6.0  ;;  %v1588_v30 = vadd.f32 %v1580_v5, %v1557_v48  ;;  %v3004_v54 = vmov 1   ;;  %v3005_v41 = vmov 2  }
 0x1da   : > { %v1676_v15 = vadd.f32 %v1668_v39, %v1645_v43  ;;  %v1759_v16 = vadd.f32 %v4174_v33, %v1744_v9  ;;  %v3008_v46 = vmov 5   ;;  %v3009_v40 = vmov 6  }
 0x1db   : > { %1808 = vperm.xlu1 %2927, %v4246_v62   ;;  %v1616_v38 = vadd.f32 %v1608_v19, %v1588_v30  ;;  %v3010_v4 = vmov 7   ;;  %v3011_v0 = vmov 8   ;;  %v3012_v32 = vmov 9  }
 0x1dc   : > { %v1704_v61 = vadd.f32 %v1696_v13, %v1676_v15  ;;  %v1767_v20 = vmax.f32 %v1759_v16, 0.0  ;;  %v3013_v48 = vmov 10  }
 0x1dd   : > { %v1644_v44 = vadd.f32 %v1636_v56, %v1616_v38  ;;  %v3014_v56 = vmov 11  }
 0x1de   : > { %v1732_v26 = vadd.f32 %v1724_v50, %v1704_v61  ;;  %v4258_v35 = vmin.f32 %v1767_v20, 6.0 }
 0x1df   : > { %v1675_v6 = vadd.f32 %v1667_v45, %v1644_v44 }
 0x1e0   : > { %v1747_v18 = vmul.f32 %v4164_v47, %v1732_v26  ;;  %1803 = vperm.xlu0 %2926, %v4258_v35   ;;  %v4401_v26 = vrot.slane %v4396_v49, %v4035_v51 }
 0x1e1   : > { %v1703_v52 = vadd.f32 %v1695_v36, %v1675_v6  ;;  %v4408_v36 = vrot.slane %v4396_v49, %v4032_v11  ;;  %v1979_v6 = vsub.s32 3, %v4020_v53 }
 0x1e2   : > { %v1762_v34 = vadd.f32 %v4174_v33, %v1747_v18  ;;  %v4412_v18 = vrot.slane %v4396_v49, %v4038_v10 }
 0x1e3   : > { %v1731_v42 = vadd.f32 %v1723_v17, %v1703_v52 }
 0x1e4   : > { %v1770_v25 = vmax.f32 %v1762_v34, 0.0  ;;  %v3015_v34 = vmov 12  }
 0x1e5   : > { %v1746_v21 = vmul.f32 %v4164_v47, %v1731_v42  ;;  %v3006_v47 = vmov 3  }
 0x1e6   : > { %v4264_v28 = vmin.f32 %v1770_v25, 6.0 }
 0x1e7   : > { %v1761_v57 = vadd.f32 %v4174_v33, %v1746_v21  ;;  %v3007_v33 = vmov 4   ;;  %v2031_v21 = vsub.s32 4, %v4020_v53 }
 0x1e8   : > { %1818 = vperm.xlu1 %2927, %v4264_v28  }
 0x1e9   : > { %v1769_v31 = vmax.f32 %v1761_v57, 0.0 }
 0x1eb   : > { %v4269_v63 = vmin.f32 %v1769_v31, 6.0  ;;  %v4428_v31 = vrot.slane %v4396_v49, %v1979_v6 }
 0x1ec   : > { %2929 = vset.pattern.permute.xlu1 %v3004_v54 }
 0x1ed   : > { %1846 = vperm.xlu1 %2929, %v4236_v59   ;;  %1813 = vperm.xlu0 %2926, %v4269_v63  }
 0x1f1   : > { %1850 = vperm.xlu1 %2929, %v4198_v37   ;;  %2928 = vset.pattern.permute.xlu0 %v3004_v54 }
 0x1f2   : > { %1842 = vperm.xlu0 %2928, %v4206_v23  }
 0x1f5   : > { %1858 = vperm.xlu1 %2929, %v4258_v35  }
 0x1f6   : > { %1854 = vperm.xlu0 %2928, %v4220_v8  }
 0x1f9   : > { %1866 = vperm.xlu1 %2929, %v4269_v63  }
 0x1fa   : > { %1862 = vperm.xlu0 %2928, %v4246_v62  }
 0x1fd   : > { %2930 = vset.pattern.permute.xlu1 %v3005_v41 }
 0x1fe   : > { %1894 = vperm.xlu1 %2930, %v4206_v23   ;;  %1870 = vperm.xlu0 %2928, %v4264_v28  }
 0x202   : > { %1902 = vperm.xlu1 %2930, %v4198_v37   ;;  %2931 = vset.pattern.permute.xlu0 %v3005_v41 }
 0x203   : > { %1898 = vperm.xlu0 %2931, %v4236_v59  }
 0x206   : > { %1906 = vperm.xlu1 %2930, %v4220_v8  }
 0x207   : > { %1910 = vperm.xlu0 %2931, %v4258_v35  }
 0x20a   : > { %1914 = vperm.xlu1 %2930, %v4246_v62  }
 0x20b   : > { %1918 = vperm.xlu0 %2931, %v4269_v63  }
 0x20e   : > { %1922 = vperm.xlu1 %2930, %v4264_v28  }
 0x20f   : > { %2932 = vset.pattern.permute.xlu0 %v3006_v47 }
 0x210   : > { %1946 = vperm.xlu0 %2932, %v4206_v23  }
 0x212   : > { %2933 = vset.pattern.permute.xlu1 %v3006_v47 }
 0x213   : > { %1950 = vperm.xlu1 %2933, %v4236_v59  }
 0x214   : > { %1958 = vperm.xlu0 %2932, %v4220_v8  }
 0x217   : > { %1954 = vperm.xlu1 %2933, %v4198_v37  }
 0x218   : > { %1966 = vperm.xlu0 %2932, %v4246_v62  }
 0x21b   : > { %1962 = vperm.xlu1 %2933, %v4258_v35  }
 0x21c   : > { %1974 = vperm.xlu0 %2932, %v4264_v28  }
 0x21f   : > { %1970 = vperm.xlu1 %2933, %v4269_v63  }
 0x220   : > { %2935 = vset.pattern.permute.xlu0 %v3007_v33 }
 0x221   : > { %2002 = vperm.xlu0 %2935, %v4236_v59  }
 0x223   : > { %2934 = vset.pattern.permute.xlu1 %v3007_v33 }
 0x224   : > { %1998 = vperm.xlu1 %2934, %v4206_v23  }
 0x225   : > { %2014 = vperm.xlu0 %2935, %v4258_v35  }
 0x228   : > { %2006 = vperm.xlu1 %2934, %v4198_v37  }
 0x229   : > { %2022 = vperm.xlu0 %2935, %v4269_v63  }
 0x22c   : > { %2010 = vperm.xlu1 %2934, %v4220_v8  }
 0x22d   : > { %2936 = vset.pattern.permute.xlu0 %v3008_v46 }
 0x22e   : > { %2050 = vperm.xlu0 %2936, %v4206_v23  }
 0x230   : > { %2018 = vperm.xlu1 %2934, %v4246_v62  }
 0x232   : > { %2062 = vperm.xlu0 %2936, %v4220_v8  }
 0x234   : > { %2026 = vperm.xlu1 %2934, %v4264_v28  }
 0x236   : > { %2070 = vperm.xlu0 %2936, %v4246_v62  }
 0x238   : > { %2937 = vset.pattern.permute.xlu1 %v3008_v46 }
 0x239   : > { %2054 = vperm.xlu1 %2937, %v4236_v59  }
 0x23a   : > { %2078 = vperm.xlu0 %2936, %v4264_v28  }
 0x23d   : > { %2058 = vperm.xlu1 %2937, %v4198_v37  }
 0x23e   : > { %2939 = vset.pattern.permute.xlu0 %v3009_v40 }
 0x23f   : > { %2106 = vperm.xlu0 %2939, %v4236_v59  }
 0x241   : > { %2066 = vperm.xlu1 %2937, %v4258_v35  }
 0x243   : > { %2118 = vperm.xlu0 %2939, %v4258_v35  }
 0x245   : > { %2074 = vperm.xlu1 %2937, %v4269_v63  }
 0x247   : > { %2126 = vperm.xlu0 %2939, %v4269_v63  }
 0x249   : > { %2938 = vset.pattern.permute.xlu1 %v3009_v40  ;;  %v4439_v40 = vrot.slane %v4396_v49, %v2031_v21 }
 0x24a   : > { %2102 = vperm.xlu1 %2938, %v4206_v23  }
 0x24b   : > { %2940 = vset.pattern.permute.xlu0 %v3010_v4 }
 0x24c   : > { %2154 = vperm.xlu0 %2940, %v4206_v23  }
 0x24d   : > { %v4321_v7 = vpop.permute.xlu1 %1793 }
 0x24e   : > { %2110 = vperm.xlu1 %2938, %v4198_v37  }
 0x24f   : > { %v4326_v29 = vpop.permute.xlu0 %1783 }
 0x250   : > { %2166 = vperm.xlu0 %2940, %v4220_v8  }
 0x252   : > { %2114 = vperm.xlu1 %2938, %v4220_v8   ;;  %v4328_v58 = vpop.permute.xlu1 %1798 }
 0x254   : > { %2174 = vperm.xlu0 %2940, %v4246_v62  }
 0x255   : > { %v4332_v55 = vpop.permute.xlu0 %1788 }
 0x256   : > { %2122 = vperm.xlu1 %2938, %v4246_v62   ;;  %v1826_v52 = vmul.f32 %v4408_v36, %v4332_v55 }
 0x258   : > { %2182 = vperm.xlu0 %2940, %v4264_v28  }
 0x25a   : > { %2130 = vperm.xlu1 %2938, %v4264_v28   ;;  %v4334_v3 = vpop.permute.xlu1 %1808 }
 0x25c   : > { %2943 = vset.pattern.permute.xlu0 %v3011_v0 }
 0x25d   : > { %2210 = vperm.xlu0 %2943, %v4236_v59  }
 0x25e   : > { %2941 = vset.pattern.permute.xlu1 %v3010_v4 }
 0x25f   : > { %2158 = vperm.xlu1 %2941, %v4236_v59   ;;  %v4339_v14 = vpop.permute.xlu0 %1803 }
 0x260   : > { %v1829_v41 = vmul.f32 %v4408_v36, %v4339_v14 }
 0x261   : > { %2222 = vperm.xlu0 %2943, %v4258_v35  }
 0x263   : > { %2162 = vperm.xlu1 %2941, %v4198_v37  }
 0x265   : > { %2230 = vperm.xlu0 %2943, %v4269_v63  }
 0x267   : > { %v4341_v24 = vpop.permute.xlu1 %1818  ;;  %2170 = vperm.xlu1 %2941, %v4258_v35  }
 0x269   : > { %2944 = vset.pattern.permute.xlu0 %v3012_v32 }
 0x26a   : > { %2258 = vperm.xlu0 %2944, %v4206_v23  }
 0x26b   : > { %2178 = vperm.xlu1 %2941, %v4269_v63  }
 0x26c   : > { %v1847_v39 = vpop.permute.xlu1 %1846  ;;  %v4346_v1 = vpop.permute.xlu0 %1813 }
 0x26d   : > { %v1878_v25 = vmul.f32 %v4401_v26, %v1847_v39  ;;  %v1831_v14 = vmul.f32 %v4408_v36, %v4346_v1 }
 0x26e   : > { %2270 = vperm.xlu0 %2944, %v4220_v8  }
 0x26f   : > { %2942 = vset.pattern.permute.xlu1 %v3011_v0  ;;  %v1886_v33 = vadd.f32 %v1878_v25, %v1826_v52 }
 0x270   : > { %v4349_v5 = vpop.permute.xlu1 %1850  ;;  %2206 = vperm.xlu1 %2942, %v4206_v23  }
 0x271   : > { %v4352_v22 = vpop.permute.xlu0 %1842 }
 0x272   : > { %2278 = vperm.xlu0 %2944, %v4246_v62   ;;  %v1877_v1 = vmul.f32 %v4401_v26, %v4352_v22  ;;  %v1828_v22 = vmul.f32 %v4408_v36, %v4328_v58 }
 0x274   : > { %v1859_v2 = vpop.permute.xlu1 %1858  ;;  %2214 = vperm.xlu1 %2942, %v4198_v37  }
 0x275   : > { %v4356_v27 = vpop.permute.xlu0 %1854  ;;  %v1881_v47 = vmul.f32 %v4401_v26, %v1859_v2 }
 0x276   : > { %2286 = vperm.xlu0 %2944, %v4264_v28  }
 0x278   : > { %v4359_v43 = vpop.permute.xlu1 %1866  ;;  %2218 = vperm.xlu1 %2942, %v4220_v8  }
 0x279   : > { %v4362_v13 = vpop.permute.xlu0 %1862  ;;  %v1883_v39 = vmul.f32 %v4401_v26, %v4359_v43 }
 0x27a   : > { %2947 = vset.pattern.permute.xlu0 %v3013_v48 }
 0x27b   : > { %2314 = vperm.xlu0 %2947, %v4236_v59  }
 0x27c   : > { %2226 = vperm.xlu1 %2942, %v4246_v62  }
 0x27d   : > { %v4366_v19 = vpop.permute.xlu1 %1894  ;;  %v4368_v9 = vpop.permute.xlu0 %1870 }
 0x27f   : > { %2326 = vperm.xlu0 %2947, %v4258_v35  }
 0x280   : > { %2234 = vperm.xlu1 %2942, %v4264_v28  }
 0x281   : > { %v4372_v12 = vpop.permute.xlu1 %1902 }
 0x282   : > { %v1899_v15 = vpop.permute.xlu0 %1898 }
 0x283   : > { %2334 = vperm.xlu0 %2947, %v4269_v63   ;;  %v1930_v57 = vmul.f32 %v4412_v18, %v1899_v15 }
 0x284   : > { %2945 = vset.pattern.permute.xlu1 %v3012_v32  ;;  %v1889_v32 = vadd.f32 %v1881_v47, %v1829_v41  ;;  %v1891_v41 = vadd.f32 %v1883_v39, %v1831_v14  ;;  %v2083_v14 = vsub.s32 5, %v4020_v53 }
 0x285   : > { %2262 = vperm.xlu1 %2945, %v4236_v59   ;;  %v4376_v50 = vpop.permute.xlu1 %1906  ;;  %v1938_v0 = vadd.f32 %v1930_v57, %v1886_v33 }
 0x286   : > { %v1911_v30 = vpop.permute.xlu0 %1910 }
 0x287   : > { %2948 = vset.pattern.permute.xlu0 %v3014_v56  ;;  %v1933_v55 = vmul.f32 %v4412_v18, %v1911_v30  ;;  %v1825_v30 = vmul.f32 %v4408_v36, %v4326_v29  ;;  %v3016_v29 = vmov 13  }
 0x288   : > { %2362 = vperm.xlu0 %2948, %v4206_v23  }
 0x289   : > { %2266 = vperm.xlu1 %2945, %v4198_v37   ;;  %v4380_v16 = vpop.permute.xlu1 %1914  ;;  %v1941_v25 = vadd.f32 %v1933_v55, %v1889_v32  ;;  %v1929_v55 = vmul.f32 %v4412_v18, %v4366_v19  ;;  %v1882_v19 = vmul.f32 %v4401_v26, %v4362_v13  ;;  %v1830_v13 = vmul.f32 %v4408_v36, %v4334_v3 }
 0x28a   : > { %v1919_v60 = vpop.permute.xlu0 %1918 }
 0x28b   : > { %v1935_v43 = vmul.f32 %v4412_v18, %v1919_v60  ;;  %v1885_v60 = vadd.f32 %v1877_v1, %v1825_v30 }
 0x28c   : > { %2374 = vperm.xlu0 %2948, %v4220_v8  }
 0x28d   : > { %2274 = vperm.xlu1 %2945, %v4258_v35   ;;  %v4384_v61 = vpop.permute.xlu1 %1922  ;;  %v1943_v32 = vadd.f32 %v1935_v43, %v1891_v41  ;;  %v1890_v41 = vadd.f32 %v1882_v19, %v1830_v13 }
 0x28f   : > { %v4387_v38 = vpop.permute.xlu0 %1946 }
 0x290   : > { %2382 = vperm.xlu0 %2948, %v4246_v62   ;;  %v1981_v58 = vmul.f32 %v4428_v31, %v4387_v38 }
 0x291   : > { %2282 = vperm.xlu1 %2945, %v4269_v63  }
 0x292   : > { %v1951_v45 = vpop.permute.xlu1 %1950 }
 0x293   : > { %v4391_v20 = vpop.permute.xlu0 %1958  ;;  %v1982_v46 = vmul.f32 %v4428_v31, %v1951_v45 }
 0x294   : > { %2390 = vperm.xlu0 %2948, %v4264_v28  }
 0x295   : > { %2946 = vset.pattern.permute.xlu1 %v3013_v48  ;;  %v1990_v48 = vadd.f32 %v1982_v46, %v1938_v0 }
 0x296   : > { %2310 = vperm.xlu1 %2946, %v4206_v23   ;;  %v4404_v44 = vpop.permute.xlu1 %1954 }
 0x297   : > { %v4415_v17 = vpop.permute.xlu0 %1966 }
 0x298   : > { %2951 = vset.pattern.permute.xlu0 %v3015_v34 }
 0x299   : > { %2418 = vperm.xlu0 %2951, %v4236_v59  }
 0x29a   : > { %2318 = vperm.xlu1 %2946, %v4198_v37   ;;  %v1963_v42 = vpop.permute.xlu1 %1962 }
 0x29b   : > { %v4430_v54 = vpop.permute.xlu0 %1974  ;;  %v1985_v15 = vmul.f32 %v4428_v31, %v1963_v42  ;;  %v1880_v42 = vmul.f32 %v4401_v26, %v4356_v27 }
 0x29c   : > { %v1988_v19 = vmul.f32 %v4428_v31, %v4430_v54  ;;  %v3017_v54 = vmov 14  }
 0x29d   : > { %2430 = vperm.xlu0 %2951, %v4258_v35   ;;  %v1993_v33 = vadd.f32 %v1985_v15, %v1941_v25  ;;  %v1984_v15 = vmul.f32 %v4428_v31, %v4391_v20  ;;  %v4489_v25 = vrot.slane %v4396_v49, %v2083_v14 }
 0x29e   : > { %2322 = vperm.xlu1 %2946, %v4220_v8   ;;  %v1971_v4 = vpop.permute.xlu1 %1970 }
 0x29f   : > { %v1987_v46 = vmul.f32 %v4428_v31, %v1971_v4  ;;  %v1932_v4 = vmul.f32 %v4412_v18, %v4376_v50  ;;  %v1937_v50 = vadd.f32 %v1929_v55, %v1885_v60  ;;  %v1832_v60 = vmul.f32 %v4408_v36, %v4341_v24 }
 0x2a0   : > { %v2003_v2 = vpop.permute.xlu0 %2002 }
 0x2a1   : > { %v2034_v45 = vmul.f32 %v4439_v40, %v2003_v2  ;;  %2438 = vperm.xlu0 %2951, %v4269_v63   ;;  %v1888_v2 = vadd.f32 %v1880_v42, %v1828_v22 }
 0x2a2   : > { %2330 = vperm.xlu1 %2946, %v4246_v62  }
 0x2a3   : > { %v1999_v52 = vpop.permute.xlu1 %1998  ;;  %v4457_v57 = vadd.f32 %v2034_v45, %v1990_v48  ;;  %v1995_v45 = vadd.f32 %v1987_v46, %v1943_v32  ;;  %v1940_v20 = vadd.f32 %v1932_v4, %v1888_v2 }
 0x2a4   : > { %v2015_v47 = vpop.permute.xlu0 %2014  ;;  %v2033_v1 = vmul.f32 %v4439_v40, %v1999_v52  ;;  %v1989_v52 = vadd.f32 %v1981_v58, %v1937_v50 }
 0x2a5   : > { %v2037_v0 = vmul.f32 %v4439_v40, %v2015_v47  ;;  %2952 = vset.pattern.permute.xlu0 %v3016_v29  ;;  %v1884_v47 = vmul.f32 %v4401_v26, %v4368_v9  ;;  %v1936_v9 = vmul.f32 %v4412_v18, %v4384_v61 }
 0x2a6   : > { %2338 = vperm.xlu1 %2946, %v4264_v28   ;;  %2466 = vperm.xlu0 %2952, %v4206_v23   ;;  %v2041_v22 = vadd.f32 %v2033_v1, %v1989_v52 }
 0x2a7   : > { %v4469_v27 = vpop.permute.xlu1 %2006  ;;  %v4475_v39 = vadd.f32 %v2037_v0, %v1993_v33  ;;  %v1992_v33 = vadd.f32 %v1984_v15, %v1940_v20  ;;  %v1986_v0 = vmul.f32 %v4428_v31, %v4415_v17  ;;  %v1892_v2 = vadd.f32 %v1884_v47, %v1832_v60 }
 0x2a8   : > { %v2023_v48 = vpop.permute.xlu0 %2022 }
 0x2a9   : > { %v2039_v30 = vmul.f32 %v4439_v40, %v2023_v48 }
 0x2aa   : > { %2949 = vset.pattern.permute.xlu1 %v3014_v56  ;;  %2478 = vperm.xlu0 %2952, %v4220_v8   ;;  %v1934_v56 = vmul.f32 %v4412_v18, %v4380_v16 }
 0x2ab   : > { %2366 = vperm.xlu1 %2949, %v4236_v59   ;;  %v2011_v38 = vpop.permute.xlu1 %2010  ;;  %v4497_v43 = vadd.f32 %v2039_v30, %v1995_v45  ;;  %v1944_v45 = vadd.f32 %v1936_v9, %v1892_v2  ;;  %v1827_v2 = vmul.f32 %v4408_v36, %v4321_v7  ;;  %v1983_v7 = vmul.f32 %v4428_v31, %v4404_v44 }
 0x2ac   : > { %v2036_v42 = vmul.f32 %v4439_v40, %v2011_v38  ;;  %v1942_v55 = vadd.f32 %v1934_v56, %v1890_v41  ;;  %v2135_v56 = vsub.s32 6, %v4020_v53 }
 0x2ad   : > { %v2051_v46 = vpop.permute.xlu0 %2050  ;;  %v1996_v38 = vadd.f32 %v1988_v19, %v1944_v45  ;;  %v2035_v45 = vmul.f32 %v4439_v40, %v4469_v27 }
 0x2ae   : > { %v2085_v3 = vmul.f32 %v4489_v25, %v2051_v46  ;;  %2486 = vperm.xlu0 %2952, %v4246_v62   ;;  %v2044_v32 = vadd.f32 %v2036_v42, %v1992_v33  ;;  %v1994_v48 = vadd.f32 %v1986_v0, %v1942_v55  ;;  %v4536_v0 = vrot.slane %v4396_v49, %v2135_v56 }
 0x2af   : > { %2370 = vperm.xlu1 %2949, %v4198_v37   ;;  %v2019_v16 = vpop.permute.xlu1 %2018  ;;  %v1879_v55 = vmul.f32 %v4401_v26, %v4349_v5  ;;  %v2187_v26 = vsub.s32 7, %v4020_v53 }
 0x2b0   : > { %v4511_v4 = vadd.f32 %v2085_v3, %v2041_v22  ;;  %v2038_v17 = vmul.f32 %v4439_v40, %v2019_v16 }
 0x2b1   : > { %v2063_v58 = vpop.permute.xlu0 %2062 }
 0x2b2   : > { %v2088_v15 = vmul.f32 %v4489_v25, %v2063_v58  ;;  %2494 = vperm.xlu0 %2952, %v4264_v28   ;;  %v2046_v30 = vadd.f32 %v2038_v17, %v1994_v48  ;;  %v1931_v58 = vmul.f32 %v4412_v18, %v4372_v12 }
 0x2b3   : > { %2378 = vperm.xlu1 %2949, %v4258_v35   ;;  %v2027_v24 = vpop.permute.xlu1 %2026 }
 0x2b4   : > { %v4519_v61 = vadd.f32 %v2088_v15, %v2044_v32  ;;  %v2040_v50 = vmul.f32 %v4439_v40, %v2027_v24  ;;  %v3018_v15 = vmov 15  }
 0x2b5   : > { %v2071_v1 = vpop.permute.xlu0 %2070 }
 0x2b6   : > { %v2090_v13 = vmul.f32 %v4489_v25, %v2071_v1  ;;  %2955 = vset.pattern.permute.xlu0 %v3017_v54  ;;  %v2048_v42 = vadd.f32 %v2040_v50, %v1996_v38  ;;  %v4573_v1 = vrot.slane %v4396_v49, %v2187_v26 }
 0x2b7   : > { %2386 = vperm.xlu1 %2949, %v4269_v63   ;;  %2522 = vperm.xlu0 %2955, %v4236_v59  }
 0x2b8   : > { %v2055_v20 = vpop.permute.xlu1 %2054  ;;  %v4527_v52 = vadd.f32 %v2090_v13, %v2046_v30 }
 0x2b9   : > { %v2086_v41 = vmul.f32 %v4489_v25, %v2055_v20  ;;  %v2079_v47 = vpop.permute.xlu0 %2078 }
 0x2ba   : > { %v2092_v33 = vmul.f32 %v4489_v25, %v2079_v47 }
 0x2bb   : > { %v2094_v46 = vadd.f32 %v2086_v41, %v4457_v57  ;;  %2950 = vset.pattern.permute.xlu1 %v3015_v34  ;;  %2534 = vperm.xlu0 %2955, %v4258_v35  }
 0x2bc   : > { %2414 = vperm.xlu1 %2950, %v4206_v23   ;;  %v2059_v22 = vpop.permute.xlu1 %2058  ;;  %v4540_v3 = vadd.f32 %v2092_v33, %v2048_v42 }
 0x2bd   : > { %v2087_v31 = vmul.f32 %v4489_v25, %v2059_v22 }
 0x2be   : > { %v2107_v16 = vpop.permute.xlu0 %2106 }
 0x2bf   : > { %v2138_v60 = vmul.f32 %v4536_v0, %v2107_v16  ;;  %2542 = vperm.xlu0 %2955, %v4269_v63  }
 0x2c0   : > { %2422 = vperm.xlu1 %2950, %v4198_v37   ;;  %v2067_v57 = vpop.permute.xlu1 %2066 }
 0x2c1   : > { %v2089_v34 = vmul.f32 %v4489_v25, %v2067_v57  ;;  %v4548_v9 = vadd.f32 %v2138_v60, %v2094_v46 }
 0x2c2   : > { %v2119_v17 = vpop.permute.xlu0 %2118 }
 0x2c3   : > { %v2097_v32 = vadd.f32 %v2089_v34, %v4475_v39  ;;  %v2141_v48 = vmul.f32 %v4536_v0, %v2119_v17  ;;  %2956 = vset.pattern.permute.xlu0 %v3018_v15  ;;  %v1887_v39 = vadd.f32 %v1879_v55, %v1827_v2  ;;  %v4598_v2 = vld [vmem:[%s4811_s7 + $0x8] sm:$0xff] }
 0x2c4   : > { %2426 = vperm.xlu1 %2950, %v4220_v8   ;;  %v2075_v19 = vpop.permute.xlu1 %2074  ;;  %2570 = vperm.xlu0 %2956, %v4206_v23  }
 0x2c5   : > { %v2091_v5 = vmul.f32 %v4489_v25, %v2075_v19  ;;  %v4563_v36 = vadd.f32 %v2141_v48, %v2097_v32  ;;  %v1939_v24 = vadd.f32 %v1931_v58, %v1887_v39 }
 0x2c6   : > { %v2127_v18 = vpop.permute.xlu0 %2126 }
 0x2c7   : > { %v2099_v12 = vadd.f32 %v2091_v5, %v4497_v43  ;;  %v2143_v30 = vmul.f32 %v4536_v0, %v2127_v18  ;;  %v1991_v44 = vadd.f32 %v1983_v7, %v1939_v24  ;;  %v2240_v5 = vrot.slane %v4598_v2, %v4032_v11 }
 0x2c8   : > { %2434 = vperm.xlu1 %2950, %v4246_v62   ;;  %2582 = vperm.xlu0 %2956, %v4220_v8  }
 0x2c9   : > { %v2103_v50 = vpop.permute.xlu1 %2102  ;;  %v4577_v43 = vadd.f32 %v2143_v30, %v2099_v12  ;;  %v2043_v40 = vadd.f32 %v2035_v45, %v1991_v44 }
 0x2ca   : > { %v2137_v38 = vmul.f32 %v4536_v0, %v2103_v50 }
 0x2cb   : > { %v2155_v13 = vpop.permute.xlu0 %2154  ;;  %v2095_v49 = vadd.f32 %v2087_v31, %v2043_v40 }
 0x2cc   : > { %v2145_v27 = vadd.f32 %v2137_v38, %v4511_v4  ;;  %2442 = vperm.xlu1 %2950, %v4264_v28   ;;  %v2189_v20 = vmul.f32 %v4573_v1, %v2155_v13  ;;  %2590 = vperm.xlu0 %2956, %v4246_v62  }
 0x2cd   : > { %v2111_v42 = vpop.permute.xlu1 %2110 }
 0x2ce   : > { %v2139_v41 = vmul.f32 %v4536_v0, %v2111_v42  ;;  %v2197_v47 = vadd.f32 %v2189_v20, %v2145_v27  ;;  %v2292_v20 = vrot.slane %v4598_v2, %v4035_v51 }
 0x2cf   : > { %v2167_v33 = vpop.permute.xlu0 %2166 }
 0x2d0   : > { %v2147_v25 = vadd.f32 %v2139_v41, %v2095_v49  ;;  %2953 = vset.pattern.permute.xlu1 %v3016_v29  ;;  %2598 = vperm.xlu0 %2956, %v4264_v28   ;;  %v2192_v22 = vmul.f32 %v4573_v1, %v2167_v33 }
 0x2d1   : > { %2470 = vperm.xlu1 %2953, %v4236_v59   ;;  %v2115_v46 = vpop.permute.xlu1 %2114 }
 0x2d2   : > { %v2140_v4 = vmul.f32 %v4536_v0, %v2115_v46 }
 0x2d3   : > { %v2175_v60 = vpop.permute.xlu0 %2174 }
 0x2d4   : > { %v2148_v16 = vadd.f32 %v2140_v4, %v4519_v61  ;;  %v2194_v29 = vmul.f32 %v4573_v1, %v2175_v60 }
 0x2d5   : > { %2474 = vperm.xlu1 %2953, %v4198_v37   ;;  %v2123_v57 = vpop.permute.xlu1 %2122 }
 0x2d6   : > { %v2200_v34 = vadd.f32 %v2192_v22, %v2148_v16  ;;  %v2142_v55 = vmul.f32 %v4536_v0, %v2123_v57 }
 0x2d7   : > { %v2183_v17 = vpop.permute.xlu0 %2182 }
 0x2d8   : > { %v2150_v32 = vadd.f32 %v2142_v55, %v4527_v52  ;;  %v2196_v19 = vmul.f32 %v4573_v1, %v2183_v17 }
 0x2d9   : > { %2482 = vperm.xlu1 %2953, %v4258_v35   ;;  %v2131_v61 = vpop.permute.xlu1 %2130 }
 0x2da   : > { %v2202_v58 = vadd.f32 %v2194_v29, %v2150_v32  ;;  %v2144_v48 = vmul.f32 %v4536_v0, %v2131_v61 }
 0x2dc   : > { %v2152_v39 = vadd.f32 %v2144_v48, %v4540_v3  ;;  %v2211_v52 = vpop.permute.xlu0 %2210 }
 0x2dd   : > { %2490 = vperm.xlu1 %2953, %v4269_v63   ;;  %v2242_v24 = vmul.f32 %v2240_v5, %v2211_v52 }
 0x2de   : > { %v2204_v7 = vadd.f32 %v2196_v19, %v2152_v39  ;;  %v2159_v12 = vpop.permute.xlu1 %2158 }
 0x2df   : > { %v2190_v18 = vmul.f32 %v4573_v1, %v2159_v12 }
 0x2e0   : > { %v2223_v0 = vpop.permute.xlu0 %2222 }
 0x2e1   : > { %v2198_v45 = vadd.f32 %v2190_v18, %v4548_v9  ;;  %2954 = vset.pattern.permute.xlu1 %v3017_v54  ;;  %v2245_v40 = vmul.f32 %v2240_v5, %v2223_v0 }
 0x2e2   : > { %2518 = vperm.xlu1 %2954, %v4206_v23   ;;  %v2163_v30 = vpop.permute.xlu1 %2162 }
 0x2e3   : > { %v2250_v50 = vadd.f32 %v2242_v24, %v2198_v45  ;;  %v2191_v11 = vmul.f32 %v4573_v1, %v2163_v30 }
 0x2e4   : > { %v2231_v31 = vpop.permute.xlu0 %2230 }
 0x2e5   : > { %v2199_v3 = vadd.f32 %v2191_v11, %v2147_v25  ;;  %v2247_v13 = vmul.f32 %v2240_v5, %v2231_v31 }
 0x2e6   : > { %2526 = vperm.xlu1 %2954, %v4198_v37   ;;  %v2171_v44 = vpop.permute.xlu1 %2170 }
 0x2e7   : > { %v2193_v38 = vmul.f32 %v4573_v1, %v2171_v44 }
 0x2e9   : > { %v2201_v27 = vadd.f32 %v2193_v38, %v4563_v36  ;;  %v2259_v42 = vpop.permute.xlu0 %2258 }
 0x2ea   : > { %2530 = vperm.xlu1 %2954, %v4220_v8   ;;  %v2179_v54 = vpop.permute.xlu1 %2178  ;;  %v2293_v46 = vmul.f32 %v2292_v20, %v2259_v42 }
 0x2eb   : > { %v2253_v9 = vadd.f32 %v2245_v40, %v2201_v27  ;;  %v2195_v23 = vmul.f32 %v4573_v1, %v2179_v54 }
 0x2ed   : > { %v2203_v49 = vadd.f32 %v2195_v23, %v4577_v43  ;;  %v2271_v36 = vpop.permute.xlu0 %2270 }
 0x2ee   : > { %2538 = vperm.xlu1 %2954, %v4246_v62   ;;  %v2296_v62 = vmul.f32 %v2292_v20, %v2271_v36 }
 0x2ef   : > { %v2255_v41 = vadd.f32 %v2247_v13, %v2203_v49  ;;  %v2207_v25 = vpop.permute.xlu1 %2206 }
 0x2f0   : > { %v2241_v33 = vmul.f32 %v2240_v5, %v2207_v25 }
 0x2f1   : > { %v2279_v51 = vpop.permute.xlu0 %2278 }
 0x2f2   : > { %v2249_v4 = vadd.f32 %v2241_v33, %v2197_v47  ;;  %2546 = vperm.xlu1 %2954, %v4264_v28   ;;  %v2298_v32 = vmul.f32 %v2292_v20, %v2279_v51 }
 0x2f3   : > { %v2215_v8 = vpop.permute.xlu1 %2214 }
 0x2f4   : > { %v2301_v22 = vadd.f32 %v2293_v46, %v2249_v4  ;;  %v2243_v1 = vmul.f32 %v2240_v5, %v2215_v8 }
 0x2f5   : > { %v2287_v28 = vpop.permute.xlu0 %2286 }
 0x2f6   : > { %v2251_v16 = vadd.f32 %v2243_v1, %v2199_v3  ;;  %2957 = vset.pattern.permute.xlu1 %v3018_v15  ;;  %v2300_v19 = vmul.f32 %v2292_v20, %v2287_v28 }
 0x2f7   : > { %2574 = vperm.xlu1 %2957, %v4236_v59   ;;  %v2219_v43 = vpop.permute.xlu1 %2218  ;;  %v2344_v59 = vrot.slane %v4598_v2, %v4038_v10 }
 0x2f8   : > { %v2244_v60 = vmul.f32 %v2240_v5, %v2219_v43 }
 0x2fa   : > { %v2252_v57 = vadd.f32 %v2244_v60, %v2200_v34  ;;  %v2315_v52 = vpop.permute.xlu0 %2314 }
 0x2fb   : > { %2578 = vperm.xlu1 %2957, %v4198_v37   ;;  %v2227_v55 = vpop.permute.xlu1 %2226  ;;  %v2346_v18 = vmul.f32 %v2344_v59, %v2315_v52 }
 0x2fc   : > { %v2304_v29 = vadd.f32 %v2296_v62, %v2252_v57  ;;  %v2246_v47 = vmul.f32 %v2240_v5, %v2227_v55 }
 0x2fe   : > { %v2254_v17 = vadd.f32 %v2246_v47, %v2202_v58  ;;  %v2327_v45 = vpop.permute.xlu0 %2326 }
 0x2ff   : > { %2586 = vperm.xlu1 %2957, %v4258_v35   ;;  %v2235_v61 = vpop.permute.xlu1 %2234  ;;  %v2349_v3 = vmul.f32 %v2344_v59, %v2327_v45 }
 0x300   : > { %v2306_v48 = vadd.f32 %v2298_v32, %v2254_v17  ;;  %v2248_v15 = vmul.f32 %v2240_v5, %v2235_v61 }
 0x302   : > { %v2256_v39 = vadd.f32 %v2248_v15, %v2204_v7  ;;  %v2335_v44 = vpop.permute.xlu0 %2334 }
 0x303   : > { %2594 = vperm.xlu1 %2957, %v4269_v63   ;;  %v2351_v40 = vmul.f32 %v2344_v59, %v2335_v44 }
 0x304   : > { %v2308_v37 = vadd.f32 %v2300_v19, %v2256_v39  ;;  %v2263_v34 = vpop.permute.xlu1 %2262 }
 0x305   : > { %v2294_v12 = vmul.f32 %v2292_v20, %v2263_v34 }
 0x307   : > { %v2302_v24 = vadd.f32 %v2294_v12, %v2250_v50  ;;  %v2363_v27 = vpop.permute.xlu0 %2362 }
 0x308   : > { %v2267_v58 = vpop.permute.xlu1 %2266 }
 0x309   : > { %v2354_v0 = vadd.f32 %v2346_v18, %v2302_v24  ;;  %v2295_v35 = vmul.f32 %v2292_v20, %v2267_v58 }
 0x30b   : > { %v2303_v30 = vadd.f32 %v2295_v35, %v2251_v16  ;;  %v2375_v50 = vpop.permute.xlu0 %2374 }
 0x30c   : > { %v2275_v11 = vpop.permute.xlu1 %2274 }
 0x30d   : > { %v2297_v5 = vmul.f32 %v2292_v20, %v2275_v11 }
 0x30f   : > { %v2305_v31 = vadd.f32 %v2297_v5, %v2253_v9  ;;  %v2383_v36 = vpop.permute.xlu0 %2382 }
 0x310   : > { %v2283_v10 = vpop.permute.xlu1 %2282 }
 0x311   : > { %v2357_v7 = vadd.f32 %v2349_v3, %v2305_v31  ;;  %v2299_v38 = vmul.f32 %v2292_v20, %v2283_v10  ;;  %v4663_v3 = vrot.slane %v4598_v2, %v2031_v21  ;;  %v4681_v21 = vrot.slane %v4598_v2, %v2187_v26 }
 0x313   : > { %v2307_v63 = vadd.f32 %v2299_v38, %v2255_v41  ;;  %v4629_v16 = vpop.permute.xlu0 %2390 }
 0x315   : > { %v2359_v54 = vadd.f32 %v2351_v40, %v2307_v63  ;;  %v2311_v23 = vpop.permute.xlu1 %2310 }
 0x316   : > { %v2345_v13 = vmul.f32 %v2344_v59, %v2311_v23 }
 0x318   : > { %v2353_v42 = vadd.f32 %v2345_v13, %v2301_v22  ;;  %v2396_v22 = vrot.slane %v4598_v2, %v1979_v6  ;;  %v4638_v60 = vpop.permute.xlu0 %2418  ;;  %v4686_v13 = vrot.slane %v4598_v2, %v2135_v56  ;;  %v4696_v56 = vld [vmem:[%s4812_s8] ss:$0 sm:$0xff] }
 0x319   : > { %v2319_v49 = vpop.permute.xlu1 %2318 }
 0x31a   : > { %v2347_v25 = vmul.f32 %v2344_v59, %v2319_v49  ;;  %v2397_v5 = vmul.f32 %v2396_v22, %v2363_v27 }
 0x31c   : > { %v2355_v33 = vadd.f32 %v2347_v25, %v2303_v30  ;;  %v2405_v38 = vadd.f32 %v2397_v5, %v2353_v42 }
 0x31d   : > { %v2323_v46 = vpop.permute.xlu1 %2322 }
 0x31e   : > { %v2348_v4 = vmul.f32 %v2344_v59, %v2323_v46 }
 0x320   : > { %v2356_v8 = vadd.f32 %v2348_v4, %v2304_v29  ;;  %v4642_v29 = vpop.permute.xlu0 %2430  ;;  %v2402_v4 = vmul.f32 %v2396_v22, %v2383_v36  ;;  %v4706_v36 = vld [vmem:[%s4813_s9] ss:$0 sm:$0xff] }
 0x321   : > { %v2331_v1 = vpop.permute.xlu1 %2330 }
 0x322   : > { %v2350_v9 = vmul.f32 %v2344_v59, %v2331_v1 }
 0x324   : > { %v4631_v20 = vadd.f32 %v2350_v9, %v2306_v48  ;;  %v4646_v48 = vpop.permute.xlu0 %2438 }
 0x325   : > { %v2339_v41 = vpop.permute.xlu1 %2338 }
 0x326   : > { %v2352_v51 = vmul.f32 %v2344_v59, %v2339_v41 }
 0x328   : > { %v4633_v43 = vadd.f32 %v2352_v51, %v2308_v37  ;;  %v2467_v39 = vpop.permute.xlu0 %2466  ;;  %v2410_v51 = vadd.f32 %v2402_v4, %v4631_v20 }
 0x32a   : > { %v2367_v62 = vpop.permute.xlu1 %2366 }
 0x32b   : > { %v2398_v57 = vmul.f32 %v2396_v22, %v2367_v62 }
 0x32c   : > { %v2479_v37 = vpop.permute.xlu0 %2478 }
 0x32d   : > { %v4640_v55 = vadd.f32 %v2398_v57, %v2354_v0 }
 0x32e   : > { %v2371_v47 = vpop.permute.xlu1 %2370 }
 0x32f   : > { %v2399_v32 = vmul.f32 %v2396_v22, %v2371_v47 }
 0x330   : > { %v2487_v18 = vpop.permute.xlu0 %2486 }
 0x331   : > { %v4644_v28 = vadd.f32 %v2399_v32, %v2355_v33 }
 0x332   : > { %v2379_v17 = vpop.permute.xlu1 %2378 }
 0x333   : > { %v2401_v61 = vmul.f32 %v2396_v22, %v2379_v17  ;;  %v2653_v17 = vld [vmem:[%s4700_s14] sm:$0xff] }
 0x334   : > { %v2495_v45 = vpop.permute.xlu0 %2494 }
 0x335   : > { %v4648_v15 = vadd.f32 %v2401_v61, %v2357_v7  ;;  %v4673_v7 = vrot.slane %v4598_v2, %v2083_v14 }
 0x336   : > { %v2387_v19 = vpop.permute.xlu1 %2386 }
 0x337   : > { %v2403_v6 = vmul.f32 %v2396_v22, %v2387_v19  ;;  %v2501_v27 = vmul.f32 %v4673_v7, %v2467_v39  ;;  %v2504_v53 = vmul.f32 %v4673_v7, %v2479_v37  ;;  %v2506_v47 = vmul.f32 %v4673_v7, %v2487_v18 }
 0x338   : > { %v4654_v0 = vpop.permute.xlu0 %2522 }
 0x339   : > { %v4650_v59 = vadd.f32 %v2403_v6, %v2359_v54  ;;  %v2400_v54 = vmul.f32 %v2396_v22, %v2375_v50  ;;  %v2554_v4 = vmul.f32 %v4686_v13, %v4654_v0 }
 0x33b   : > { %v2415_v52 = vpop.permute.xlu1 %2414  ;;  %v2408_v46 = vadd.f32 %v2400_v54, %v2356_v8  ;;  %v2404_v8 = vmul.f32 %v2396_v22, %v4629_v16 }
 0x33c   : > { %v4656_v30 = vpop.permute.xlu0 %2534  ;;  %v2449_v10 = vmul.f32 %v4663_v3, %v2415_v52 }
 0x33d   : > { %v2412_v20 = vadd.f32 %v2404_v8, %v4633_v43 }
 0x33e   : > { %v2457_v63 = vadd.f32 %v2449_v10, %v2405_v38 }
 0x33f   : > { %v4652_v34 = vpop.permute.xlu1 %2422 }
 0x340   : > { %v4667_v31 = vpop.permute.xlu0 %2542  ;;  %v2509_v49 = vadd.f32 %v2501_v27, %v2457_v63 }
 0x343   : > { %v2427_v12 = vpop.permute.xlu1 %2426 }
 0x344   : > { %v2571_v23 = vpop.permute.xlu0 %2570  ;;  %v2452_v14 = vmul.f32 %v4663_v3, %v2427_v12  ;;  %v2450_v12 = vmul.f32 %v4663_v3, %v4638_v60 }
 0x345   : > { %v2605_v33 = vmul.f32 %v4681_v21, %v2571_v23 }
 0x346   : > { %v2460_v1 = vadd.f32 %v2452_v14, %v2408_v46  ;;  %v2458_v60 = vadd.f32 %v2450_v12, %v4640_v55  ;;  %v2453_v55 = vmul.f32 %v4663_v3, %v4642_v29 }
 0x347   : > { %v2435_v24 = vpop.permute.xlu1 %2434 }
 0x348   : > { %v2583_v26 = vpop.permute.xlu0 %2582  ;;  %v2454_v9 = vmul.f32 %v4663_v3, %v2435_v24  ;;  %v2512_v57 = vadd.f32 %v2504_v53, %v2460_v1  ;;  %v2508_v24 = vmul.f32 %v4673_v7, %v2495_v45  ;;  %v2656_v45 = vld [vmem:[%s4700_s14 + $0x18] sm:$0xff] }
 0x349   : > { %v2608_v39 = vmul.f32 %v4681_v21, %v2583_v26 }
 0x34a   : > { %v2462_v6 = vadd.f32 %v2454_v9, %v2410_v51 }
 0x34b   : > { %v2443_v58 = vpop.permute.xlu1 %2442 }
 0x34c   : > { %v2456_v32 = vmul.f32 %v4663_v3, %v2443_v58  ;;  %v2591_v19 = vpop.permute.xlu0 %2590  ;;  %v2514_v5 = vadd.f32 %v2506_v47, %v2462_v6 }
 0x34d   : > { %v2610_v63 = vmul.f32 %v4681_v21, %v2591_v19  ;;  %v2660_v19 = vld [vmem:[%s4700_s14 + $0x38] sm:$0xff] }
 0x34e   : > { %v2464_v18 = vadd.f32 %v2456_v32, %v2412_v20 }
 0x350   : > { %v2471_v35 = vpop.permute.xlu1 %2470  ;;  %v2599_v27 = vpop.permute.xlu0 %2598  ;;  %v2516_v14 = vadd.f32 %v2508_v24, %v2464_v18  ;;  %v2559_v24 = vmul.f32 %v4686_v13, %v4667_v31 }
 0x351   : > { %v2502_v43 = vmul.f32 %v4673_v7, %v2471_v35  ;;  %v2612_v46 = vmul.f32 %v4681_v21, %v2599_v27  ;;  %v2451_v35 = vmul.f32 %v4663_v3, %v4652_v34 }
 0x353   : > { %v2510_v26 = vadd.f32 %v2502_v43, %v2458_v60  ;;  %v2459_v29 = vadd.f32 %v2451_v35, %v4644_v28  ;;  %v2557_v28 = vmul.f32 %v4686_v13, %v4656_v30 }
 0x354   : > { %v4658_v11 = vpop.permute.xlu1 %2474 }
 0x355   : > { %v2503_v9 = vmul.f32 %v4673_v7, %v4658_v11  ;;  %v2461_v11 = vadd.f32 %v2453_v55, %v4648_v15 }
 0x358   : > { %v4665_v44 = vpop.permute.xlu1 %2482 }
 0x359   : > { %v2505_v8 = vmul.f32 %v4673_v7, %v4665_v44 }
 0x35c   : > { %v4675_v40 = vpop.permute.xlu1 %2490 }
 0x361   : > { %v2519_v42 = vpop.permute.xlu1 %2518 }
 0x362   : > { %v2553_v25 = vmul.f32 %v4686_v13, %v2519_v42 }
 0x364   : > { %v2561_v50 = vadd.f32 %v2553_v25, %v2509_v49 }
 0x365   : > { %v2527_v2 = vpop.permute.xlu1 %2526 }
 0x366   : > { %v2613_v41 = vadd.f32 %v2605_v33, %v2561_v50 }
 0x368   : > { %v2628_v62 = vmul.f32 %v4696_v56, %v2613_v41  ;;  %v2658_v41 = vld [vmem:[%s4700_s14 + $0x28] sm:$0xff] }
 0x369   : > { %v2531_v61 = vpop.permute.xlu1 %2530 }
 0x36a   : > { %v2643_v16 = vadd.f32 %v4706_v36, %v2628_v62  ;;  %v2556_v22 = vmul.f32 %v4686_v13, %v2531_v61  ;;  %v2562_v62 = vadd.f32 %v2554_v4, %v2510_v26  ;;  %v2511_v61 = vadd.f32 %v2503_v9, %v2459_v29 }
 0x36c   : > { %v2661_v52 = vadd.f32 %v2653_v17, %v2643_v16  ;;  %v2564_v37 = vadd.f32 %v2556_v22, %v2512_v57  ;;  %v2555_v57 = vmul.f32 %v4686_v13, %v2527_v2  ;;  %v2455_v17 = vmul.f32 %v4663_v3, %v4646_v48 }
 0x36d   : > { %v2539_v58 = vpop.permute.xlu1 %2538  ;;  %v2513_v16 = vadd.f32 %v2505_v8, %v2461_v11  ;;  %v2507_v22 = vmul.f32 %v4673_v7, %v4675_v40 }
 0x36e   : > { %2670 = vst.msk [vmem:[%s3115_s11] sm:$0xff] %vm2669_vm2, %v2661_v52  ;;  %v2616_v10 = vadd.f32 %v2608_v39, %v2564_v37  ;;  %v2558_v38 = vmul.f32 %v4686_v13, %v2539_v58  ;;  %v2563_v39 = vadd.f32 %v2555_v57, %v2511_v61  ;;  %v2654_v52 = vld [vmem:[%s4700_s14 + $0x8] sm:$0xff]  ;;  %v2463_v37 = vadd.f32 %v2455_v17, %v4650_v59  ;;  %v2655_v59 = vld [vmem:[%s4700_s14 + $0x10] sm:$0xff] }
 0x36f   : > { %v2565_v18 = vadd.f32 %v2557_v28, %v2513_v16 }
 0x370   : > { %v2631_v54 = vmul.f32 %v4696_v56, %v2616_v10  ;;  %v2566_v23 = vadd.f32 %v2558_v38, %v2514_v5  ;;  %v2515_v40 = vadd.f32 %v2507_v22, %v2463_v37 }
 0x371   : > { %v2547_v42 = vpop.permute.xlu1 %2546 }
 0x372   : > { %v2646_v49 = vadd.f32 %v4706_v36, %v2631_v54  ;;  %v2618_v25 = vadd.f32 %v2610_v63, %v2566_v23  ;;  %v2560_v33 = vmul.f32 %v4686_v13, %v2547_v42  ;;  %v2567_v13 = vadd.f32 %v2559_v24, %v2515_v40  ;;  %v2657_v23 = vld [vmem:[%s4700_s14 + $0x20] sm:$0xff] }
 0x374   : > { %v2664_v50 = vadd.f32 %v2656_v45, %v2646_v49  ;;  %v2633_v1 = vmul.f32 %v4696_v56, %v2618_v25  ;;  %v2568_v53 = vadd.f32 %v2560_v33, %v2516_v14  ;;  %v2659_v49 = vld [vmem:[%s4700_s14 + $0x30] sm:$0xff] }
 0x376   : > { %2673 = vst.msk [vmem:[%s3115_s11 + $0x18] sm:$0xff] %vm2669_vm2, %v2664_v50  ;;  %v2648_v34 = vadd.f32 %v4706_v36, %v2633_v1  ;;  %v2620_v0 = vadd.f32 %v2612_v46, %v2568_v53  ;;  %v2575_v51 = vpop.permute.xlu1 %2574 }
 0x377   : > { %v2606_v47 = vmul.f32 %v4681_v21, %v2575_v51 }
 0x378   : > { %v2666_v32 = vadd.f32 %v2658_v41, %v2648_v34  ;;  %v2635_v44 = vmul.f32 %v4696_v56, %v2620_v0 }
 0x379   : > { %v2614_v6 = vadd.f32 %v2606_v47, %v2562_v62 }
 0x37a   : > { %2675 = vst.msk [vmem:[%s3115_s11 + $0x28] sm:$0xff] %vm2669_vm2, %v2666_v32  ;;  %v2650_v2 = vadd.f32 %v4706_v36, %v2635_v44  ;;  %v2579_v15 = vpop.permute.xlu1 %2578 }
 0x37b   : > { %v2629_v48 = vmul.f32 %v4696_v56, %v2614_v6  ;;  %v2607_v3 = vmul.f32 %v4681_v21, %v2579_v15 }
 0x37c   : > { %v2668_v20 = vadd.f32 %v2660_v19, %v2650_v2 }
 0x37d   : > { %v2644_v30 = vadd.f32 %v4706_v36, %v2629_v48  ;;  %v2615_v12 = vadd.f32 %v2607_v3, %v2563_v39 }
 0x37e   : > { %2677 = vst.msk [vmem:[%s3115_s11 + $0x38] sm:$0xff] %vm2669_vm2, %v2668_v20  ;;  %v2587_v7 = vpop.permute.xlu1 %2586 }
 0x37f   : > { %v2662_v58 = vadd.f32 %v2654_v52, %v2644_v30  ;;  %v2630_v5 = vmul.f32 %v4696_v56, %v2615_v12  ;;  %v2609_v10 = vmul.f32 %v4681_v21, %v2587_v7 }
 0x381   : > { %2671 = vst.msk [vmem:[%s3115_s11 + $0x8] sm:$0xff] %vm2669_vm2, %v2662_v58  ;;  %v2645_v38 = vadd.f32 %v4706_v36, %v2630_v5  ;;  %v2617_v63 = vadd.f32 %v2609_v10, %v2565_v18 }
 0x382   : > { %v2595_v31 = vpop.permute.xlu1 %2594 }
 0x383   : > { %v2663_v43 = vadd.f32 %v2655_v59, %v2645_v38  ;;  %v2632_v27 = vmul.f32 %v4696_v56, %v2617_v63  ;;  %v2611_v54 = vmul.f32 %v4681_v21, %v2595_v31 }
 0x385   : > { %2672 = vst.msk [vmem:[%s3115_s11 + $0x10] sm:$0xff] %vm2669_vm2, %v2663_v43  ;;  %v2647_v60 = vadd.f32 %v4706_v36, %v2632_v27  ;;  %v2619_v14 = vadd.f32 %v2611_v54, %v2567_v13 }
 0x387   : > { %v2665_v45 = vadd.f32 %v2657_v23, %v2647_v60  ;;  %v2634_v42 = vmul.f32 %v4696_v56, %v2619_v14 }
 0x389   : > { %2674 = vst.msk [vmem:[%s3115_s11 + $0x20] sm:$0xff] %vm2669_vm2, %v2665_v45  ;;  %v2649_v25 = vadd.f32 %v4706_v36, %v2634_v42 }
 0x38b   : > { %v2667_v33 = vadd.f32 %v2659_v49, %v2649_v25 }
 0x38d   : > { %2676 = vst.msk [vmem:[%s3115_s11 + $0x30] sm:$0xff] %vm2669_vm2, %v2667_v33 }
 0x38e PF: > { %s20_s17 = sadd.s32 1, %s2996_s17   ;;  %s4860_s13 = smov %s2988_s15 }
 0x38f   : > { %p17_p8 = scmp.ge.s32.totalorder %s20_s17, 10   ;;  %s4861_s14 = smov %s2992_s16 }
 0x390   : > { %s4862_s15 = smov %s4865_s18  ;;  %s4863_s16 = smov %s4869_s19 }
 0x391   :  { %19 = sbr.rel (!%p17_p8) target bundleno = 3 (0x3), region = 99 }

</bundles_post_ra>
